<compile_context>
chip_gen: v5e
topology: v5e:2x2
jax: 0.10.0
libtpu: 0.0.40
codegen_flags: <defaults>
</compile_context>

<pallas_src>
import functools
import math

import jax
import jax.numpy as jnp
from jax.experimental import pallas as pl
from jax.experimental.pallas import tpu as pltpu

# ----------------------------- model config ---------------------------------
IN_FEATURES = 2
HIDDEN_FEATURES = 32
HIDDEN_LAYERS = 2
OUT_FEATURES = 1
FIRST_OMEGA_0 = 30.0
HIDDEN_OMEGA_0 = 30.0
OUTERMOST_LINEAR = False  # default in the PyTorch module


# ------------------ range-limited sine (pure VPU, no EUP) --------------------
_INV_PI = 0.3183098861837907
_PI_HI = 3.140625               # 8-mantissa-bit head of pi -> k*_PI_HI exact for |k| < 2**15
_PI_LO = 9.676535897932e-04     # pi - _PI_HI
_S3 = -0.16666666666666666
_S5 = 0.008333333333333333
_S7 = -0.0001984126984126984
_S9 = 2.755731922398589e-06
_S11 = -2.505210838544172e-08


def _sin_bounded(z):
    """sin(z) for |z| <~ 60 (SIREN pre-activation range after omega folding).

    k = nearest int to z/pi (round half away from zero, via int cast), two-step
    Cody-Waite reduction to r in [-pi/2, pi/2], odd degree-11 polynomial,
    (-1)^k sign fix.  Only mul/add/select/int-cast ops -> cheap on the VALU.
    Max error ~1e-7, comparable to a full-range f32 sin.
    """
    a = z * _INV_PI
    half = jnp.where(a >= 0.0, 0.5, -0.5)
    k_i = (a + half).astype(jnp.int32)            # nearest integer
    k = k_i.astype(jnp.float32)
    r = (z - k * _PI_HI) - k * _PI_LO             # r in [-pi/2, pi/2]
    r2 = r * r
    q = ((((_S11 * r2 + _S9) * r2 + _S7) * r2 + _S5) * r2 + _S3)
    s = r + r * (q * r2)
    return jnp.where((k_i & 1) == 1, -s, s)       # (-1)^k * sin(r)


# ------------------------------ Pallas kernel --------------------------------
def siren_kernel(xT_ref, w1_ref, b1_ref, wh_ref, bh_ref, wo_ref, bo_ref, o_ref,
                 *, n_hidden, outermost_linear):
    in_f, _ = xT_ref.shape             # (in_features, tile_m) -- static

    x = xT_ref[...]                    # (in_f, tile)   lane-dense points
    w1 = w1_ref[...]                   # (hid, in_f)    omega-folded

    # First SineLayer: K = in_f is tiny -> VPU broadcast-FMAs, skip the MXU.
    # Bias / weight columns broadcast implicitly (no materialized broadcast_to).
    z = b1_ref[...]                    # (hid, 1)
    for k in range(in_f):
        z = z + w1[:, k:k + 1] * x[k:k + 1, :]    # (hid,1)*(1,tile) -> (hid,tile)
    h = _sin_bounded(z)

    # Hidden SineLayers (static unroll; n_hidden is a compile-time int).
    for l in range(n_hidden):
        zl = jnp.dot(wh_ref[l], h, preferred_element_type=jnp.float32)
        h = _sin_bounded(zl + bh_ref[l])

    # Final layer (a SineLayer when outermost_linear=False).  Kept as its own
    # M=1 MXU matmul: it consumes sin(last hidden z), so it cannot legally be
    # folded into the previous matmul, and the MXU has huge slack here.
    y = jnp.dot(wo_ref[...], h, preferred_element_type=jnp.float32) + bo_ref[...]
    if not outermost_linear:
        y = _sin_bounded(y)

    o_ref[0] = y.astype(o_ref.dtype)   # (out_f, tile) lane-dense store


def _round_up(x, m):
    return ((x + m - 1) // m) * m


def siren_forward(coords, params, *, tile_m=2048):
    """coords: (N, in_features) float32. params: omega-folded, transposed-layout.

    Returns (N, out_features) float32.
    """
    w1f, b1f, whf, bhf, wof, bof = params
    N, in_f = coords.shape
    hid = w1f.shape[0]
    out_f = wof.shape[0]
    n_hidden = whf.shape[0]

    # BlockSpec lane constraint: tile_m must be a multiple of 128.
    tile_m = max(128, _round_up(int(tile_m), 128))
    # Keep >= 2 grid steps when there is enough work so the single "parallel"
    # grid axis can be sharded across v7x's two TensorCores.
    if N > 256:
        tile_m = min(tile_m, _round_up(pl.cdiv(N, 2), 128))

    num_tiles = pl.cdiv(N, tile_m)
    n_pad = num_tiles * tile_m

    # Transposed (features, points) so every activation vreg is lane-dense.
    # Kept host-side: the kernel is heavily VALU-bound, so this is ~1-2%.
    xT = coords.T                                   # (in_f, N)
    if n_pad != N:
        xT = jnp.pad(xT, ((0, 0), (0, n_pad - N)))

    kernel = functools.partial(
        siren_kernel,
        n_hidden=n_hidden,
        outermost_linear=OUTERMOST_LINEAR,
    )

    # Only very large tiles need a raised scoped-VMEM limit (v5e default 16 MiB).
    vmem_limit = 32 * 1024 * 1024 if tile_m >= 8192 else None

    out = pl.pallas_call(
        kernel,
        out_shape=jax.ShapeDtypeStruct((num_tiles, out_f, tile_m), jnp.float32),
        grid_spec=pltpu.PrefetchScalarGridSpec(
            num_scalar_prefetch=0,
            grid=(num_tiles,),
            in_specs=[
                pl.BlockSpec((in_f, tile_m), lambda i: (0, i)),           # coords^T tile
                pl.BlockSpec((hid, in_f), lambda i: (0, 0)),              # W1 (resident)
                pl.BlockSpec((hid, 1), lambda i: (0, 0)),                 # b1
                pl.BlockSpec((n_hidden, hid, hid), lambda i: (0, 0, 0)),  # Wh
                pl.BlockSpec((n_hidden, hid, 1), lambda i: (0, 0, 0)),    # bh
                pl.BlockSpec((out_f, hid), lambda i: (0, 0)),             # Wo
                pl.BlockSpec((out_f, 1), lambda i: (0, 0)),               # bo
            ],
            out_specs=pl.BlockSpec((1, out_f, tile_m), lambda i: (i, 0, 0)),
        ),
        compiler_params=pltpu.CompilerParams(
            dimension_semantics=("parallel",),
            vmem_limit_bytes=vmem_limit),
    )(xT, w1f, b1f, whf, bhf, wof, bof)

    # (num_tiles, out_f, tile_m) -> (n_pad, out_f) -> drop padding.
    out = jnp.transpose(out, (0, 2, 1)).reshape(n_pad, out_f)
    return out[:N]


# ------------------------- deterministic parameter init ----------------------
def init_params(key):
    """Raw PyTorch-style params (W: (out, in), b: (out,)); matching init ranges."""
    ks = jax.random.split(key, 2 + 2 * HIDDEN_LAYERS + 2)
    it = iter(ks)

    def u(k, shape, lim):
        return jax.random.uniform(k, shape, jnp.float32, -lim, lim)

    # First SineLayer: weight U(-1/in, 1/in); bias default U(-1/sqrt(in), 1/sqrt(in)).
    w1 = u(next(it), (HIDDEN_FEATURES, IN_FEATURES), 1.0 / IN_FEATURES)
    b1 = u(next(it), (HIDDEN_FEATURES,), 1.0 / math.sqrt(IN_FEATURES))

    wlim = math.sqrt(6.0 / HIDDEN_FEATURES) / HIDDEN_OMEGA_0
    blim = 1.0 / math.sqrt(HIDDEN_FEATURES)

    wh, bh = [], []
    for _ in range(HIDDEN_LAYERS):
        wh.append(u(next(it), (HIDDEN_FEATURES, HIDDEN_FEATURES), wlim))
        bh.append(u(next(it), (HIDDEN_FEATURES,), blim))
    wh = jnp.stack(wh)                      # (L, hid, hid)
    bh = jnp.stack(bh)                      # (L, hid)

    # Final SineLayer (OUTERMOST_LINEAR = False): same ranges as hidden layers.
    wo = u(next(it), (OUT_FEATURES, HIDDEN_FEATURES), wlim)
    bo = u(next(it), (OUT_FEATURES,), blim)
    return (w1, b1, wh, bh, wo, bo)


def prepare_params(raw):
    """Fold omega_0 into weights/biases and reshape biases to column vectors."""
    w1, b1, wh, bh, wo, bo = raw
    w1f = FIRST_OMEGA_0 * w1                         # (hid, in)
    b1f = (FIRST_OMEGA_0 * b1).reshape(-1, 1)        # (hid, 1)
    whf = HIDDEN_OMEGA_0 * wh                        # (L, hid, hid)
    bhf = (HIDDEN_OMEGA_0 * bh)[..., None]           # (L, hid, 1)
    if OUTERMOST_LINEAR:
        wof, bof = wo, bo.reshape(-1, 1)
    else:
        wof = HIDDEN_OMEGA_0 * wo                    # (out, hid)
        bof = (HIDDEN_OMEGA_0 * bo).reshape(-1, 1)   # (out, 1)
    return (w1f, b1f, whf, bhf, wof, bof)


# --------------------------- pure-JAX references ------------------------------
def siren_ref(coords, raw):
    """Exact PyTorch-module math: sin(omega_0 * (x @ W.T + b)) per layer."""
    w1, b1, wh, bh, wo, bo = raw
    h = jnp.sin(FIRST_OMEGA_0 * (coords @ w1.T + b1))
    for l in range(wh.shape[0]):
        h = jnp.sin(HIDDEN_OMEGA_0 * (h @ wh[l].T + bh[l]))
    y = h @ wo.T + bo
    if not OUTERMOST_LINEAR:
        y = jnp.sin(HIDDEN_OMEGA_0 * y)
    return y


def siren_ref_folded(coords, params):
    """Same omega-folded math as the kernel, in plain JAX (tight check)."""
    w1f, b1f, whf, bhf, wof, bof = params
    h = jnp.sin(coords @ w1f.T + b1f[:, 0])
    for l in range(whf.shape[0]):
        h = jnp.sin(h @ whf[l].T + bhf[l, :, 0])
    y = h @ wof.T + bof[:, 0]
    if not OUTERMOST_LINEAR:
        y = jnp.sin(y)
    return y


# ---------------------------------- main --------------------------------------
if __name__ == "__main__":
    key = jax.random.PRNGKey(0)
    k_coords, k_params = jax.random.split(key)

    # Coordinate batch deliberately NOT a multiple of tile_m so the padding
    # path is exercised; tile_m=1024 -> 4 grid steps (>=2 for v7x megacore).
    N = 4000
    TILE_M = 1024
    coords = jax.random.uniform(k_coords, (N, IN_FEATURES), jnp.float32, -1.0, 1.0)

    raw_params = init_params(k_params)
    params = prepare_params(raw_params)

    out = siren_forward(coords, params, tile_m=TILE_M)
    out = jax.block_until_ready(out)
    assert out.shape == (N, OUT_FEATURES)

    # Tight check vs the identical (omega-folded) math with jnp.sin.
    ref_folded = siren_ref_folded(coords, params)
    assert jnp.allclose(out, ref_folded, atol=1e-3, rtol=1e-3), "mismatch vs folded ref"

    # Semantic check vs the exact PyTorch formulation sin(omega*(Wx+b)).
    ref = siren_ref(coords, raw_params)
    assert jnp.allclose(out, ref, atol=2e-3, rtol=2e-3), "mismatch vs PyTorch-form ref"

    print("KERNEL_OK")
</pallas_src>

<mosaic_0001>
module attributes {stable_mosaic.version = 11 : i64} {
  func.func @siren_kernel(%arg0: i32, %arg1: memref<2x1024xf32, #tpu.memory_space<vmem>>, %arg2: memref<32x2xf32, #tpu.memory_space<vmem>>, %arg3: memref<32x1xf32, #tpu.memory_space<vmem>>, %arg4: memref<2x32x32xf32, #tpu.memory_space<vmem>>, %arg5: memref<2x32x1xf32, #tpu.memory_space<vmem>>, %arg6: memref<1x32xf32, #tpu.memory_space<vmem>>, %arg7: memref<1x1xf32, #tpu.memory_space<vmem>>, %arg8: memref<1x1x1024xf32, #tpu.memory_space<vmem>>) attributes {dimension_semantics = [#tpu.dimension_semantics<parallel>], iteration_bounds = array<i64: 4>, scalar_prefetch = 0 : i64, scratch_operands = 0 : i64, tpu.core_type = #tpu.core_type<tc>, window_params = [{transform_indices = @transform_0, window_bounds = array<i64: 2, 1024>}, {pipeline_mode = #tpu.pipeline_mode<synchronous>, transform_indices = @transform_1, window_bounds = array<i64: 32, 2>}, {pipeline_mode = #tpu.pipeline_mode<synchronous>, transform_indices = @transform_2, window_bounds = array<i64: 32, 1>}, {pipeline_mode = #tpu.pipeline_mode<synchronous>, transform_indices = @transform_3, window_bounds = array<i64: 2, 32, 32>}, {pipeline_mode = #tpu.pipeline_mode<synchronous>, transform_indices = @transform_4, window_bounds = array<i64: 2, 32, 1>}, {pipeline_mode = #tpu.pipeline_mode<synchronous>, transform_indices = @transform_5, window_bounds = array<i64: 1, 32>}, {pipeline_mode = #tpu.pipeline_mode<synchronous>, transform_indices = @transform_6, window_bounds = array<i64: 1, 1>}, {transform_indices = @transform_7, window_bounds = array<i64: 1, 1, 1024>}]} {
    %c0 = arith.constant 0 : index
    %c0_0 = arith.constant 0 : index
    %0 = vector.load %arg1[%c0, %c0_0] : memref<2x1024xf32, #tpu.memory_space<vmem>>, vector<2x1024xf32>
    %c0_1 = arith.constant 0 : index
    %c0_2 = arith.constant 0 : index
    %1 = vector.load %arg2[%c0_1, %c0_2] : memref<32x2xf32, #tpu.memory_space<vmem>>, vector<32x2xf32>
    %c0_3 = arith.constant 0 : index
    %c0_4 = arith.constant 0 : index
    %2 = vector.load %arg3[%c0_3, %c0_4] : memref<32x1xf32, #tpu.memory_space<vmem>>, vector<32x1xf32>
    %3 = vector.extract_strided_slice %1 {offsets = [0, 0], sizes = [32, 1], strides = [1, 1]} : vector<32x2xf32> to vector<32x1xf32>
    %4 = vector.extract_strided_slice %0 {offsets = [0, 0], sizes = [1, 1024], strides = [1, 1]} : vector<2x1024xf32> to vector<1x1024xf32>
    %5 = vector.broadcast %3 : vector<32x1xf32> to vector<32x1024xf32>
    %6 = vector.broadcast %4 : vector<1x1024xf32> to vector<32x1024xf32>
    %7 = arith.mulf %5, %6 : vector<32x1024xf32>
    %8 = vector.broadcast %2 : vector<32x1xf32> to vector<32x1024xf32>
    %9 = arith.addf %8, %7 : vector<32x1024xf32>
    %10 = vector.extract_strided_slice %1 {offsets = [0, 1], sizes = [32, 1], strides = [1, 1]} : vector<32x2xf32> to vector<32x1xf32>
    %11 = vector.extract_strided_slice %0 {offsets = [1, 0], sizes = [1, 1024], strides = [1, 1]} : vector<2x1024xf32> to vector<1x1024xf32>
    %12 = vector.broadcast %10 : vector<32x1xf32> to vector<32x1024xf32>
    %13 = vector.broadcast %11 : vector<1x1024xf32> to vector<32x1024xf32>
    %14 = arith.mulf %12, %13 : vector<32x1024xf32>
    %15 = arith.addf %9, %14 : vector<32x1024xf32>
    %cst = arith.constant 0.318309873 : f32
    %16 = vector.broadcast %cst : f32 to vector<32x1024xf32>
    %17 = arith.mulf %15, %16 : vector<32x1024xf32>
    %cst_5 = arith.constant 0.000000e+00 : f32
    %18 = vector.broadcast %cst_5 : f32 to vector<32x1024xf32>
    %19 = arith.cmpf oge, %17, %18 : vector<32x1024xf32>
    %cst_6 = arith.constant 5.000000e-01 : f32
    %cst_7 = arith.constant -5.000000e-01 : f32
    %20 = vector.broadcast %cst_6 : f32 to vector<32x1024xf32>
    %21 = vector.broadcast %cst_7 : f32 to vector<32x1024xf32>
    %22 = arith.select %19, %20, %21 : vector<32x1024xi1>, vector<32x1024xf32>
    %23 = arith.addf %17, %22 : vector<32x1024xf32>
    %24 = arith.fptosi %23 : vector<32x1024xf32> to vector<32x1024xi32>
    %25 = arith.sitofp %24 : vector<32x1024xi32> to vector<32x1024xf32>
    %cst_8 = arith.constant 3.140625 : f32
    %26 = vector.broadcast %cst_8 : f32 to vector<32x1024xf32>
    %27 = arith.mulf %25, %26 : vector<32x1024xf32>
    %28 = arith.subf %15, %27 : vector<32x1024xf32>
    %cst_9 = arith.constant 9.67653584E-4 : f32
    %29 = vector.broadcast %cst_9 : f32 to vector<32x1024xf32>
    %30 = arith.mulf %25, %29 : vector<32x1024xf32>
    %31 = arith.subf %28, %30 : vector<32x1024xf32>
    %32 = arith.mulf %31, %31 : vector<32x1024xf32>
    %cst_10 = arith.constant -2.50521079E-8 : f32
    %33 = vector.broadcast %cst_10 : f32 to vector<32x1024xf32>
    %34 = arith.mulf %33, %32 : vector<32x1024xf32>
    %cst_11 = arith.constant 2.75573188E-6 : f32
    %35 = vector.broadcast %cst_11 : f32 to vector<32x1024xf32>
    %36 = arith.addf %34, %35 : vector<32x1024xf32>
    %37 = arith.mulf %36, %32 : vector<32x1024xf32>
    %cst_12 = arith.constant -1.98412701E-4 : f32
    %38 = vector.broadcast %cst_12 : f32 to vector<32x1024xf32>
    %39 = arith.addf %37, %38 : vector<32x1024xf32>
    %40 = arith.mulf %39, %32 : vector<32x1024xf32>
    %cst_13 = arith.constant 0.00833333377 : f32
    %41 = vector.broadcast %cst_13 : f32 to vector<32x1024xf32>
    %42 = arith.addf %40, %41 : vector<32x1024xf32>
    %43 = arith.mulf %42, %32 : vector<32x1024xf32>
    %cst_14 = arith.constant -0.166666672 : f32
    %44 = vector.broadcast %cst_14 : f32 to vector<32x1024xf32>
    %45 = arith.addf %43, %44 : vector<32x1024xf32>
    %46 = arith.mulf %45, %32 : vector<32x1024xf32>
    %47 = arith.mulf %31, %46 : vector<32x1024xf32>
    %48 = arith.addf %31, %47 : vector<32x1024xf32>
    %c1_i32 = arith.constant 1 : i32
    %49 = vector.broadcast %c1_i32 : i32 to vector<32x1024xi32>
    %50 = arith.andi %24, %49 : vector<32x1024xi32>
    %c1_i32_15 = arith.constant 1 : i32
    %51 = vector.broadcast %c1_i32_15 : i32 to vector<32x1024xi32>
    %52 = arith.cmpi eq, %50, %51 : vector<32x1024xi32>
    %cst_16 = arith.constant 0.000000e+00 : f32
    %53 = vector.broadcast %cst_16 : f32 to vector<32x1024xf32>
    %54 = arith.subf %53, %48 : vector<32x1024xf32>
    %55 = arith.select %52, %54, %48 : vector<32x1024xi1>, vector<32x1024xf32>
    %c0_17 = arith.constant 0 : index
    %c0_18 = arith.constant 0 : index
    %c0_19 = arith.constant 0 : index
    %56 = vector.load %arg4[%c0_17, %c0_18, %c0_19] : memref<2x32x32xf32, #tpu.memory_space<vmem>>, vector<1x32x32xf32>
    %57 = vector.shape_cast %56 : vector<1x32x32xf32> to vector<32x32xf32>
    %cst_20 = arith.constant dense<0.000000e+00> : vector<32x1024xf32>
    %58 = tpu.matmul %57, %55, %cst_20 {dimension_numbers = #tpu.dot_dimension_numbers<[1], [0], [0], [1], [0, 0, 1, 1], [], []>} : vector<32x32xf32>, vector<32x1024xf32>, vector<32x1024xf32> -> vector<32x1024xf32>
    %c0_21 = arith.constant 0 : index
    %c0_22 = arith.constant 0 : index
    %c0_23 = arith.constant 0 : index
    %59 = vector.load %arg5[%c0_21, %c0_22, %c0_23] : memref<2x32x1xf32, #tpu.memory_space<vmem>>, vector<1x32x1xf32>
    %60 = vector.shape_cast %59 : vector<1x32x1xf32> to vector<32x1xf32>
    %61 = vector.broadcast %60 : vector<32x1xf32> to vector<32x1024xf32>
    %62 = arith.addf %58, %61 : vector<32x1024xf32>
    %cst_24 = arith.constant 0.318309873 : f32
    %63 = vector.broadcast %cst_24 : f32 to vector<32x1024xf32>
    %64 = arith.mulf %62, %63 : vector<32x1024xf32>
    %cst_25 = arith.constant 0.000000e+00 : f32
    %65 = vector.broadcast %cst_25 : f32 to vector<32x1024xf32>
    %66 = arith.cmpf oge, %64, %65 : vector<32x1024xf32>
    %cst_26 = arith.constant 5.000000e-01 : f32
    %cst_27 = arith.constant -5.000000e-01 : f32
    %67 = vector.broadcast %cst_26 : f32 to vector<32x1024xf32>
    %68 = vector.broadcast %cst_27 : f32 to vector<32x1024xf32>
    %69 = arith.select %66, %67, %68 : vector<32x1024xi1>, vector<32x1024xf32>
    %70 = arith.addf %64, %69 : vector<32x1024xf32>
    %71 = arith.fptosi %70 : vector<32x1024xf32> to vector<32x1024xi32>
    %72 = arith.sitofp %71 : vector<32x1024xi32> to vector<32x1024xf32>
    %cst_28 = arith.constant 3.140625 : f32
    %73 = vector.broadcast %cst_28 : f32 to vector<32x1024xf32>
    %74 = arith.mulf %72, %73 : vector<32x1024xf32>
    %75 = arith.subf %62, %74 : vector<32x1024xf32>
    %cst_29 = arith.constant 9.67653584E-4 : f32
    %76 = vector.broadcast %cst_29 : f32 to vector<32x1024xf32>
    %77 = arith.mulf %72, %76 : vector<32x1024xf32>
    %78 = arith.subf %75, %77 : vector<32x1024xf32>
    %79 = arith.mulf %78, %78 : vector<32x1024xf32>
    %cst_30 = arith.constant -2.50521079E-8 : f32
    %80 = vector.broadcast %cst_30 : f32 to vector<32x1024xf32>
    %81 = arith.mulf %80, %79 : vector<32x1024xf32>
    %cst_31 = arith.constant 2.75573188E-6 : f32
    %82 = vector.broadcast %cst_31 : f32 to vector<32x1024xf32>
    %83 = arith.addf %81, %82 : vector<32x1024xf32>
    %84 = arith.mulf %83, %79 : vector<32x1024xf32>
    %cst_32 = arith.constant -1.98412701E-4 : f32
    %85 = vector.broadcast %cst_32 : f32 to vector<32x1024xf32>
    %86 = arith.addf %84, %85 : vector<32x1024xf32>
    %87 = arith.mulf %86, %79 : vector<32x1024xf32>
    %cst_33 = arith.constant 0.00833333377 : f32
    %88 = vector.broadcast %cst_33 : f32 to vector<32x1024xf32>
    %89 = arith.addf %87, %88 : vector<32x1024xf32>
    %90 = arith.mulf %89, %79 : vector<32x1024xf32>
    %cst_34 = arith.constant -0.166666672 : f32
    %91 = vector.broadcast %cst_34 : f32 to vector<32x1024xf32>
    %92 = arith.addf %90, %91 : vector<32x1024xf32>
    %93 = arith.mulf %92, %79 : vector<32x1024xf32>
    %94 = arith.mulf %78, %93 : vector<32x1024xf32>
    %95 = arith.addf %78, %94 : vector<32x1024xf32>
    %c1_i32_35 = arith.constant 1 : i32
    %96 = vector.broadcast %c1_i32_35 : i32 to vector<32x1024xi32>
    %97 = arith.andi %71, %96 : vector<32x1024xi32>
    %c1_i32_36 = arith.constant 1 : i32
    %98 = vector.broadcast %c1_i32_36 : i32 to vector<32x1024xi32>
    %99 = arith.cmpi eq, %97, %98 : vector<32x1024xi32>
    %cst_37 = arith.constant 0.000000e+00 : f32
    %100 = vector.broadcast %cst_37 : f32 to vector<32x1024xf32>
    %101 = arith.subf %100, %95 : vector<32x1024xf32>
    %102 = arith.select %99, %101, %95 : vector<32x1024xi1>, vector<32x1024xf32>
    %c1 = arith.constant 1 : index
    %c0_38 = arith.constant 0 : index
    %c0_39 = arith.constant 0 : index
    %103 = vector.load %arg4[%c1, %c0_38, %c0_39] : memref<2x32x32xf32, #tpu.memory_space<vmem>>, vector<1x32x32xf32>
    %104 = vector.shape_cast %103 : vector<1x32x32xf32> to vector<32x32xf32>
    %cst_40 = arith.constant dense<0.000000e+00> : vector<32x1024xf32>
    %105 = tpu.matmul %104, %102, %cst_40 {dimension_numbers = #tpu.dot_dimension_numbers<[1], [0], [0], [1], [0, 0, 1, 1], [], []>} : vector<32x32xf32>, vector<32x1024xf32>, vector<32x1024xf32> -> vector<32x1024xf32>
    %c1_41 = arith.constant 1 : index
    %c0_42 = arith.constant 0 : index
    %c0_43 = arith.constant 0 : index
    %106 = vector.load %arg5[%c1_41, %c0_42, %c0_43] : memref<2x32x1xf32, #tpu.memory_space<vmem>>, vector<1x32x1xf32>
    %107 = vector.shape_cast %106 : vector<1x32x1xf32> to vector<32x1xf32>
    %108 = vector.broadcast %107 : vector<32x1xf32> to vector<32x1024xf32>
    %109 = arith.addf %105, %108 : vector<32x1024xf32>
    %cst_44 = arith.constant 0.318309873 : f32
    %110 = vector.broadcast %cst_44 : f32 to vector<32x1024xf32>
    %111 = arith.mulf %109, %110 : vector<32x1024xf32>
    %cst_45 = arith.constant 0.000000e+00 : f32
    %112 = vector.broadcast %cst_45 : f32 to vector<32x1024xf32>
    %113 = arith.cmpf oge, %111, %112 : vector<32x1024xf32>
    %cst_46 = arith.constant 5.000000e-01 : f32
    %cst_47 = arith.constant -5.000000e-01 : f32
    %114 = vector.broadcast %cst_46 : f32 to vector<32x1024xf32>
    %115 = vector.broadcast %cst_47 : f32 to vector<32x1024xf32>
    %116 = arith.select %113, %114, %115 : vector<32x1024xi1>, vector<32x1024xf32>
    %117 = arith.addf %111, %116 : vector<32x1024xf32>
    %118 = arith.fptosi %117 : vector<32x1024xf32> to vector<32x1024xi32>
    %119 = arith.sitofp %118 : vector<32x1024xi32> to vector<32x1024xf32>
    %cst_48 = arith.constant 3.140625 : f32
    %120 = vector.broadcast %cst_48 : f32 to vector<32x1024xf32>
    %121 = arith.mulf %119, %120 : vector<32x1024xf32>
    %122 = arith.subf %109, %121 : vector<32x1024xf32>
    %cst_49 = arith.constant 9.67653584E-4 : f32
    %123 = vector.broadcast %cst_49 : f32 to vector<32x1024xf32>
    %124 = arith.mulf %119, %123 : vector<32x1024xf32>
    %125 = arith.subf %122, %124 : vector<32x1024xf32>
    %126 = arith.mulf %125, %125 : vector<32x1024xf32>
    %cst_50 = arith.constant -2.50521079E-8 : f32
    %127 = vector.broadcast %cst_50 : f32 to vector<32x1024xf32>
    %128 = arith.mulf %127, %126 : vector<32x1024xf32>
    %cst_51 = arith.constant 2.75573188E-6 : f32
    %129 = vector.broadcast %cst_51 : f32 to vector<32x1024xf32>
    %130 = arith.addf %128, %129 : vector<32x1024xf32>
    %131 = arith.mulf %130, %126 : vector<32x1024xf32>
    %cst_52 = arith.constant -1.98412701E-4 : f32
    %132 = vector.broadcast %cst_52 : f32 to vector<32x1024xf32>
    %133 = arith.addf %131, %132 : vector<32x1024xf32>
    %134 = arith.mulf %133, %126 : vector<32x1024xf32>
    %cst_53 = arith.constant 0.00833333377 : f32
    %135 = vector.broadcast %cst_53 : f32 to vector<32x1024xf32>
    %136 = arith.addf %134, %135 : vector<32x1024xf32>
    %137 = arith.mulf %136, %126 : vector<32x1024xf32>
    %cst_54 = arith.constant -0.166666672 : f32
    %138 = vector.broadcast %cst_54 : f32 to vector<32x1024xf32>
    %139 = arith.addf %137, %138 : vector<32x1024xf32>
    %140 = arith.mulf %139, %126 : vector<32x1024xf32>
    %141 = arith.mulf %125, %140 : vector<32x1024xf32>
    %142 = arith.addf %125, %141 : vector<32x1024xf32>
    %c1_i32_55 = arith.constant 1 : i32
    %143 = vector.broadcast %c1_i32_55 : i32 to vector<32x1024xi32>
    %144 = arith.andi %118, %143 : vector<32x1024xi32>
    %c1_i32_56 = arith.constant 1 : i32
    %145 = vector.broadcast %c1_i32_56 : i32 to vector<32x1024xi32>
    %146 = arith.cmpi eq, %144, %145 : vector<32x1024xi32>
    %cst_57 = arith.constant 0.000000e+00 : f32
    %147 = vector.broadcast %cst_57 : f32 to vector<32x1024xf32>
    %148 = arith.subf %147, %142 : vector<32x1024xf32>
    %149 = arith.select %146, %148, %142 : vector<32x1024xi1>, vector<32x1024xf32>
    %c0_58 = arith.constant 0 : index
    %c0_59 = arith.constant 0 : index
    %150 = vector.load %arg6[%c0_58, %c0_59] : memref<1x32xf32, #tpu.memory_space<vmem>>, vector<1x32xf32>
    %cst_60 = arith.constant dense<0.000000e+00> : vector<1x1024xf32>
    %151 = tpu.matmul %150, %149, %cst_60 {dimension_numbers = #tpu.dot_dimension_numbers<[1], [0], [0], [1], [0, 0, 1, 1], [], []>} : vector<1x32xf32>, vector<32x1024xf32>, vector<1x1024xf32> -> vector<1x1024xf32>
    %c0_61 = arith.constant 0 : index
    %c0_62 = arith.constant 0 : index
    %152 = vector.load %arg7[%c0_61, %c0_62] : memref<1x1xf32, #tpu.memory_space<vmem>>, vector<1x1xf32>
    %153 = vector.broadcast %152 : vector<1x1xf32> to vector<1x1024xf32>
    %154 = arith.addf %151, %153 : vector<1x1024xf32>
    %cst_63 = arith.constant 0.318309873 : f32
    %155 = vector.broadcast %cst_63 : f32 to vector<1x1024xf32>
    %156 = arith.mulf %154, %155 : vector<1x1024xf32>
    %cst_64 = arith.constant 0.000000e+00 : f32
    %157 = vector.broadcast %cst_64 : f32 to vector<1x1024xf32>
    %158 = arith.cmpf oge, %156, %157 : vector<1x1024xf32>
    %cst_65 = arith.constant 5.000000e-01 : f32
    %cst_66 = arith.constant -5.000000e-01 : f32
    %159 = vector.broadcast %cst_65 : f32 to vector<1x1024xf32>
    %160 = vector.broadcast %cst_66 : f32 to vector<1x1024xf32>
    %161 = arith.select %158, %159, %160 : vector<1x1024xi1>, vector<1x1024xf32>
    %162 = arith.addf %156, %161 : vector<1x1024xf32>
    %163 = arith.fptosi %162 : vector<1x1024xf32> to vector<1x1024xi32>
    %164 = arith.sitofp %163 : vector<1x1024xi32> to vector<1x1024xf32>
    %cst_67 = arith.constant 3.140625 : f32
    %165 = vector.broadcast %cst_67 : f32 to vector<1x1024xf32>
    %166 = arith.mulf %164, %165 : vector<1x1024xf32>
    %167 = arith.subf %154, %166 : vector<1x1024xf32>
    %cst_68 = arith.constant 9.67653584E-4 : f32
    %168 = vector.broadcast %cst_68 : f32 to vector<1x1024xf32>
    %169 = arith.mulf %164, %168 : vector<1x1024xf32>
    %170 = arith.subf %167, %169 : vector<1x1024xf32>
    %171 = arith.mulf %170, %170 : vector<1x1024xf32>
    %cst_69 = arith.constant -2.50521079E-8 : f32
    %172 = vector.broadcast %cst_69 : f32 to vector<1x1024xf32>
    %173 = arith.mulf %172, %171 : vector<1x1024xf32>
    %cst_70 = arith.constant 2.75573188E-6 : f32
    %174 = vector.broadcast %cst_70 : f32 to vector<1x1024xf32>
    %175 = arith.addf %173, %174 : vector<1x1024xf32>
    %176 = arith.mulf %175, %171 : vector<1x1024xf32>
    %cst_71 = arith.constant -1.98412701E-4 : f32
    %177 = vector.broadcast %cst_71 : f32 to vector<1x1024xf32>
    %178 = arith.addf %176, %177 : vector<1x1024xf32>
    %179 = arith.mulf %178, %171 : vector<1x1024xf32>
    %cst_72 = arith.constant 0.00833333377 : f32
    %180 = vector.broadcast %cst_72 : f32 to vector<1x1024xf32>
    %181 = arith.addf %179, %180 : vector<1x1024xf32>
    %182 = arith.mulf %181, %171 : vector<1x1024xf32>
    %cst_73 = arith.constant -0.166666672 : f32
    %183 = vector.broadcast %cst_73 : f32 to vector<1x1024xf32>
    %184 = arith.addf %182, %183 : vector<1x1024xf32>
    %185 = arith.mulf %184, %171 : vector<1x1024xf32>
    %186 = arith.mulf %170, %185 : vector<1x1024xf32>
    %187 = arith.addf %170, %186 : vector<1x1024xf32>
    %c1_i32_74 = arith.constant 1 : i32
    %188 = vector.broadcast %c1_i32_74 : i32 to vector<1x1024xi32>
    %189 = arith.andi %163, %188 : vector<1x1024xi32>
    %c1_i32_75 = arith.constant 1 : i32
    %190 = vector.broadcast %c1_i32_75 : i32 to vector<1x1024xi32>
    %191 = arith.cmpi eq, %189, %190 : vector<1x1024xi32>
    %cst_76 = arith.constant 0.000000e+00 : f32
    %192 = vector.broadcast %cst_76 : f32 to vector<1x1024xf32>
    %193 = arith.subf %192, %187 : vector<1x1024xf32>
    %194 = arith.select %191, %193, %187 : vector<1x1024xi1>, vector<1x1024xf32>
    %c0_77 = arith.constant 0 : index
    %c0_78 = arith.constant 0 : index
    %c0_79 = arith.constant 0 : index
    %195 = vector.load %arg8[%c0_77, %c0_78, %c0_79] : memref<1x1x1024xf32, #tpu.memory_space<vmem>>, vector<1x1x1024xf32>
    %196 = vector.shape_cast %195 : vector<1x1x1024xf32> to vector<1x1024xf32>
    %197 = vector.shape_cast %194 : vector<1x1024xf32> to vector<1x1x1024xf32>
    tpu.vector_store %arg8[%c0_77, %c0_78, %c0_79], %197 {strides = array<i32>} : memref<1x1x1024xf32, #tpu.memory_space<vmem>>, vector<1x1x1024xf32>,
    return
  }
  func.func @transform_0(%arg0: i32) -> (i32, i32) {
    %c0_i32 = arith.constant 0 : i32
    %c0_i32_0 = arith.constant 0 : i32
    return %c0_i32, %arg0 : i32, i32
  }
  func.func @transform_1(%arg0: i32) -> (i32, i32) {
    %c0_i32 = arith.constant 0 : i32
    %c0_i32_0 = arith.constant 0 : i32
    %c0_i32_1 = arith.constant 0 : i32
    return %c0_i32, %c0_i32_0 : i32, i32
  }
  func.func @transform_2(%arg0: i32) -> (i32, i32) {
    %c0_i32 = arith.constant 0 : i32
    %c0_i32_0 = arith.constant 0 : i32
    %c0_i32_1 = arith.constant 0 : i32
    return %c0_i32, %c0_i32_0 : i32, i32
  }
  func.func @transform_3(%arg0: i32) -> (i32, i32, i32) {
    %c0_i32 = arith.constant 0 : i32
    %c0_i32_0 = arith.constant 0 : i32
    %c0_i32_1 = arith.constant 0 : i32
    %c0_i32_2 = arith.constant 0 : i32
    return %c0_i32, %c0_i32_0, %c0_i32_1 : i32, i32, i32
  }
  func.func @transform_4(%arg0: i32) -> (i32, i32, i32) {
    %c0_i32 = arith.constant 0 : i32
    %c0_i32_0 = arith.constant 0 : i32
    %c0_i32_1 = arith.constant 0 : i32
    %c0_i32_2 = arith.constant 0 : i32
    return %c0_i32, %c0_i32_0, %c0_i32_1 : i32, i32, i32
  }
  func.func @transform_5(%arg0: i32) -> (i32, i32) {
    %c0_i32 = arith.constant 0 : i32
    %c0_i32_0 = arith.constant 0 : i32
    %c0_i32_1 = arith.constant 0 : i32
    return %c0_i32, %c0_i32_0 : i32, i32
  }
  func.func @transform_6(%arg0: i32) -> (i32, i32) {
    %c0_i32 = arith.constant 0 : i32
    %c0_i32_0 = arith.constant 0 : i32
    %c0_i32_1 = arith.constant 0 : i32
    return %c0_i32, %c0_i32_0 : i32, i32
  }
  func.func @transform_7(%arg0: i32) -> (i32, i32, i32) {
    %c0_i32 = arith.constant 0 : i32
    %c0_i32_0 = arith.constant 0 : i32
    %c0_i32_1 = arith.constant 0 : i32
    return %arg0, %c0_i32, %c0_i32_0 : i32, i32, i32
  }
}

</mosaic_0001>

<bundles_post_ra>
// kernel: tpu_custom_call.1
= control target key start
LH: loop header
LB: loop body
LE: loop exit
PB: predicated region body
PF: predicated region fallthrough
CT: control target
= control target key end

     0   :  { %s8274_s0 = inlined_call_operand.vmem [shape: f32[2,4096], index: 0, kind: input, shape index: {}]   ;;  %s8275_s1 = inlined_call_operand.vmem [shape: f32[32,2], index: 1, kind: input, shape index: {}]   ;;  %s8276_s2 = inlined_call_operand.vmem [shape: f32[32,1], index: 2, kind: input, shape index: {}]   ;;  %s8277_s3 = inlined_call_operand.vmem [shape: f32[2,32,32], index: 3, kind: input, shape index: {}]   ;;  %s8278_s4 = inlined_call_operand.vmem [shape: f32[2,32,1], index: 4, kind: input, shape index: {}]   ;;  %s8279_s5 = inlined_call_operand.vmem [shape: f32[1,32], index: 5, kind: input, shape index: {}]   ;;  %s8280_s6 = inlined_call_operand.<no memory space> [shape: f32[1,1], index: 6, kind: input, shape index: {}]   ;;  %s8281_s7 = inlined_call_operand.hbm [shape: f32[4,1,1024], index: 7, kind: output, shape index: {}]  }
   0x1   :  { %v12_v0 = vstv %s8280_s6 }
   0x2   :  { %13 = vst [vmem:[#allocation2] sm:$0x1] %v12_v0 }
   0x3   :  { %14 = vsyncpa [#allocation4], 0 }
   0x4   :  { %16 = vsyncpa [#allocation4 + $0x1], 0  ;;  %s4826_s26 = smov 0   ;;  %s4828_s27 = smov 0  }
   0x5   :  { %s4830_s28 = smov 0   ;;  %s4832_s29 = smov 0  }
   0x6 LB: > { %s4052_s6 = sadd.s32 4294967295, %s4778_s29   ;;  %s4053_s30 = sadd.s32 4294967294, %s4778_s29   ;;  %s4778_s29 = sphi %s4832_s29, %s8739_s29   ;;  %s4774_s28 = sphi %s4830_s28, %s8738_s28   ;;  %s4770_s27 = sphi %s4828_s27, %s8737_s27   ;;  %s4766_s26 = sphi %s4826_s26, %s8736_s26  }
   0x7   : > { %s4849_s8 = sadd.s32 1, %s4778_s29   ;;  %s181_s9 = sadd.s32 1, %s4774_s28 }
   0x8   : > { %s178_s10 = ssub.s32 %s4778_s29, %s4849_s8  ;;  %p191_p0 = scmp.ne.s32.totalorder %s4774_s28, %s4770_s27 }
   0x9   : > { %p179_p1 = scmp.eq.s32.totalorder %s178_s10, 0  ;;  %p192_p2 = scmp.eq.s32.totalorder %s4052_s6, 3 }
   0xa   : > { %p197_p3 = scmp.ne.s32.totalorder %s4770_s27, %s4766_s26  ;;  %p198_p4 = scmp.eq.s32.totalorder %s4053_s30, 3 }
   0xb   : > { %s4861_s11 = scalar_select %p179_p1, %s4774_s28, %s181_s9  }
   0xc   : > { %p4863_p5 = por %p192_p2, %p191_p0  ;;  %p4867_p6 = por %p198_p4, %p197_p3 }
   0xd   : > { %p4056_p7 = scmp.ge.s32.totalorder %s4778_s29, 1  ;;  %p243_p8 = scmp.lt.s32.totalorder %s4778_s29, 5 }
   0xf   : > { %p244_p9 = pnand %p4056_p7, %p243_p8 }
  0x11   : > { %247 = sbr.rel (%p244_p9) target bundleno = 1298 (0x512), region = 48 }
  0x16   : > { %v290_v1 = vld [vmem:[%s8276_s2 + $0x18] sm:$0xff]  ;;  %v284_v3 = vld [vmem:[%s8275_s1 + $0x8] sm:$0xff]  ;;  %v4780_v4 = vmov 0   ;;  %v285_v5 = vld [vmem:[%s8275_s1 + $0x10] sm:$0xff]  ;;  %v4781_v7 = vmov 1   ;;  %s4908_s21 = sshll.u32 %s4052_s6, 3 }
  0x17   : > { %v286_v2 = vld [vmem:[%s8275_s1 + $0x18] sm:$0xff]  ;;  %4709 = vset.pattern.permute.xlu2 %v4780_v4  ;;  %4707 = vset.pattern.permute.xlu1 %v4780_v4  ;;  %v289_v6 = vld [vmem:[%s8276_s2 + $0x10] sm:$0xff]  ;;  %v288_v8 = vld [vmem:[%s8276_s2 + $0x8] sm:$0xff]  ;;  %p276_p10 = scmp.lt.s32.totalorder %s4908_s21, 31  ;;  %s272_s6 = sand.u32 1, %s4770_s27  }
  0x18   : > { %4706 = vset.pattern.permute.xlu0 %v4780_v4  ;;  %386 = vperm.xlu1 %4707, %v290_v1   ;;  %v283_v9 = vld [vmem:[%s8275_s1] sm:$0xff]  ;;  %v1363_v11 = vld [vmem:[%s8278_s4 + $0x10] sm:$0xff]  ;;  %v4099_v12 = vld [vmem:[%s8278_s4 + $0x38] sm:$0xff]  ;;  %v8294_v1 = vmov -0.5   ;;  %s8234_s9 = sshll.u32 %s272_s6, 3  ;;  %s3989_s15 = scalar_lea.hbm %s8281_s7, %s4908_s21 }
  0x19   : > { %308 = vperm.xlu0 %4706, %v286_v2   ;;  %298 = vperm.xlu2 %4709, %v284_v3   ;;  %v287_v10 = vld [vmem:[%s8276_s2] sm:$0xff]  ;;  %v4097_v13 = vld [vmem:[%s8278_s4 + $0x28] sm:$0xff]  ;;  %s277_s22 = scalar_select %p276_p10, %s4908_s21, 31 }
  0x1a   : > { %s274_s16 = scalar_lea.vmem [#allocation3], %s8234_s9  ;;  %s3993_s18 = sshll.u32 %s3989_s15, 4  ;;  %s3994_s18 = int_to_ptr.hbm [resolvable:$true] %s3993_s18 }
  0x1b   : > { %s4059_s23 = sshll.u32 %s277_s22, 1  ;;  %s3991_s17 = sshll.u32 %s274_s16, 4  ;;  %s3992_s17 = int_to_ptr.vmem [resolvable:$true] %s3991_s17 }
  0x1c   : > { %s4915_s30 = scalar_lea.vmem %s8274_s0, %s4059_s23  ;;  %s3979_s21 = scalar_lea.sflag [#allocation4], %s272_s6 }
  0x1d   : > { %v281_v14 = vld [vmem:[%s4915_s30] sm:$0xff]  ;;  %s4730_s19 = sshra.s32 %s3994_s18, 4  ;;  %s4736_s24 = scalar_lea.hbm %s8281_s7, 32  ;;  %s4731_s19 = int_to_ptr.hbm [resolvable:$true] %s4730_s19 }
  0x1e   : > { %v313_v15 = vperm.slane %v281_v14, 0  ;;  %v314_v16 = vperm.slane %v281_v14, 2  ;;  %v315_v17 = vperm.slane %v281_v14, 4  ;;  %v316_v18 = vperm.slane %v281_v14, 6  ;;  %s4732_s20 = scalar_lea.hbm %s4731_s19, 8  ;;  %p4737_p0 = scmp.lt.s32.totalorder %s4731_s19, %s8281_s7 }
  0x1f   : > { %v437_v25 = vperm.slane %v281_v14, 1  ;;  %v438_v26 = vperm.slane %v281_v14, 3  ;;  %v439_v27 = vperm.slane %v281_v14, 5  ;;  %v440_v28 = vperm.slane %v281_v14, 7  ;;  %p4733_p11 = scmp.ne.s32.totalorder %s4731_s19, %s4732_s20  ;;  %p4738_p1 = scmp.lt.s32.totalorder %s4736_s24, %s4732_s20 }
  0x20   : > { %4708 = vset.pattern.permute.xlu1 %v4781_v7  ;;  %v4922_v21 = vperm.slane %v313_v15, 0  ;;  %v4924_v22 = vperm.slane %v314_v16, 0  ;;  %v4926_v23 = vperm.slane %v315_v17, 0  ;;  %v4928_v24 = vperm.slane %v316_v18, 0 }
  0x21   : > { %303 = vperm.xlu0 %4706, %v285_v5   ;;  %381 = vperm.xlu2 %4709, %v289_v6   ;;  %v4940_v34 = vperm.slane %v437_v25, 1  ;;  %v4942_v35 = vperm.slane %v438_v26, 1  ;;  %v4944_v36 = vperm.slane %v439_v27, 1  ;;  %v4946_v37 = vperm.slane %v440_v28, 1  ;;  %p4734_p12 = pnand %p4733_p11, %p4863_p5  ;;  %p4739_p2 = por %p4738_p1, %p4737_p0 }
  0x22   : > { %434 = vperm.xlu1 %4708, %v286_v2  }
  0x23   : > { %p4735_p13 = pneg %p4734_p12 }
  0x25   : > { %p4740_p3 = pnand %p4739_p2, %p4735_p13 }
  0x29   : > { %4710 = vset.pattern.permute.xlu0 %v4781_v7  ;;  %376 = vperm.xlu2 %4709, %v288_v8  }
  0x2a   : > { %4711 = vset.pattern.permute.xlu1 %v4780_v4  ;;  %430 = vperm.xlu0 %4710, %v285_v5  }
  0x2b   : > { %293 = vperm.xlu1 %4711, %v283_v9  }
  0x31   : > { %371 = vperm.xlu2 %4709, %v287_v10  }
  0x32   : > { %422 = vperm.xlu0 %4710, %v283_v9  }
  0x33   : > { %4712 = vset.pattern.permute.xlu1 %v4781_v7 }
  0x34   : > { %426 = vperm.xlu1 %4712, %v284_v3  }
  0x39   : > { %1377 = vperm.xlu2 %4709, %v1363_v11  }
  0x3a   : > { %4714 = vset.pattern.permute.xlu0 %v4780_v4 }
  0x3c   : > { %4713 = vset.pattern.permute.xlu1 %v4780_v4 }
  0x41   : > { %2489 = vperm.xlu2 %4709, %v4099_v12  }
  0x49   : > { %2479 = vperm.xlu2 %4709, %v4097_v13  }
  0x73   : > { %v4930_v29 = vpop.permute.xlu2 %298 }
  0x74   : > { %v345_v11 = vmul.f32 %v4922_v21, %v4930_v29  ;;  %v346_v12 = vmul.f32 %v4924_v22, %v4930_v29 }
  0x7b   : > { %v4978_v55 = vpop.permute.xlu2 %381 }
  0x8a   : > { %v4918_v19 = vpop.permute.xlu1 %386 }
  0x8b   : > { %v4920_v20 = vpop.permute.xlu0 %308 }
  0x8c   : > { %v361_v30 = vmul.f32 %v4922_v21, %v4920_v20  ;;  %v362_v31 = vmul.f32 %v4924_v22, %v4920_v20  ;;  %v363_v32 = vmul.f32 %v4926_v23, %v4920_v20  ;;  %v364_v33 = vmul.f32 %v4928_v24, %v4920_v20 }
  0x8e   : > { %v413_v40 = vadd.f32 %v4918_v19, %v361_v30  ;;  %v414_v41 = vadd.f32 %v4918_v19, %v362_v31  ;;  %v415_v42 = vadd.f32 %v4918_v19, %v363_v32  ;;  %v416_v43 = vadd.f32 %v4918_v19, %v364_v33 }
  0x93   : > { %v4948_v38 = vpop.permute.xlu0 %303 }
  0x94   : > { %v4950_v39 = vpop.permute.xlu1 %434  ;;  %v353_v48 = vmul.f32 %v4922_v21, %v4948_v38  ;;  %v354_v49 = vmul.f32 %v4924_v22, %v4948_v38  ;;  %v355_v50 = vmul.f32 %v4926_v23, %v4948_v38  ;;  %v356_v62 = vmul.f32 %v4928_v24, %v4948_v38 }
  0x95   : > { %v485_v44 = vmul.f32 %v4940_v34, %v4950_v39  ;;  %v486_v45 = vmul.f32 %v4942_v35, %v4950_v39  ;;  %v487_v46 = vmul.f32 %v4944_v36, %v4950_v39  ;;  %v488_v47 = vmul.f32 %v4946_v37, %v4950_v39 }
  0x96   : > { %v405_v60 = vadd.f32 %v4978_v55, %v353_v48  ;;  %v406_v61 = vadd.f32 %v4978_v55, %v354_v49  ;;  %v407_v63 = vadd.f32 %v4978_v55, %v355_v50 }
  0x97   : > { %v4970_v51 = vadd.f32 %v485_v44, %v413_v40  ;;  %v4972_v52 = vadd.f32 %v486_v45, %v414_v41  ;;  %v4974_v53 = vadd.f32 %v487_v46, %v415_v42  ;;  %v4976_v54 = vadd.f32 %v488_v47, %v416_v43  ;;  %v5015_v46 = vpop.permute.xlu2 %376 }
  0x98   : > { %v347_v41 = vmul.f32 %v4926_v23, %v4930_v29  ;;  %v5013_v45 = vadd.f32 %v4978_v55, %v356_v62 }
  0x99   : > { %v549_v56 = vmul.f32 0.31830987, %v4970_v51  ;;  %v550_v57 = vmul.f32 0.31830987, %v4972_v52  ;;  %v551_v58 = vmul.f32 0.31830987, %v4974_v53 }
  0x9a   : > { %v552_v59 = vmul.f32 0.31830987, %v4976_v54 }
  0x9b   : > { %vm581_vm0 = vcmp.ge.f32.partialorder %v549_v56, 0.0  ;;  %vm582_vm1 = vcmp.ge.f32.partialorder %v550_v57, 0.0  ;;  %vm583_vm2 = vcmp.ge.f32.partialorder %v551_v58, 0.0 }
  0x9c   : > { %v4989_v0 = vpop.permute.xlu0 %430  ;;  %v613_v2 = vsel %vm581_vm0, 0.5, %v8294_v1  ;;  %v614_v3 = vsel %vm582_vm1, 0.5, %v8294_v1  ;;  %v615_v4 = vsel %vm583_vm2, 0.5, %v8294_v1  ;;  %vm584_vm3 = vcmp.ge.f32.partialorder %v552_v59, 0.0 }
  0x9d   : > { %v645_v5 = vadd.f32 %v613_v2, %v549_v56  ;;  %v646_v6 = vadd.f32 %v614_v3, %v550_v57  ;;  %v647_v7 = vadd.f32 %v615_v4, %v551_v58  ;;  %v616_v8 = vsel %vm584_vm3, 0.5, %v8294_v1 }
  0x9e   : > { %v648_v9 = vadd.f32 %v616_v8, %v552_v59  ;;  %v477_v10 = vmul.f32 %v4940_v34, %v4989_v0  ;;  %v478_v40 = vmul.f32 %v4942_v35, %v4989_v0  ;;  %v479_v50 = vmul.f32 %v4944_v36, %v4989_v0 }
  0x9f   : > { %vm4264_vm4 = vcmp.lt.s32.totalorder %v645_v5, 0  ;;  %v4265_v13 = vceil.f32 %v645_v5  ;;  %v4266_v14 = vfloor.f32 %v645_v5  ;;  %vm4269_vm5 = vcmp.lt.s32.totalorder %v646_v6, 0 }
  0xa0   : > { %v4270_v15 = vceil.f32 %v646_v6  ;;  %v4271_v16 = vfloor.f32 %v646_v6  ;;  %vm4274_vm6 = vcmp.lt.s32.totalorder %v647_v7, 0  ;;  %v4275_v17 = vceil.f32 %v647_v7 }
  0xa1   : > { %v4267_v18 = vsel %vm4264_vm4, %v4265_v13, %v4266_v14  ;;  %v4276_v25 = vfloor.f32 %v647_v7  ;;  %vm4279_vm7 = vcmp.lt.s32.totalorder %v648_v9, 0  ;;  %v4280_v26 = vceil.f32 %v648_v9 }
  0xa2   : > { %v4268_v27 = vcvt.f32.s32 %v4267_v18  ;;  %v4272_v28 = vsel %vm4269_vm5, %v4270_v15, %v4271_v16  ;;  %v4281_v30 = vfloor.f32 %v648_v9  ;;  %v5001_v31 = vadd.f32 %v477_v10, %v405_v60 }
  0xa3   : > { %v4273_v32 = vcvt.f32.s32 %v4272_v28  ;;  %v5003_v33 = vsel %vm4274_vm6, %v4275_v17, %v4276_v25  ;;  %v5024_v58 = vadd.f32 %v5015_v46, %v345_v11  ;;  %v5028_v59 = vmul.f32 %v4928_v24, %v4930_v29 }
  0xa4   : > { %v709_v42 = vcvt.s32.f32 %v4268_v27  ;;  %v4278_v43 = vcvt.f32.s32 %v5003_v33  ;;  %v5010_v44 = vsel %vm4279_vm7, %v4280_v26, %v4281_v30  ;;  %v541_v49 = vmul.f32 0.31830987, %v5001_v31 }
  0xa5   : > { %v710_v47 = vcvt.s32.f32 %v4273_v32  ;;  %v4283_v48 = vcvt.f32.s32 %v5010_v44  ;;  %v5030_v62 = vadd.f32 %v478_v40, %v406_v61  ;;  %v5033_v2 = vadd.f32 %v5015_v46, %v346_v12  ;;  %v5120_v44 = vpop.permute.xlu1 %293 }
  0xa6   : > { %v741_v56 = vmul.f32 3.140625, %v709_v42  ;;  %v711_v57 = vcvt.s32.f32 %v4278_v43  ;;  %v5036_v3 = vadd.f32 %v5015_v46, %v347_v41  ;;  %v805_v5 = vmul.f32 0.0009676536, %v709_v42 }
  0xa7   : > { %v742_v60 = vmul.f32 3.140625, %v710_v47  ;;  %v712_v7 = vcvt.s32.f32 %v4283_v48  ;;  %v806_v9 = vmul.f32 0.0009676536, %v710_v47  ;;  %vm573_vm8 = vcmp.ge.f32.partialorder %v541_v49, 0.0 }
  0xa8   : > { %v773_v4 = vsub.f32 %v4970_v51, %v741_v56  ;;  %v743_v6 = vmul.f32 3.140625, %v711_v57  ;;  %v5042_v10 = vadd.f32 %v479_v50, %v407_v63  ;;  %v807_v12 = vmul.f32 0.0009676536, %v711_v57 }
  0xa9   : > { %v774_v8 = vsub.f32 %v4972_v52, %v742_v60  ;;  %v744_v13 = vmul.f32 3.140625, %v712_v7  ;;  %v808_v51 = vmul.f32 0.0009676536, %v712_v7  ;;  %v605_v15 = vsel %vm573_vm8, 0.5, %v8294_v1 }
  0xaa   : > { %v5044_v61 = vsub.f32 %v773_v4, %v805_v5  ;;  %v775_v11 = vsub.f32 %v4974_v53, %v743_v6  ;;  %v542_v16 = vmul.f32 0.31830987, %v5030_v62  ;;  %v637_v18 = vadd.f32 %v605_v15, %v541_v49 }
  0xab   : > { %v5047_v14 = vsub.f32 %v774_v8, %v806_v9  ;;  %v776_v63 = vsub.f32 %v4976_v54, %v744_v13  ;;  %v5058_v25 = vand.u32 1, %v4268_v27  ;;  %v543_v26 = vmul.f32 0.31830987, %v5042_v10 }
  0xac   : > { %v5053_v52 = vmul.f32 %v5044_v61, %v5044_v61  ;;  %v5055_v17 = vsub.f32 %v775_v11, %v807_v12  ;;  %vm574_vm9 = vcmp.ge.f32.partialorder %v542_v16, 0.0  ;;  %vm4224_vm10 = vcmp.lt.s32.totalorder %v637_v18, 0 }
  0xad   : > { %v5062_v53 = vmul.f32 %v5047_v14, %v5047_v14  ;;  %v5070_v40 = vsub.f32 %v776_v63, %v808_v51  ;;  %v4225_v27 = vceil.f32 %v637_v18  ;;  %v4226_v41 = vfloor.f32 %v637_v18 }
  0xae   : > { %v901_v28 = vmul.f32 -2.5052108e-08, %v5053_v52  ;;  %v5068_v30 = vmul.f32 %v5055_v17, %v5055_v17  ;;  %v606_v42 = vsel %vm574_vm9, 0.5, %v8294_v1  ;;  %v5079_v60 = vand.u32 1, %v4273_v32 }
  0xaf   : > { %v902_v54 = vmul.f32 -2.5052108e-08, %v5062_v53  ;;  %v5077_v50 = vmul.f32 %v5070_v40, %v5070_v40  ;;  %v638_v56 = vadd.f32 %v606_v42, %v542_v16  ;;  %v5081_v4 = vsel %vm4224_vm10, %v4225_v27, %v4226_v41 }
  0xb0   : > { %v933_v47 = vadd.f32 2.7557319e-06, %v901_v28  ;;  %v903_v49 = vmul.f32 -2.5052108e-08, %v5068_v30  ;;  %vm575_vm11 = vcmp.ge.f32.partialorder %v543_v26, 0.0  ;;  %v4228_v8 = vcvt.f32.s32 %v5081_v4  ;;  %v5166_v4 = vpop.permute.xlu1 %426 }
  0xb1   : > { %v934_v57 = vadd.f32 2.7557319e-06, %v902_v54  ;;  %v904_v7 = vmul.f32 -2.5052108e-08, %v5077_v50  ;;  %vm4229_vm12 = vcmp.lt.s32.totalorder %v638_v56, 0  ;;  %v4230_v11 = vceil.f32 %v638_v56 }
  0xb2   : > { %v965_v5 = vmul.f32 %v933_v47, %v5053_v52  ;;  %v935_v6 = vadd.f32 2.7557319e-06, %v903_v49  ;;  %v4231_v12 = vfloor.f32 %v638_v56  ;;  %v701_v15 = vcvt.s32.f32 %v4228_v8 }
  0xb3   : > { %v966_v9 = vmul.f32 %v934_v57, %v5062_v53  ;;  %v936_v32 = vadd.f32 2.7557319e-06, %v904_v7  ;;  %v5092_v63 = vand.u32 1, %v4278_v43  ;;  %v607_v28 = vsel %vm575_vm11, 0.5, %v8294_v1 }
  0xb4   : > { %v997_v13 = vadd.f32 -0.0001984127, %v965_v5  ;;  %v967_v51 = vmul.f32 %v935_v6, %v5068_v30  ;;  %v5094_v18 = vsel %vm4229_vm12, %v4230_v11, %v4231_v12  ;;  %v733_v42 = vmul.f32 3.140625, %v701_v15 }
  0xb5   : > { %v998_v16 = vadd.f32 -0.0001984127, %v966_v9  ;;  %v968_v41 = vmul.f32 %v936_v32, %v5077_v50  ;;  %v797_v49 = vmul.f32 0.0009676536, %v701_v15  ;;  %v4233_v56 = vcvt.f32.s32 %v5094_v18 }
  0xb6   : > { %v1029_v54 = vmul.f32 %v997_v13, %v5053_v52  ;;  %v999_v27 = vadd.f32 -0.0001984127, %v967_v51  ;;  %v480_v33 = vmul.f32 %v4946_v37, %v4989_v0  ;;  %v765_v6 = vsub.f32 %v5001_v31, %v733_v42 }
  0xb7   : > { %v1030_v47 = vmul.f32 %v998_v16, %v5062_v53  ;;  %v1000_v5 = vadd.f32 -0.0001984127, %v968_v41  ;;  %v5108_v9 = vand.u32 1, %v4283_v48  ;;  %v702_v11 = vcvt.s32.f32 %v4233_v56 }
  0xb8   : > { %v1061_v43 = vadd.f32 0.008333334, %v1029_v54  ;;  %v1031_v57 = vmul.f32 %v999_v27, %v5068_v30  ;;  %v639_v12 = vadd.f32 %v607_v28, %v543_v26  ;;  %v5114_v15 = vsub.f32 %v765_v6, %v797_v49 }
  0xb9   : > { %v1062_v7 = vadd.f32 0.008333334, %v1030_v47  ;;  %v1032_v32 = vmul.f32 %v1000_v5, %v5077_v50  ;;  %v734_v54 = vmul.f32 3.140625, %v702_v11  ;;  %v798_v31 = vmul.f32 0.0009676536, %v702_v11 }
  0xba   : > { %v1093_v13 = vmul.f32 %v1061_v43, %v5053_v52  ;;  %v1063_v51 = vadd.f32 0.008333334, %v1031_v57  ;;  %v5118_v27 = vadd.f32 %v480_v33, %v5013_v45  ;;  %v5125_v28 = vmul.f32 %v5114_v15, %v5114_v15 }
  0xbb   : > { %v1094_v16 = vmul.f32 %v1062_v7, %v5062_v53  ;;  %v1064_v26 = vadd.f32 0.008333334, %v1032_v32  ;;  %vm1285_vm13 = vcmp.eq.s32.totalorder %v5058_v25, 1  ;;  %v766_v47 = vsub.f32 %v5030_v62, %v734_v54 }
  0xbc   : > { %v1125_v48 = vadd.f32 -0.16666667, %v1093_v13  ;;  %v1095_v41 = vmul.f32 %v1063_v51, %v5068_v30  ;;  %vm4234_vm14 = vcmp.lt.s32.totalorder %v639_v12, 0  ;;  %v4235_v49 = vceil.f32 %v639_v12 }
  0xbd   : > { %v1126_v42 = vadd.f32 -0.16666667, %v1094_v16  ;;  %vm1286_vm15 = vcmp.eq.s32.totalorder %v5079_v60, 1  ;;  %v1096_v43 = vmul.f32 %v1064_v26, %v5077_v50  ;;  %v893_v57 = vmul.f32 -2.5052108e-08, %v5125_v28 }
  0xbe   : > { %v1157_v45 = vmul.f32 %v1125_v48, %v5053_v52  ;;  %v1127_v33 = vadd.f32 -0.16666667, %v1095_v41  ;;  %vm1287_vm0 = vcmp.eq.s32.totalorder %v5092_v63, 1  ;;  %v5135_v6 = vsub.f32 %v766_v47, %v798_v31 }
  0xbf   : > { %v1158_v5 = vmul.f32 %v1126_v42, %v5062_v53  ;;  %v4236_v7 = vfloor.f32 %v639_v12  ;;  %v544_v62 = vmul.f32 0.31830987, %v5118_v27  ;;  %v1128_v13 = vadd.f32 -0.16666667, %v1096_v43 }
  0xc0   : > { %v1189_v11 = vmul.f32 %v1157_v45, %v5044_v61  ;;  %v1159_v52 = vmul.f32 %v1127_v33, %v5068_v30  ;;  %v925_v51 = vadd.f32 2.7557319e-06, %v893_v57  ;;  %vm1288_vm1 = vcmp.eq.s32.totalorder %v5108_v9, 1 }
  0xc1   : > { %v1190_v32 = vmul.f32 %v1158_v5, %v5047_v14  ;;  %v5144_v53 = vmul.f32 %v5135_v6, %v5135_v6  ;;  %v5147_v16 = vsel %vm4234_vm14, %v4235_v49, %v4236_v7  ;;  %vm576_vm2 = vcmp.ge.f32.partialorder %v544_v62, 0.0 }
  0xc2   : > { %v1221_v54 = vadd.f32 %v1189_v11, %v5044_v61  ;;  %v1191_v31 = vmul.f32 %v1159_v52, %v5055_v17  ;;  %v1160_v30 = vmul.f32 %v1128_v13, %v5077_v50  ;;  %v957_v48 = vmul.f32 %v925_v51, %v5125_v28 }
  0xc3   : > { %v1222_v41 = vadd.f32 %v1190_v32, %v5047_v14  ;;  %v5156_v26 = vand.u32 1, %v4228_v8  ;;  %v894_v42 = vmul.f32 -2.5052108e-08, %v5144_v53  ;;  %v4238_v12 = vcvt.f32.s32 %v5147_v16 }
  0xc4   : > { %v1317_v47 = vsub.f32 0.0, %v1221_v54  ;;  %v1223_v49 = vadd.f32 %v1191_v31, %v5055_v17  ;;  %v1192_v61 = vmul.f32 %v1160_v30, %v5070_v40  ;;  %v989_v45 = vadd.f32 -0.0001984127, %v957_v48 }
  0xc5   : > { %v1318_v33 = vsub.f32 0.0, %v1222_v41  ;;  %v926_v50 = vadd.f32 2.7557319e-06, %v894_v42  ;;  %v703_v43 = vcvt.s32.f32 %v4238_v12  ;;  %v608_v14 = vsel %vm576_vm2, 0.5, %v8294_v1 }
  0xc6   : > { %v1349_v8 = vsel %vm1285_vm13, %v1317_v47, %v1221_v54  ;;  %v1319_v57 = vsub.f32 0.0, %v1223_v49  ;;  %v1224_v5 = vadd.f32 %v1192_v61, %v5070_v40  ;;  %v1021_v17 = vmul.f32 %v989_v45, %v5125_v28 }
  0xc7   : > { %1410 = vmatpush.msra.mxu0 %v1349_v8  ;;  %v1350_v7 = vsel %vm1286_vm15, %v1318_v33, %v1222_v41  ;;  %v958_v11 = vmul.f32 %v926_v50, %v5144_v53  ;;  %v5177_v52 = vand.u32 1, %v4233_v56  ;;  %v735_v13 = vmul.f32 3.140625, %v703_v43 }
  0xc8   : > { %1439 = vmatpush.msra.mxu1 %v1350_v7  ;;  %v1351_v25 = vsel %vm1287_vm0, %v1319_v57, %v1223_v49  ;;  %v1320_v51 = vsub.f32 0.0, %v1224_v5  ;;  %v1053_v32 = vadd.f32 0.008333334, %v1021_v17  ;;  %v799_v40 = vmul.f32 0.0009676536, %v703_v43 }
  0xc9   : > { %1468 = vmatpush.msra.mxu2 %v1351_v25  ;;  %v990_v54 = vadd.f32 -0.0001984127, %v958_v11  ;;  %v767_v31 = vsub.f32 %v5042_v10, %v735_v13  ;;  %v640_v60 = vadd.f32 %v608_v14, %v544_v62  ;;  %v469_v30 = vmul.f32 %v4940_v34, %v5166_v4 }
  0xca   : > { %v1352_v18 = vsel %vm1288_vm1, %v1320_v51, %v1224_v5  ;;  %v1085_v56 = vmul.f32 %v1053_v32, %v5125_v28  ;;  %v470_v63 = vmul.f32 %v4942_v35, %v5166_v4  ;;  %v471_v48 = vmul.f32 %v4944_v36, %v5166_v4 }
  0xcb   : > { %1497 = vmatpush.msra.mxu3 %v1352_v18  ;;  %v1022_v41 = vmul.f32 %v990_v54, %v5144_v53  ;;  %v5192_v42 = vsub.f32 %v767_v31, %v799_v40  ;;  %vm4239_vm3 = vcmp.lt.s32.totalorder %v640_v60, 0  ;;  %v4240_v10 = vceil.f32 %v640_v60 }
  0xcc   : > { %v1117_v62 = vadd.f32 -0.16666667, %v1085_v56  ;;  %v4241_v47 = vfloor.f32 %v640_v60  ;;  %v5195_v9 = vadd.f32 %v469_v30, %v5024_v58  ;;  %v5198_v49 = vadd.f32 %v470_v63, %v5033_v2 }
  0xcd   : > { %v1054_v61 = vadd.f32 0.008333334, %v1022_v41  ;;  %v5202_v45 = vmul.f32 %v5192_v42, %v5192_v42  ;;  %v5205_v33 = vadd.f32 %v471_v48, %v5036_v3  ;;  %v472_v50 = vmul.f32 %v4946_v37, %v5166_v4 }
  0xce   : > { %v1149_v43 = vmul.f32 %v1117_v62, %v5125_v28  ;;  %v5210_v14 = vsel %vm4239_vm3, %v4240_v10, %v4241_v47  ;;  %v533_v58 = vmul.f32 0.31830987, %v5195_v9  ;;  %v534_v2 = vmul.f32 0.31830987, %v5198_v49 }
  0xcf   : > { %v1086_v8 = vmul.f32 %v1054_v61, %v5144_v53  ;;  %v895_v57 = vmul.f32 -2.5052108e-08, %v5202_v45  ;;  %v4243_v5 = vcvt.f32.s32 %v5210_v14  ;;  %v535_v3 = vmul.f32 0.31830987, %v5205_v33 }
  0xd0   : > { %v1181_v17 = vmul.f32 %v1149_v43, %v5114_v15  ;;  %vm565_vm4 = vcmp.ge.f32.partialorder %v533_v58, 0.0  ;;  %vm566_vm5 = vcmp.ge.f32.partialorder %v534_v2, 0.0  ;;  %v400_v28 = vadd.f32 %v5015_v46, %v5028_v59 }
  0xd1   : > { %vm1277_vm6 = vcmp.eq.s32.totalorder %v5156_v26, 1  ;;  %v1118_v7 = vadd.f32 -0.16666667, %v1086_v8  ;;  %v927_v11 = vadd.f32 2.7557319e-06, %v895_v57  ;;  %v704_v13 = vcvt.s32.f32 %v4243_v5 }
  0xd2   : > { %v1213_v25 = vadd.f32 %v1181_v17, %v5114_v15  ;;  %vm1278_vm7 = vcmp.eq.s32.totalorder %v5177_v52, 1  ;;  %v597_v51 = vsel %vm565_vm4, 0.5, %v8294_v1  ;;  %v598_v32 = vsel %vm566_vm5, 0.5, %v8294_v1 }
  0xd3   : > { %vm567_vm8 = vcmp.ge.f32.partialorder %v535_v3, 0.0  ;;  %v1150_v40 = vmul.f32 %v1118_v7, %v5144_v53  ;;  %v959_v59 = vmul.f32 %v927_v11, %v5202_v45  ;;  %v736_v54 = vmul.f32 3.140625, %v704_v13 }
  0xd4   : > { %v5230_v31 = vadd.f32 %v472_v50, %v400_v28  ;;  %v1309_v60 = vsub.f32 0.0, %v1213_v25  ;;  %v800_v30 = vmul.f32 0.0009676536, %v704_v13  ;;  %v629_v18 = vadd.f32 %v597_v51, %v533_v58 }
  0xd5   : > { %v630_v56 = vadd.f32 %v598_v32, %v534_v2  ;;  %v1182_v15 = vmul.f32 %v1150_v40, %v5135_v6  ;;  %v991_v63 = vadd.f32 -0.0001984127, %v959_v59  ;;  %v768_v48 = vsub.f32 %v5118_v27, %v736_v54 }
  0xd6   : > { %v599_v41 = vsel %vm567_vm8, 0.5, %v8294_v1  ;;  %v1341_v10 = vsel %vm1277_vm6, %v1309_v60, %v1213_v25  ;;  %vm4184_vm9 = vcmp.lt.s32.totalorder %v629_v18, 0  ;;  %v4185_v53 = vceil.f32 %v629_v18 }
  0xd7   : > { %v4186_v62 = vfloor.f32 %v629_v18  ;;  %1411 = vmatpush.msra.mxu0 %v1341_v10  ;;  %v1214_v47 = vadd.f32 %v1182_v15, %v5135_v6  ;;  %v1023_v61 = vmul.f32 %v991_v63, %v5202_v45  ;;  %v5239_v50 = vsub.f32 %v768_v48, %v800_v30  ;;  %v5274_v10 = vpop.permute.xlu0 %422 }
  0xd8   : > { %vm4189_vm10 = vcmp.lt.s32.totalorder %v630_v56, 0  ;;  %v4190_v58 = vceil.f32 %v630_v56  ;;  %v4191_v27 = vfloor.f32 %v630_v56  ;;  %v631_v2 = vadd.f32 %v599_v41, %v535_v3 }
  0xd9   : > { %v5241_v43 = vsel %vm4184_vm9, %v4185_v53, %v4186_v62  ;;  %v1310_v8 = vsub.f32 0.0, %v1214_v47  ;;  %v1055_v57 = vadd.f32 0.008333334, %v1023_v61  ;;  %v5245_v26 = vmul.f32 %v5239_v50, %v5239_v50 }
  0xda   : > { %v4188_v17 = vcvt.f32.s32 %v5241_v43  ;;  %v5248_v28 = vsel %vm4189_vm10, %v4190_v58, %v4191_v27  ;;  %vm4194_vm11 = vcmp.lt.s32.totalorder %v631_v2, 0  ;;  %v4195_v6 = vceil.f32 %v631_v2 }
  0xdb   : > { %v4196_v7 = vfloor.f32 %v631_v2  ;;  %v1342_v11 = vsel %vm1278_vm7, %v1310_v8, %v1214_v47  ;;  %v1087_v13 = vmul.f32 %v1055_v57, %v5202_v45  ;;  %v896_v3 = vmul.f32 -2.5052108e-08, %v5245_v26 }
  0xdc   : > { %v693_v25 = vcvt.s32.f32 %v4188_v17  ;;  %1440 = vmatpush.msra.mxu1 %v1342_v11  ;;  %v1247_v51 = vand.u32 1, %v4238_v12  ;;  %v4193_v32 = vcvt.f32.s32 %v5248_v28  ;;  %v536_v56 = vmul.f32 0.31830987, %v5230_v31 }
  0xdd   : > { %v5259_v40 = vsel %vm4194_vm11, %v4195_v6, %v4196_v7  ;;  %v1119_v59 = vadd.f32 -0.16666667, %v1087_v13  ;;  %v928_v54 = vadd.f32 2.7557319e-06, %v896_v3  ;;  %v5272_v48 = vand.u32 1, %v4243_v5  ;;  %v5294_v7 = vpop.permute.xlu2 %371 }
  0xde   : > { %v725_v60 = vmul.f32 3.140625, %v693_v25  ;;  %v4198_v52 = vcvt.f32.s32 %v5259_v40  ;;  %v789_v30 = vmul.f32 0.0009676536, %v693_v25  ;;  %v694_v18 = vcvt.s32.f32 %v4193_v32 }
  0xdf   : > { %v1151_v15 = vmul.f32 %v1119_v59, %v5202_v45  ;;  %v960_v16 = vmul.f32 %v928_v54, %v5245_v26  ;;  %vm1279_vm12 = vcmp.eq.s32.totalorder %v1247_v51, 1  ;;  %vm568_vm13 = vcmp.ge.f32.partialorder %v536_v56, 0.0 }
  0xe0   : > { %v757_v12 = vsub.f32 %v5195_v9, %v725_v60  ;;  %v695_v63 = vcvt.s32.f32 %v4198_v52  ;;  %v726_v41 = vmul.f32 3.140625, %v694_v18  ;;  %v790_v9 = vmul.f32 0.0009676536, %v694_v18 }
  0xe1   : > { %v1183_v53 = vmul.f32 %v1151_v15, %v5192_v42  ;;  %v992_v62 = vadd.f32 -0.0001984127, %v960_v16  ;;  %v600_v57 = vsel %vm568_vm13, 0.5, %v8294_v1  ;;  %v461_v6 = vmul.f32 %v4940_v34, %v5274_v10 }
  0xe2   : > { %v5277_v47 = vsub.f32 %v757_v12, %v789_v30  ;;  %v727_v45 = vmul.f32 3.140625, %v695_v63  ;;  %v758_v61 = vsub.f32 %v5198_v49, %v726_v41  ;;  %v791_v58 = vmul.f32 0.0009676536, %v695_v63 }
  0xe3   : > { %v1215_v27 = vadd.f32 %v1183_v53, %v5192_v42  ;;  %v1024_v14 = vmul.f32 %v992_v62, %v5245_v26  ;;  %v337_v49 = vmul.f32 %v4922_v21, %v5120_v44  ;;  %v632_v25 = vadd.f32 %v600_v57, %v536_v56 }
  0xe4   : > { %v5284_v5 = vmul.f32 %v5277_v47, %v5277_v47  ;;  %v759_v2 = vsub.f32 %v5205_v33, %v727_v45  ;;  %v5287_v8 = vsub.f32 %v758_v61, %v790_v9  ;;  %v338_v21 = vmul.f32 %v4924_v22, %v5120_v44 }
  0xe5   : > { %v1311_v42 = vsub.f32 0.0, %v1215_v27  ;;  %v1056_v11 = vadd.f32 0.008333334, %v1024_v14  ;;  %v389_v59 = vadd.f32 %v5294_v7, %v337_v49  ;;  %vm4199_vm14 = vcmp.lt.s32.totalorder %v632_v25, 0 }
  0xe6   : > { %v885_v13 = vmul.f32 -2.5052108e-08, %v5284_v5  ;;  %v5297_v3 = vsub.f32 %v759_v2, %v791_v58  ;;  %v5301_v33 = vmul.f32 %v5287_v8, %v5287_v8  ;;  %v4200_v15 = vceil.f32 %v632_v25 }
  0xe7   : > { %v1343_v34 = vsel %vm1279_vm12, %v1311_v42, %v1215_v27  ;;  %v1088_v54 = vmul.f32 %v1056_v11, %v5245_v26  ;;  %v4201_v56 = vfloor.f32 %v632_v25  ;;  %v5315_v51 = vadd.f32 %v461_v6, %v389_v59 }
  0xe8   : > { %v917_v60 = vadd.f32 2.7557319e-06, %v885_v13  ;;  %v5310_v30 = vmul.f32 %v5297_v3, %v5297_v3  ;;  %1469 = vmatpush.msra.mxu2 %v1343_v34  ;;  %v886_v18 = vmul.f32 -2.5052108e-08, %v5301_v33  ;;  %vm1280_vm15 = vcmp.eq.s32.totalorder %v5272_v48, 1 }
  0xe9   : > { %v1120_v16 = vadd.f32 -0.16666667, %v1088_v54  ;;  %v5318_v41 = vsel %vm4199_vm14, %v4200_v15, %v4201_v56  ;;  %v390_v53 = vadd.f32 %v5294_v7, %v338_v21  ;;  %v462_v62 = vmul.f32 %v4942_v35, %v5274_v10 }
  0xea   : > { %v949_v12 = vmul.f32 %v917_v60, %v5284_v5  ;;  %v887_v22 = vmul.f32 -2.5052108e-08, %v5310_v30  ;;  %v918_v63 = vadd.f32 2.7557319e-06, %v886_v18  ;;  %v4203_v58 = vcvt.f32.s32 %v5318_v41 }
  0xeb   : > { %v1152_v45 = vmul.f32 %v1120_v16, %v5245_v26  ;;  %v5327_v27 = vand.u32 1, %v4188_v17  ;;  %v525_v2 = vmul.f32 0.31830987, %v5315_v51  ;;  %v5331_v57 = vadd.f32 %v462_v62, %v390_v53 }
  0xec   : > { %v981_v61 = vadd.f32 -0.0001984127, %v949_v12  ;;  %v919_v9 = vadd.f32 2.7557319e-06, %v887_v22  ;;  %v950_v14 = vmul.f32 %v918_v63, %v5301_v33  ;;  %v696_v6 = vcvt.s32.f32 %v4203_v58 }
  0xed   : > { %v1184_v49 = vmul.f32 %v1152_v45, %v5239_v50  ;;  %vm557_vm0 = vcmp.ge.f32.partialorder %v525_v2, 0.0  ;;  %v526_v43 = vmul.f32 0.31830987, %v5331_v57  ;;  %v339_v17 = vmul.f32 %v4926_v23, %v5120_v44 }
  0xee   : > { %v1013_v35 = vmul.f32 %v981_v61, %v5284_v5  ;;  %v951_v26 = vmul.f32 %v919_v9, %v5310_v30  ;;  %v982_v42 = vadd.f32 -0.0001984127, %v950_v14  ;;  %v728_v59 = vmul.f32 3.140625, %v696_v6 }
  0xef   : > { %v1216_v11 = vadd.f32 %v1184_v49, %v5239_v50  ;;  %v5345_v34 = vand.u32 1, %v4193_v32  ;;  %v792_v54 = vmul.f32 0.0009676536, %v696_v6  ;;  %v589_v60 = vsel %vm557_vm0, 0.5, %v8294_v1 }
  0xf0   : > { %v1045_v13 = vadd.f32 0.008333334, %v1013_v35  ;;  %v983_v25 = vadd.f32 -0.0001984127, %v951_v26  ;;  %v1014_v21 = vmul.f32 %v982_v42, %v5301_v33  ;;  %v760_v23 = vsub.f32 %v5230_v31, %v728_v59 }
  0xf1   : > { %v1312_v18 = vsub.f32 0.0, %v1216_v11  ;;  %v621_v16 = vadd.f32 %v589_v60, %v525_v2  ;;  %vm558_vm1 = vcmp.ge.f32.partialorder %v526_v43, 0.0  ;;  %v391_v12 = vadd.f32 %v5294_v7, %v339_v17 }
  0xf2   : > { %v1077_v15 = vmul.f32 %v1045_v13, %v5284_v5  ;;  %v1015_v56 = vmul.f32 %v983_v25, %v5310_v30  ;;  %v1046_v50 = vadd.f32 0.008333334, %v1014_v21  ;;  %v5354_v63 = vsub.f32 %v760_v23, %v792_v54 }
  0xf3   : > { %v1344_v28 = vsel %vm1280_vm15, %v1312_v18, %v1216_v11  ;;  %vm1269_vm2 = vcmp.eq.s32.totalorder %v5327_v27, 1  ;;  %vm4144_vm3 = vcmp.lt.s32.totalorder %v621_v16, 0  ;;  %v4145_v62 = vceil.f32 %v621_v16 }
  0xf4   : > { %v1109_v32 = vadd.f32 -0.16666667, %v1077_v15  ;;  %v1047_v22 = vadd.f32 0.008333334, %v1015_v56  ;;  %1498 = vmatpush.msra.mxu3 %v1344_v28  ;;  %v1078_v53 = vmul.f32 %v1046_v50, %v5301_v33  ;;  %v4146_v31 = vfloor.f32 %v621_v16 }
  0xf5   : > { %v5362_v48 = vmul.f32 %v5354_v63, %v5354_v63  ;;  %v590_v9 = vsel %vm558_vm1, 0.5, %v8294_v1  ;;  %v463_v35 = vmul.f32 %v4944_v36, %v5274_v10  ;;  %v1239_v54 = vand.u32 1, %v4198_v52 }
  0xf6   : > { %v1141_v45 = vmul.f32 %v1109_v32, %v5284_v5  ;;  %v1079_v61 = vmul.f32 %v1047_v22, %v5310_v30  ;;  %v1110_v14 = vadd.f32 -0.16666667, %v1078_v53  ;;  %v5365_v2 = vsel %vm4144_vm3, %v4145_v62, %v4146_v31 }
  0xf7   : > { %v622_v49 = vadd.f32 %v590_v9, %v526_v43  ;;  %v888_v5 = vmul.f32 -2.5052108e-08, %v5362_v48  ;;  %v4148_v42 = vcvt.f32.s32 %v5365_v2  ;;  %v5382_v18 = vadd.f32 %v463_v35, %v391_v12 }
  0xf8   : > { %v1173_v26 = vmul.f32 %v1141_v45, %v5277_v47  ;;  %v1111_v6 = vadd.f32 -0.16666667, %v1079_v61  ;;  %v1142_v17 = vmul.f32 %v1110_v14, %v5301_v33  ;;  %vm1270_vm5 = vcmp.eq.s32.totalorder %v5345_v34, 1  ;;  %v5408_v61 = vld [vmem:[%s4915_s30 + $0x8] sm:$0xff] }
  0xf9   : > { %vm4149_vm4 = vcmp.lt.s32.totalorder %v622_v49, 0  ;;  %v4150_v11 = vceil.f32 %v622_v49  ;;  %v4151_v13 = vfloor.f32 %v622_v49  ;;  %v920_v43 = vadd.f32 2.7557319e-06, %v888_v5 }
  0xfa   : > { %v1205_v25 = vadd.f32 %v1173_v26, %v5277_v47  ;;  %v1143_v59 = vmul.f32 %v1111_v6, %v5310_v30  ;;  %v685_v36 = vcvt.s32.f32 %v4148_v42  ;;  %v1174_v21 = vmul.f32 %v1142_v17, %v5287_v8 }
  0xfb   : > { %v5380_v60 = vsel %vm4149_vm4, %v4150_v11, %v4151_v13  ;;  %v952_v47 = vmul.f32 %v920_v43, %v5362_v48  ;;  %vm1271_vm6 = vcmp.eq.s32.totalorder %v1239_v54, 1  ;;  %v527_v32 = vmul.f32 0.31830987, %v5382_v18 }
  0xfc   : > { %v1301_v33 = vsub.f32 0.0, %v1205_v25  ;;  %v1175_v15 = vmul.f32 %v1143_v59, %v5297_v3  ;;  %v717_v56 = vmul.f32 3.140625, %v685_v36  ;;  %v1206_v30 = vadd.f32 %v1174_v21, %v5287_v8 }
  0xfd   : > { %v781_v23 = vmul.f32 0.0009676536, %v685_v36  ;;  %v4153_v50 = vcvt.f32.s32 %v5380_v60  ;;  %v984_v16 = vadd.f32 -0.0001984127, %v952_v47  ;;  %vm559_vm7 = vcmp.ge.f32.partialorder %v527_v32, 0.0 }
  0xfe   : > { %v1333_v40 = vsel %vm1269_vm2, %v1301_v33, %v1205_v25  ;;  %v1207_v52 = vadd.f32 %v1175_v15, %v5297_v3  ;;  %v749_v12 = vsub.f32 %v5315_v51, %v717_v56  ;;  %v1302_v28 = vsub.f32 0.0, %v1206_v30 }
  0xff   : > { %1412 = vmatpush.msra.mxu0 %v1333_v40  ;;  %v686_v8 = vcvt.s32.f32 %v4153_v50  ;;  %v1016_v53 = vmul.f32 %v984_v16, %v5362_v48  ;;  %v340_v3 = vmul.f32 %v4928_v24, %v5120_v44  ;;  %v5405_v51 = vand.u32 1, %v4203_v58 }
 0x100   : > { %v1303_v22 = vsub.f32 0.0, %v1207_v52  ;;  %v5397_v62 = vsub.f32 %v749_v12, %v781_v23  ;;  %v1334_v27 = vsel %vm1270_vm5, %v1302_v28, %v1206_v30  ;;  %v591_v34 = vsel %vm559_vm7, 0.5, %v8294_v1 }
 0x101   : > { %v718_v31 = vmul.f32 3.140625, %v686_v8  ;;  %v782_v45 = vmul.f32 0.0009676536, %v686_v8  ;;  %1441 = vmatpush.msra.mxu1 %v1334_v27  ;;  %v1048_v14 = vadd.f32 0.008333334, %v1016_v53  ;;  %v392_v41 = vadd.f32 %v5294_v7, %v340_v3 }
 0x102   : > { %v1335_v9 = vsel %vm1271_vm6, %v1303_v22, %v1207_v52  ;;  %v5412_v49 = vmul.f32 %v5397_v62, %v5397_v62  ;;  %v464_v58 = vmul.f32 %v4946_v37, %v5274_v10  ;;  %v623_v6 = vadd.f32 %v591_v34, %v527_v32 }
 0x103   : > { %1470 = vmatpush.msra.mxu2 %v1335_v9  ;;  %v750_v24 = vsub.f32 %v5331_v57, %v718_v31  ;;  %v1080_v35 = vmul.f32 %v1048_v14, %v5362_v48  ;;  %v317_v5 = vperm.slane %v5408_v61, 0  ;;  %v441_v57 = vperm.slane %v5408_v61, 1 }
 0x104   : > { %v877_v26 = vmul.f32 -2.5052108e-08, %v5412_v49  ;;  %v5424_v11 = vadd.f32 %v464_v58, %v392_v41  ;;  %v318_v13 = vperm.slane %v5408_v61, 2  ;;  %vm4154_vm8 = vcmp.lt.s32.totalorder %v623_v6, 0 }
 0x105   : > { %v5422_v17 = vsub.f32 %v750_v24, %v782_v45  ;;  %v1112_v25 = vadd.f32 -0.16666667, %v1080_v35  ;;  %v4155_v43 = vceil.f32 %v623_v6  ;;  %v4156_v36 = vfloor.f32 %v623_v6 }
 0x106   : > { %v909_v59 = vadd.f32 2.7557319e-06, %v877_v26  ;;  %v528_v21 = vmul.f32 0.31830987, %v5424_v11  ;;  %v5433_v54 = vperm.slane %v317_v5, 0  ;;  %vm1272_vm9 = vcmp.eq.s32.totalorder %v5405_v51, 1 }
 0x107   : > { %v5430_v37 = vmul.f32 %v5422_v17, %v5422_v17  ;;  %v1144_v33 = vmul.f32 %v1112_v25, %v5362_v48  ;;  %v5438_v47 = vperm.slane %v441_v57, 1  ;;  %v5441_v30 = vsel %vm4154_vm8, %v4155_v43, %v4156_v36 }
 0x108   : > { %v941_v15 = vmul.f32 %v909_v59, %v5412_v49  ;;  %vm560_vm10 = vcmp.ge.f32.partialorder %v528_v21, 0.0  ;;  %v365_v23 = vmul.f32 %v5433_v54, %v4920_v20  ;;  %v4158_v16 = vcvt.f32.s32 %v5441_v30 }
 0x109   : > { %v878_v56 = vmul.f32 -2.5052108e-08, %v5430_v37  ;;  %v1176_v40 = vmul.f32 %v1144_v33, %v5354_v63  ;;  %v592_v48 = vsel %vm560_vm10, 0.5, %v8294_v1  ;;  %v489_v8 = vmul.f32 %v5438_v47, %v4950_v39 }
 0x10a   : > { %v973_v52 = vadd.f32 -0.0001984127, %v941_v15  ;;  %v624_v28 = vadd.f32 %v592_v48, %v528_v21  ;;  %v5450_v32 = vperm.slane %v318_v13, 0  ;;  %v687_v3 = vcvt.s32.f32 %v4158_v16 }
 0x10b   : > { %v910_v12 = vadd.f32 2.7557319e-06, %v878_v56  ;;  %v1208_v22 = vadd.f32 %v1176_v40, %v5354_v63  ;;  %v417_v27 = vadd.f32 %v4918_v19, %v365_v23  ;;  %v1229_v34 = vand.u32 1, %v4148_v42 }
 0x10c   : > { %v1005_v53 = vmul.f32 %v973_v52, %v5412_v49  ;;  %vm4159_vm11 = vcmp.lt.s32.totalorder %v624_v28, 0  ;;  %v4160_v45 = vceil.f32 %v624_v28  ;;  %v4161_v9 = vfloor.f32 %v624_v28 }
 0x10d   : > { %v942_v31 = vmul.f32 %v910_v12, %v5430_v37  ;;  %v1304_v14 = vsub.f32 0.0, %v1208_v22  ;;  %v719_v41 = vmul.f32 3.140625, %v687_v3  ;;  %v783_v63 = vmul.f32 0.0009676536, %v687_v3 }
 0x10e   : > { %v1037_v24 = vadd.f32 0.008333334, %v1005_v53  ;;  %v5460_v35 = vsel %vm4159_vm11, %v4160_v45, %v4161_v9  ;;  %v5462_v26 = vadd.f32 %v489_v8, %v417_v27  ;;  %v366_v25 = vmul.f32 %v5450_v32, %v4920_v20 }
 0x10f   : > { %v974_v58 = vadd.f32 -0.0001984127, %v942_v31  ;;  %v1336_v6 = vsel %vm1272_vm9, %v1304_v14, %v1208_v22  ;;  %v751_v57 = vsub.f32 %v5382_v18, %v719_v41  ;;  %v4163_v13 = vcvt.f32.s32 %v5460_v35 }
 0x110   : > { %v1069_v5 = vmul.f32 %v1037_v24, %v5412_v49  ;;  %1499 = vmatpush.msra.mxu3 %v1336_v6  ;;  %v553_v42 = vmul.f32 0.31830987, %v5462_v26  ;;  %v442_v59 = vperm.slane %v5408_v61, 3  ;;  %vm1261_vm12 = vcmp.eq.s32.totalorder %v1229_v34, 1 }
 0x111   : > { %v1006_v2 = vmul.f32 %v974_v58, %v5430_v37  ;;  %v5474_v36 = vsub.f32 %v751_v57, %v783_v63  ;;  %v688_v51 = vcvt.s32.f32 %v4163_v13  ;;  %v1230_v21 = vand.u32 1, %v4153_v50 }
 0x112   : > { %v1101_v43 = vadd.f32 -0.16666667, %v1069_v5  ;;  %vm585_vm13 = vcmp.ge.f32.partialorder %v553_v42, 0.0  ;;  %v5480_v33 = vperm.slane %v442_v59, 1  ;;  %v418_v40 = vadd.f32 %v4918_v19, %v366_v25  ;;  %v5514_v5 = vld [vmem:[%s8277_s3] sm:$0xff] }
 0x113   : > { %v1038_v18 = vadd.f32 0.008333334, %v1006_v2  ;;  %v5485_v56 = vmul.f32 %v5474_v36, %v5474_v36  ;;  %v720_v23 = vmul.f32 3.140625, %v688_v51  ;;  %v784_v48 = vmul.f32 0.0009676536, %v688_v51 }
 0x114   : > { %v1133_v15 = vmul.f32 %v1101_v43, %v5412_v49  ;;  %vm1385_vm14 = vcmask 261120   ;;  %v617_v12 = vsel %vm585_vm13, 0.5, %v8294_v1  ;;  %v490_v22 = vmul.f32 %v5480_v33, %v4950_v39 }
 0x115   : > { %v1070_v52 = vmul.f32 %v1038_v18, %v5430_v37  ;;  %v879_v50 = vmul.f32 -2.5052108e-08, %v5485_v56  ;;  %v752_v28 = vsub.f32 %v5424_v11, %v720_v23  ;;  %v649_v49 = vadd.f32 %v617_v12, %v553_v42 }
 0x116   : > { %v1165_v60 = vmul.f32 %v1133_v15, %v5397_v62  ;;  %v319_v53 = vperm.slane %v5408_v61, 4  ;;  %v443_v3 = vperm.slane %v5408_v61, 5  ;;  %v5501_v11 = vadd.f32 %v490_v22, %v418_v40 }
 0x117   : > { %v1102_v8 = vadd.f32 -0.16666667, %v1070_v52  ;;  %v911_v31 = vadd.f32 2.7557319e-06, %v879_v50  ;;  %v5498_v45 = vsub.f32 %v752_v28, %v784_v48  ;;  %vm4284_vm15 = vcmp.lt.s32.totalorder %v649_v49, 0 }
 0x118   : > { %v1197_v27 = vadd.f32 %v1165_v60, %v5397_v62  ;;  %v4285_v14 = vceil.f32 %v649_v49  ;;  %v4286_v24 = vfloor.f32 %v649_v49  ;;  %v5508_v6 = vperm.slane %v319_v53, 0 }
 0x119   : > { %v1134_v9 = vmul.f32 %v1102_v8, %v5430_v37  ;;  %v943_v58 = vmul.f32 %v911_v31, %v5485_v56  ;;  %v5506_v63 = vmul.f32 %v5498_v45, %v5498_v45  ;;  %v554_v57 = vmul.f32 0.31830987, %v5501_v11 }
 0x11a   : > { %v1293_v41 = vsub.f32 0.0, %v1197_v27  ;;  %v5516_v37 = vsel %vm4284_vm15, %v4285_v14, %v4286_v24  ;;  %v5519_v2 = vperm.slane %v443_v3, 1  ;;  %v367_v18 = vmul.f32 %v5508_v6, %v4920_v20 }
 0x11b   : > { %v1166_v62 = vmul.f32 %v1134_v9, %v5422_v17  ;;  %v975_v25 = vadd.f32 -0.0001984127, %v943_v58  ;;  %v880_v59 = vmul.f32 -2.5052108e-08, %v5506_v63  ;;  %v4288_v43 = vcvt.f32.s32 %v5516_v37 }
 0x11c   : > { %v1325_v42 = vsel %vm1261_vm12, %v1293_v41, %v1197_v27  ;;  %vm586_vm0 = vcmp.ge.f32.partialorder %v554_v57, 0.0  ;;  %v491_v15 = vmul.f32 %v5519_v2, %v4950_v39  ;;  %vm1262_vm1 = vcmp.eq.s32.totalorder %v1230_v21, 1 }
 0x11d   : > { %1413 = vmatpush.msra.mxu0 %v1325_v42  ;;  %v1198_v51 = vadd.f32 %v1166_v62, %v5422_v17  ;;  %v1007_v23 = vmul.f32 %v975_v25, %v5485_v56  ;;  %v912_v34 = vadd.f32 2.7557319e-06, %v880_v59  ;;  %v713_v40 = vcvt.s32.f32 %v4288_v43 }
 0x11e   : > { %4060 = vmatmul.msk.f32.vlgmr.msra.gmra.mxu0 %vm1385_vm14, %v5514_v5  ;;  %v618_v17 = vsel %vm586_vm0, 0.5, %v8294_v1  ;;  %v419_v48 = vadd.f32 %v4918_v19, %v367_v18  ;;  %v320_v12 = vperm.slane %v5408_v61, 6  ;;  %v1231_v21 = vand.u32 1, %v4158_v16 }
 0x11f   : > { %v1294_v52 = vsub.f32 0.0, %v1198_v51  ;;  %v1039_v60 = vadd.f32 0.008333334, %v1007_v23  ;;  %v944_v50 = vmul.f32 %v912_v34, %v5506_v63  ;;  %v745_v28 = vmul.f32 3.140625, %v713_v40 }
 0x120   : > { %v809_v8 = vmul.f32 0.0009676536, %v713_v40  ;;  %v650_v22 = vadd.f32 %v618_v17, %v554_v57  ;;  %v5540_v53 = vadd.f32 %v491_v15, %v419_v48  ;;  %v5544_v9 = vperm.slane %v320_v12, 0 }
 0x121   : > { %v1326_v49 = vsel %vm1262_vm1, %v1294_v52, %v1198_v51  ;;  %v1071_v3 = vmul.f32 %v1039_v60, %v5485_v56  ;;  %v976_v27 = vadd.f32 -0.0001984127, %v944_v50  ;;  %v777_v31 = vsub.f32 %v5462_v26, %v745_v28 }
 0x122   : > { %1442 = vmatpush.msra.mxu1 %v1326_v49  ;;  %vm4289_vm2 = vcmp.lt.s32.totalorder %v650_v22, 0  ;;  %v4290_v30 = vceil.f32 %v650_v22  ;;  %v4291_v16 = vfloor.f32 %v650_v22  ;;  %v555_v14 = vmul.f32 0.31830987, %v5540_v53 }
 0x123   : > { %4064 = vmatmul.msk.f32.vlgmr.msra.gmra.mxu1 %vm1385_vm14, %v5514_v5  ;;  %v1103_v24 = vadd.f32 -0.16666667, %v1071_v3  ;;  %v1008_v41 = vmul.f32 %v976_v27, %v5506_v63  ;;  %v5550_v58 = vsub.f32 %v777_v31, %v809_v8  ;;  %v368_v26 = vmul.f32 %v5544_v9, %v4920_v20 }
 0x124   : > { %v5552_v62 = vsel %vm4289_vm2, %v4290_v30, %v4291_v16  ;;  %vm587_vm3 = vcmp.ge.f32.partialorder %v555_v14, 0.0  ;;  %v444_v57 = vperm.slane %v5408_v61, 7  ;;  %vm1263_vm4 = vcmp.eq.s32.totalorder %v1231_v21, 1 }
 0x125   : > { %v1135_v42 = vmul.f32 %v1103_v24, %v5485_v56  ;;  %v1040_v25 = vadd.f32 0.008333334, %v1008_v41  ;;  %v5560_v59 = vmul.f32 %v5550_v58, %v5550_v58  ;;  %v4293_v51 = vcvt.f32.s32 %v5552_v62 }
 0x126   : > { %v619_v18 = vsel %vm587_vm3, 0.5, %v8294_v1  ;;  %v5564_v15 = vperm.slane %v444_v57, 1  ;;  %v357_v23 = vmul.f32 %v5433_v54, %v4948_v38  ;;  %v420_v52 = vadd.f32 %v4918_v19, %v368_v26 }
 0x127   : > { %v1167_v20 = vmul.f32 %v1135_v42, %v5474_v36  ;;  %v1072_v61 = vmul.f32 %v1040_v25, %v5506_v63  ;;  %v905_v56 = vmul.f32 -2.5052108e-08, %v5560_v59  ;;  %v714_v34 = vcvt.s32.f32 %v4293_v51 }
 0x128   : > { %v651_v40 = vadd.f32 %v619_v18, %v555_v14  ;;  %v492_v17 = vmul.f32 %v5564_v15, %v4950_v39  ;;  %v481_v48 = vmul.f32 %v5438_v47, %v4989_v0  ;;  %v409_v22 = vadd.f32 %v4978_v55, %v357_v23 }
 0x129   : > { %v1199_v12 = vadd.f32 %v1167_v20, %v5474_v36  ;;  %v1104_v60 = vadd.f32 -0.16666667, %v1072_v61  ;;  %v937_v50 = vadd.f32 2.7557319e-06, %v905_v56  ;;  %v746_v28 = vmul.f32 3.140625, %v714_v34 }
 0x12a   : > { %v810_v49 = vmul.f32 0.0009676536, %v714_v34  ;;  %vm4294_vm5 = vcmp.lt.s32.totalorder %v651_v40, 0  ;;  %v4295_v8 = vceil.f32 %v651_v40  ;;  %v4296_v31 = vfloor.f32 %v651_v40 }
 0x12b   : > { %v1295_v3 = vsub.f32 0.0, %v1199_v12  ;;  %v1136_v27 = vmul.f32 %v1104_v60, %v5506_v63  ;;  %v969_v19 = vmul.f32 %v937_v50, %v5560_v59  ;;  %v778_v39 = vsub.f32 %v5501_v11, %v746_v28 }
 0x12c   : > { %v5583_v30 = vadd.f32 %v492_v17, %v420_v52  ;;  %v5585_v16 = vadd.f32 %v481_v48, %v409_v22  ;;  %v358_v36 = vmul.f32 %v5450_v32, %v4948_v38  ;;  %v1232_v63 = vand.u32 1, %v4163_v13 }
 0x12d   : > { %v1327_v14 = vsel %vm1263_vm4, %v1295_v3, %v1199_v12  ;;  %v1168_v24 = vmul.f32 %v1136_v27, %v5498_v45  ;;  %v1001_v41 = vadd.f32 -0.0001984127, %v969_v19  ;;  %v5591_v26 = vsub.f32 %v778_v39, %v810_v49 }
 0x12e   : > { %1471 = vmatpush.msra.mxu2 %v1327_v14  ;;  %v5596_v11 = vsel %vm4294_vm5, %v4295_v8, %v4296_v31  ;;  %v556_v57 = vmul.f32 0.31830987, %v5583_v30  ;;  %v545_v42 = vmul.f32 0.31830987, %v5585_v16  ;;  %v410_v13 = vadd.f32 %v4978_v55, %v358_v36 }
 0x12f   : > { %v1200_v25 = vadd.f32 %v1168_v24, %v5498_v45  ;;  %4068 = vmatmul.msk.f32.vlgmr.msra.gmra.mxu2 %vm1385_vm14, %v5514_v5  ;;  %v1033_v21 = vmul.f32 %v1001_v41, %v5560_v59  ;;  %v5606_v18 = vmul.f32 %v5591_v26, %v5591_v26  ;;  %v4298_v35 = vcvt.f32.s32 %v5596_v11 }
 0x130   : > { %vm588_vm6 = vcmp.ge.f32.partialorder %v556_v57, 0.0  ;;  %vm577_vm7 = vcmp.ge.f32.partialorder %v545_v42, 0.0  ;;  %v482_v23 = vmul.f32 %v5480_v33, %v4989_v0  ;;  %vm1264_vm8 = vcmp.eq.s32.totalorder %v1232_v63, 1 }
 0x131   : > { %v1296_v20 = vsub.f32 0.0, %v1200_v25  ;;  %v1065_v45 = vadd.f32 0.008333334, %v1033_v21  ;;  %v906_v61 = vmul.f32 -2.5052108e-08, %v5606_v18  ;;  %v715_v56 = vcvt.s32.f32 %v4298_v35 }
 0x132   : > { %v620_v34 = vsel %vm588_vm6, 0.5, %v8294_v1  ;;  %v609_v40 = vsel %vm577_vm7, 0.5, %v8294_v1  ;;  %v5617_v52 = vadd.f32 %v482_v23, %v410_v13  ;;  %v359_v63 = vmul.f32 %v5508_v6, %v4948_v38 }
 0x133   : > { %v1328_v17 = vsel %vm1264_vm8, %v1296_v20, %v1200_v25  ;;  %v1097_v48 = vmul.f32 %v1065_v45, %v5560_v59  ;;  %v938_v12 = vadd.f32 2.7557319e-06, %v906_v61  ;;  %v747_v60 = vmul.f32 3.140625, %v715_v56 }
 0x134   : > { %1500 = vmatpush.msra.mxu3 %v1328_v17  ;;  %v811_v50 = vmul.f32 0.0009676536, %v715_v56  ;;  %v652_v28 = vadd.f32 %v620_v34, %v556_v57  ;;  %v641_v49 = vadd.f32 %v609_v40, %v545_v42  ;;  %v546_v27 = vmul.f32 0.31830987, %v5617_v52 }
 0x135   : > { %4072 = vmatmul.msk.f32.vlgmr.msra.gmra.mxu3 %vm1385_vm14, %v5514_v5  ;;  %v1129_v8 = vadd.f32 -0.16666667, %v1097_v48  ;;  %v970_v22 = vmul.f32 %v938_v12, %v5606_v18  ;;  %v779_v3 = vsub.f32 %v5540_v53, %v747_v60  ;;  %v1257_v25 = vand.u32 1, %v4288_v43 }
 0x136   : > { %vm4299_vm9 = vcmp.lt.s32.totalorder %v652_v28, 0  ;;  %v4300_v19 = vceil.f32 %v652_v28  ;;  %v4301_v39 = vfloor.f32 %v652_v28  ;;  %vm4244_vm10 = vcmp.lt.s32.totalorder %v641_v49, 0 }
 0x137   : > { %v1161_v31 = vmul.f32 %v1129_v8, %v5560_v59  ;;  %v1002_v36 = vadd.f32 -0.0001984127, %v970_v22  ;;  %v5626_v14 = vsub.f32 %v779_v3, %v811_v50  ;;  %v4245_v24 = vceil.f32 %v641_v49 }
 0x138   : > { %v5628_v41 = vsel %vm4299_vm9, %v4300_v19, %v4301_v39  ;;  %v4246_v5 = vfloor.f32 %v641_v49  ;;  %vm578_vm11 = vcmp.ge.f32.partialorder %v546_v27, 0.0  ;;  %v483_v23 = vmul.f32 %v5519_v2, %v4989_v0 }
 0x139   : > { %v1193_v53 = vmul.f32 %v1161_v31, %v5550_v58  ;;  %v1034_v57 = vmul.f32 %v1002_v36, %v5606_v18  ;;  %v5636_v42 = vmul.f32 %v5626_v14, %v5626_v14  ;;  %v4303_v59 = vcvt.f32.s32 %v5628_v41 }
 0x13a   : > { %v5641_v21 = vsel %vm4244_vm10, %v4245_v24, %v4246_v5  ;;  %v610_v13 = vsel %vm578_vm11, 0.5, %v8294_v1  ;;  %v1258_v34 = vand.u32 1, %v4293_v51  ;;  %v411_v43 = vadd.f32 %v4978_v55, %v359_v63 }
 0x13b   : > { %v1225_v20 = vadd.f32 %v1193_v53, %v5550_v58  ;;  %v1066_v45 = vadd.f32 0.008333334, %v1034_v57  ;;  %v907_v61 = vmul.f32 -2.5052108e-08, %v5636_v42  ;;  %v716_v56 = vcvt.s32.f32 %v4303_v59 }
 0x13c   : > { %v4248_v40 = vcvt.f32.s32 %v5641_v21  ;;  %v642_v37 = vadd.f32 %v610_v13, %v546_v27  ;;  %vm1289_vm12 = vcmp.eq.s32.totalorder %v1257_v25, 1  ;;  %v5655_v28 = vadd.f32 %v483_v23, %v411_v43 }
 0x13d   : > { %v1321_v17 = vsub.f32 0.0, %v1225_v20  ;;  %v1098_v48 = vmul.f32 %v1066_v45, %v5606_v18  ;;  %v939_v12 = vadd.f32 2.7557319e-06, %v907_v61  ;;  %v748_v60 = vmul.f32 3.140625, %v716_v56 }
 0x13e   : > { %v812_v50 = vmul.f32 0.0009676536, %v716_v56  ;;  %v705_v58 = vcvt.s32.f32 %v4248_v40  ;;  %vm1290_vm13 = vcmp.eq.s32.totalorder %v1258_v34, 1  ;;  %v5661_v22 = vand.u32 1, %v4298_v35 }
 0x13f   : > { %v1353_v49 = vsel %vm1289_vm12, %v1321_v17, %v1225_v20  ;;  %v1130_v62 = vadd.f32 -0.16666667, %v1098_v48  ;;  %v971_v51 = vmul.f32 %v939_v12, %v5636_v42  ;;  %v780_v8 = vsub.f32 %v5583_v30, %v748_v60 }
 0x140   : > { %1526 = vmatpush.msrb.mxu0 %v1353_v49  ;;  %v737_v3 = vmul.f32 3.140625, %v705_v58  ;;  %vm4249_vm15 = vcmp.lt.s32.totalorder %v642_v37, 0  ;;  %v360_v27 = vmul.f32 %v5544_v9, %v4948_v38  ;;  %v4250_v36 = vceil.f32 %v642_v37 }
 0x141   : > { %v1162_v19 = vmul.f32 %v1130_v62, %v5606_v18  ;;  %v1003_v39 = vadd.f32 -0.0001984127, %v971_v51  ;;  %v5666_v31 = vsub.f32 %v780_v8, %v812_v50  ;;  %v801_v30 = vmul.f32 0.0009676536, %v705_v58 }
 0x142   : > { %v769_v24 = vsub.f32 %v5585_v16, %v737_v3  ;;  %v4251_v41 = vfloor.f32 %v642_v37  ;;  %v547_v5 = vmul.f32 0.31830987, %v5655_v28  ;;  %v484_v38 = vmul.f32 %v5564_v15, %v4989_v0 }
 0x143   : > { %v1194_v11 = vmul.f32 %v1162_v19, %v5591_v26  ;;  %v1035_v35 = vmul.f32 %v1003_v39, %v5636_v42  ;;  %v5674_v63 = vmul.f32 %v5666_v31, %v5666_v31  ;;  %v412_v16 = vadd.f32 %v4978_v55, %v360_v27 }
 0x144   : > { %v5678_v18 = vsub.f32 %v769_v24, %v801_v30  ;;  %v5680_v53 = vsel %vm4249_vm15, %v4250_v36, %v4251_v41  ;;  %vm579_vm0 = vcmp.ge.f32.partialorder %v547_v5, 0.0  ;;  %v349_v61 = vmul.f32 %v5433_v54, %v4930_v29 }
 0x145   : > { %v1226_v57 = vadd.f32 %v1194_v11, %v5591_v26  ;;  %v1067_v25 = vadd.f32 0.008333334, %v1035_v35  ;;  %v908_v13 = vmul.f32 -2.5052108e-08, %v5674_v63  ;;  %v4253_v23 = vcvt.f32.s32 %v5680_v53 }
 0x146   : > { %v5688_v20 = vmul.f32 %v5678_v18, %v5678_v18  ;;  %v611_v0 = vsel %vm579_vm0, 0.5, %v8294_v1  ;;  %v5691_v45 = vadd.f32 %v484_v38, %v412_v16  ;;  %v5698_v43 = vand.u32 1, %v4303_v59 }
 0x147   : > { %v1322_v56 = vsub.f32 0.0, %v1226_v57  ;;  %v1099_v55 = vmul.f32 %v1067_v25, %v5636_v42  ;;  %v940_v26 = vadd.f32 2.7557319e-06, %v908_v13  ;;  %v706_v37 = vcvt.s32.f32 %v4253_v23 }
 0x148   : > { %v897_v17 = vmul.f32 -2.5052108e-08, %v5688_v20  ;;  %v643_v48 = vadd.f32 %v611_v0, %v547_v5  ;;  %v548_v12 = vmul.f32 0.31830987, %v5691_v45  ;;  %v401_v8 = vadd.f32 %v5015_v46, %v349_v61 }
 0x149   : > { %v1354_v60 = vsel %vm1290_vm13, %v1322_v56, %v1226_v57  ;;  %v1131_v50 = vadd.f32 -0.16666667, %v1099_v55  ;;  %v972_v58 = vmul.f32 %v940_v26, %v5674_v63  ;;  %v738_v49 = vmul.f32 3.140625, %v706_v37 }
 0x14a   : > { %1555 = vmatpush.msrb.mxu1 %v1354_v60  ;;  %v929_v62 = vadd.f32 2.7557319e-06, %v897_v17  ;;  %v802_v51 = vmul.f32 0.0009676536, %v706_v37  ;;  %vm4254_vm1 = vcmp.lt.s32.totalorder %v643_v48, 0  ;;  %v4255_v19 = vceil.f32 %v643_v48 }
 0x14b   : > { %v1163_v59 = vmul.f32 %v1131_v50, %v5636_v42  ;;  %v1004_v3 = vadd.f32 -0.0001984127, %v972_v58  ;;  %v770_v27 = vsub.f32 %v5617_v52, %v738_v49  ;;  %v4256_v34 = vfloor.f32 %v643_v48 }
 0x14c   : > { %v961_v39 = vmul.f32 %v929_v62, %v5688_v20  ;;  %vm580_vm2 = vcmp.ge.f32.partialorder %v548_v12, 0.0  ;;  %v473_v36 = vmul.f32 %v5438_v47, %v5166_v4  ;;  %vm1291_vm4 = vcmp.eq.s32.totalorder %v5661_v22, 1 }
 0x14d   : > { %v1195_v24 = vmul.f32 %v1163_v59, %v5626_v14  ;;  %v1036_v30 = vmul.f32 %v1004_v3, %v5674_v63  ;;  %v5712_v41 = vsub.f32 %v770_v27, %v802_v51  ;;  %v612_v5 = vsel %vm580_vm2, 0.5, %v8294_v1 }
 0x14e   : > { %v993_v42 = vadd.f32 -0.0001984127, %v961_v39  ;;  %v5715_v11 = vsel %vm4254_vm1, %v4255_v19, %v4256_v34  ;;  %v644_v52 = vadd.f32 %v612_v5, %v548_v12  ;;  %v5717_v35 = vadd.f32 %v473_v36, %v401_v8 }
 0x14f   : > { %v1227_v38 = vadd.f32 %v1195_v24, %v5626_v14  ;;  %v1068_v16 = vadd.f32 0.008333334, %v1036_v30  ;;  %v5722_v57 = vmul.f32 %v5712_v41, %v5712_v41  ;;  %v4258_v25 = vcvt.f32.s32 %v5715_v11 }
 0x150   : > { %v1025_v13 = vmul.f32 %v993_v42, %v5688_v20  ;;  %vm4259_vm3 = vcmp.lt.s32.totalorder %v644_v52, 0  ;;  %v4260_v0 = vceil.f32 %v644_v52  ;;  %v4261_v61 = vfloor.f32 %v644_v52 }
 0x151   : > { %v1323_v56 = vsub.f32 0.0, %v1227_v38  ;;  %v1100_v55 = vmul.f32 %v1068_v16, %v5674_v63  ;;  %v898_v26 = vmul.f32 -2.5052108e-08, %v5722_v57  ;;  %v707_v14 = vcvt.s32.f32 %v4258_v25 }
 0x152   : > { %v1057_v37 = vadd.f32 0.008333334, %v1025_v13  ;;  %v5731_v17 = vsel %vm4259_vm3, %v4260_v0, %v4261_v61  ;;  %v537_v48 = vmul.f32 0.31830987, %v5717_v35  ;;  %vm1292_vm5 = vcmp.eq.s32.totalorder %v5698_v43, 1 }
 0x153   : > { %v1355_v12 = vsel %vm1291_vm4, %v1323_v56, %v1227_v38  ;;  %v1132_v60 = vadd.f32 -0.16666667, %v1100_v55  ;;  %v930_v50 = vadd.f32 2.7557319e-06, %v898_v26  ;;  %v739_v58 = vmul.f32 3.140625, %v707_v14  ;;  %v1364_v38 = vld [vmem:[%s8278_s4 + $0x18] sm:$0xff] }
 0x154   : > { %1584 = vmatpush.msrb.mxu2 %v1355_v12  ;;  %v1089_v49 = vmul.f32 %v1057_v37, %v5688_v20  ;;  %v803_v62 = vmul.f32 0.0009676536, %v707_v14  ;;  %v4263_v51 = vcvt.f32.s32 %v5731_v17  ;;  %vm569_vm6 = vcmp.ge.f32.partialorder %v537_v48, 0.0  ;;  %1382 = vperm.xlu1 %4713, %v1364_v38  }
 0x155   : > { %v1164_v8 = vmul.f32 %v1132_v60, %v5674_v63  ;;  %v962_v22 = vmul.f32 %v930_v50, %v5722_v57  ;;  %v771_v59 = vsub.f32 %v5655_v28, %v739_v58  ;;  %v1249_v27 = vand.u32 1, %v4248_v40 }
 0x156   : > { %v1121_v3 = vadd.f32 -0.16666667, %v1089_v49  ;;  %v708_v19 = vcvt.s32.f32 %v4263_v51  ;;  %v601_v39 = vsel %vm569_vm6, 0.5, %v8294_v1  ;;  %v5751_v28 = vand.u32 1, %v4253_v23 }
 0x157   : > { %v1196_v34 = vmul.f32 %v1164_v8, %v5666_v31  ;;  %v994_v36 = vadd.f32 -0.0001984127, %v962_v22  ;;  %v5746_v24 = vsub.f32 %v771_v59, %v803_v62  ;;  %v633_v63 = vadd.f32 %v601_v39, %v537_v48 }
 0x158   : > { %v1153_v30 = vmul.f32 %v1121_v3, %v5688_v20  ;;  %v740_v5 = vmul.f32 3.140625, %v708_v19  ;;  %v804_v21 = vmul.f32 0.0009676536, %v708_v19  ;;  %v350_v61 = vmul.f32 %v5450_v32, %v4930_v29 }
 0x159   : > { %v1228_v40 = vadd.f32 %v1196_v34, %v5666_v31  ;;  %v1026_v42 = vmul.f32 %v994_v36, %v5722_v57  ;;  %v5757_v52 = vmul.f32 %v5746_v24, %v5746_v24  ;;  %vm4204_vm7 = vcmp.lt.s32.totalorder %v633_v63, 0 }
 0x15a   : > { %v1185_v20 = vmul.f32 %v1153_v30, %v5678_v18  ;;  %v772_v53 = vsub.f32 %v5691_v45, %v740_v5  ;;  %v4205_v23 = vceil.f32 %v633_v63  ;;  %v4206_v16 = vfloor.f32 %v633_v63 }
 0x15b   : > { %v1324_v13 = vsub.f32 0.0, %v1228_v40  ;;  %v1058_v31 = vadd.f32 0.008333334, %v1026_v42  ;;  %v899_v0 = vmul.f32 -2.5052108e-08, %v5757_v52  ;;  %v474_v14 = vmul.f32 %v5480_v33, %v5166_v4 }
 0x15c   : > { %v1217_v56 = vadd.f32 %v1185_v20, %v5678_v18  ;;  %v5768_v55 = vsub.f32 %v772_v53, %v804_v21  ;;  %v5770_v26 = vsel %vm4204_vm7, %v4205_v23, %v4206_v16  ;;  %v402_v50 = vadd.f32 %v5015_v46, %v350_v61 }
 0x15d   : > { %v1356_v45 = vsel %vm1292_vm5, %v1324_v13, %v1228_v40  ;;  %v1090_v37 = vmul.f32 %v1058_v31, %v5722_v57  ;;  %v931_v48 = vadd.f32 2.7557319e-06, %v899_v0  ;;  %v4208_v12 = vcvt.f32.s32 %v5770_v26 }
 0x15e   : > { %1613 = vmatpush.msrb.mxu3 %v1356_v45  ;;  %v1313_v60 = vsub.f32 0.0, %v1217_v56  ;;  %v5780_v18 = vmul.f32 %v5768_v55, %v5768_v55  ;;  %v351_v58 = vmul.f32 %v5508_v6, %v4930_v29  ;;  %vm1281_vm8 = vcmp.eq.s32.totalorder %v1249_v27, 1 }
 0x15f   : > { %v1122_v49 = vadd.f32 -0.16666667, %v1090_v37  ;;  %v963_v43 = vmul.f32 %v931_v48, %v5757_v52  ;;  %v697_v62 = vcvt.s32.f32 %v4208_v12  ;;  %vm1282_vm9 = vcmp.eq.s32.totalorder %v5751_v28, 1 }
 0x160   : > { %v1345_v8 = vsel %vm1281_vm8, %v1313_v60, %v1217_v56  ;;  %v5791_v22 = vand.u32 1, %v4258_v25  ;;  %v900_v59 = vmul.f32 -2.5052108e-08, %v5780_v18  ;;  %v5794_v3 = vadd.f32 %v474_v14, %v402_v50 }
 0x161   : > { %1527 = vmatpush.msrb.mxu0 %v1345_v8  ;;  %v1154_v27 = vmul.f32 %v1122_v49, %v5722_v57  ;;  %v995_v19 = vadd.f32 -0.0001984127, %v963_v43  ;;  %v729_v39 = vmul.f32 3.140625, %v697_v62  ;;  %v403_v34 = vadd.f32 %v5015_v46, %v351_v58 }
 0x162   : > { %v932_v36 = vadd.f32 2.7557319e-06, %v900_v59  ;;  %v793_v63 = vmul.f32 0.0009676536, %v697_v62  ;;  %v538_v30 = vmul.f32 0.31830987, %v5794_v3  ;;  %v475_v11 = vmul.f32 %v5519_v2, %v5166_v4 }
 0x163   : > { %v1186_v25 = vmul.f32 %v1154_v27, %v5712_v41  ;;  %v1027_v5 = vmul.f32 %v995_v19, %v5757_v52  ;;  %v761_v21 = vsub.f32 %v5717_v35, %v729_v39  ;;  %v352_v57 = vmul.f32 %v5544_v9, %v4930_v29 }
 0x164   : > { %v964_v40 = vmul.f32 %v932_v36, %v5780_v18  ;;  %vm570_vm10 = vcmp.ge.f32.partialorder %v538_v30, 0.0  ;;  %v5807_v42 = vadd.f32 %v475_v11, %v403_v34  ;;  %v476_v38 = vmul.f32 %v5564_v15, %v5166_v4 }
 0x165   : > { %v1218_v20 = vadd.f32 %v1186_v25, %v5712_v41  ;;  %v1059_v53 = vadd.f32 0.008333334, %v1027_v5  ;;  %v5812_v23 = vsub.f32 %v761_v21, %v793_v63  ;;  %v602_v16 = vsel %vm570_vm10, 0.5, %v8294_v1 }
 0x166   : > { %v996_v13 = vadd.f32 -0.0001984127, %v964_v40  ;;  %v634_v35 = vadd.f32 %v602_v16, %v538_v30  ;;  %v539_v31 = vmul.f32 0.31830987, %v5807_v42  ;;  %v404_v29 = vadd.f32 %v5015_v46, %v352_v57 }
 0x167   : > { %v1314_v0 = vsub.f32 0.0, %v1218_v20  ;;  %v1091_v61 = vmul.f32 %v1059_v53, %v5757_v52  ;;  %v5820_v56 = vmul.f32 %v5812_v23, %v5812_v23  ;;  %v341_v4 = vmul.f32 %v5433_v54, %v5120_v44 }
 0x168   : > { %v1028_v41 = vmul.f32 %v996_v13, %v5780_v18  ;;  %vm4209_vm11 = vcmp.lt.s32.totalorder %v634_v35, 0  ;;  %v4210_v14 = vceil.f32 %v634_v35  ;;  %v4211_v45 = vfloor.f32 %v634_v35 }
 0x169   : > { %v1346_v37 = vsel %vm1282_vm9, %v1314_v0, %v1218_v20  ;;  %v1123_v48 = vadd.f32 -0.16666667, %v1091_v61  ;;  %v889_v46 = vmul.f32 -2.5052108e-08, %v5820_v56  ;;  %vm571_vm12 = vcmp.ge.f32.partialorder %v539_v31, 0.0 }
 0x16a   : > { %1556 = vmatpush.msrb.mxu1 %v1346_v37  ;;  %v1060_v60 = vadd.f32 0.008333334, %v1028_v41  ;;  %v5828_v50 = vsel %vm4209_vm11, %v4210_v14, %v4211_v45  ;;  %v603_v58 = vsel %vm571_vm12, 0.5, %v8294_v1  ;;  %v5831_v49 = vadd.f32 %v476_v38, %v404_v29 }
 0x16b   : > { %v1155_v54 = vmul.f32 %v1123_v48, %v5757_v52  ;;  %v921_v43 = vadd.f32 2.7557319e-06, %v889_v46  ;;  %v4213_v62 = vcvt.f32.s32 %v5828_v50  ;;  %v635_v8 = vadd.f32 %v603_v58, %v539_v31 }
 0x16c   : > { %vm1283_vm13 = vcmp.eq.s32.totalorder %v5791_v22, 1  ;;  %v1092_v28 = vmul.f32 %v1060_v60, %v5780_v18  ;;  %v1252_v59 = vand.u32 1, %v4263_v51  ;;  %v540_v27 = vmul.f32 0.31830987, %v5831_v49 }
 0x16d   : > { %v1187_v19 = vmul.f32 %v1155_v54, %v5746_v24  ;;  %v953_v39 = vmul.f32 %v921_v43, %v5820_v56  ;;  %v698_v52 = vcvt.s32.f32 %v4213_v62  ;;  %v465_v34 = vmul.f32 %v5438_v47, %v5274_v10 }
 0x16e   : > { %v1124_v36 = vadd.f32 -0.16666667, %v1092_v28  ;;  %vm4214_vm15 = vcmp.lt.s32.totalorder %v635_v8, 0  ;;  %v4215_v63 = vceil.f32 %v635_v8  ;;  %v4216_v30 = vfloor.f32 %v635_v8 }
 0x16f   : > { %v1219_v11 = vadd.f32 %v1187_v19, %v5746_v24  ;;  %v985_v17 = vadd.f32 -0.0001984127, %v953_v39  ;;  %v730_v51 = vmul.f32 3.140625, %v698_v52  ;;  %v393_v25 = vadd.f32 %v5294_v7, %v341_v4 }
 0x170   : > { %v1156_v5 = vmul.f32 %v1124_v36, %v5780_v18  ;;  %v794_v21 = vmul.f32 0.0009676536, %v698_v52  ;;  %v5849_v57 = vsel %vm4214_vm15, %v4215_v63, %v4216_v30  ;;  %vm572_vm0 = vcmp.ge.f32.partialorder %v540_v27, 0.0 }
 0x171   : > { %v1315_v40 = vsub.f32 0.0, %v1219_v11  ;;  %v1017_v38 = vmul.f32 %v985_v17, %v5820_v56  ;;  %v762_v47 = vsub.f32 %v5794_v3, %v730_v51  ;;  %v4218_v20 = vcvt.f32.s32 %v5849_v57 }
 0x172   : > { %v1188_v53 = vmul.f32 %v1156_v5, %v5768_v55  ;;  %vm1284_vm1 = vcmp.eq.s32.totalorder %v1252_v59, 1  ;;  %v604_v24 = vsel %vm572_vm0, 0.5, %v8294_v1  ;;  %v5856_v16 = vadd.f32 %v465_v34, %v393_v25 }
 0x173   : > { %v1347_v18 = vsel %vm1283_vm13, %v1315_v40, %v1219_v11  ;;  %v1049_v13 = vadd.f32 0.008333334, %v1017_v38  ;;  %v5860_v35 = vsub.f32 %v762_v47, %v794_v21  ;;  %v699_v31 = vcvt.s32.f32 %v4218_v20 }
 0x174   : > { %1585 = vmatpush.msrb.mxu2 %v1347_v18  ;;  %v1220_v3 = vadd.f32 %v1188_v53, %v5768_v55  ;;  %v636_v29 = vadd.f32 %v604_v24, %v540_v27  ;;  %v529_v0 = vmul.f32 0.31830987, %v5856_v16  ;;  %v342_v61 = vmul.f32 %v5450_v32, %v5120_v44 }
 0x175   : > { %v1081_v4 = vmul.f32 %v1049_v13, %v5820_v56  ;;  %v1241_v22 = vand.u32 1, %v4208_v12  ;;  %v5873_v41 = vmul.f32 %v5860_v35, %v5860_v35  ;;  %v731_v14 = vmul.f32 3.140625, %v699_v31 }
 0x176   : > { %v1316_v45 = vsub.f32 0.0, %v1220_v3  ;;  %v795_v37 = vmul.f32 0.0009676536, %v699_v31  ;;  %vm4219_vm2 = vcmp.lt.s32.totalorder %v636_v29, 0  ;;  %v4220_v55 = vceil.f32 %v636_v29 }
 0x177   : > { %v1113_v48 = vadd.f32 -0.16666667, %v1081_v4  ;;  %v890_v46 = vmul.f32 -2.5052108e-08, %v5873_v41  ;;  %v763_v60 = vsub.f32 %v5807_v42, %v731_v14  ;;  %v4221_v32 = vfloor.f32 %v636_v29 }
 0x178   : > { %v1348_v58 = vsel %vm1284_vm1, %v1316_v45, %v1220_v3  ;;  %vm561_vm3 = vcmp.ge.f32.partialorder %v529_v0, 0.0  ;;  %v394_v26 = vadd.f32 %v5294_v7, %v342_v61  ;;  %v466_v12 = vmul.f32 %v5480_v33, %v5274_v10 }
 0x179   : > { %1614 = vmatpush.msrb.mxu3 %v1348_v58  ;;  %v1145_v54 = vmul.f32 %v1113_v48, %v5820_v56  ;;  %v922_v43 = vadd.f32 2.7557319e-06, %v890_v46  ;;  %v5882_v8 = vsub.f32 %v763_v60, %v795_v37  ;;  %v5884_v28 = vsel %vm4219_vm2, %v4220_v55, %v4221_v32 }
 0x17a   : > { %v4223_v27 = vcvt.f32.s32 %v5884_v28  ;;  %v593_v42 = vsel %vm561_vm3, 0.5, %v8294_v1  ;;  %v5888_v59 = vadd.f32 %v466_v12, %v394_v26  ;;  %v343_v19 = vmul.f32 %v5508_v6, %v5120_v44 }
 0x17b   : > { %v1177_v39 = vmul.f32 %v1145_v54, %v5812_v23  ;;  %v954_v33 = vmul.f32 %v922_v43, %v5873_v41  ;;  %v5896_v56 = vmul.f32 %v5882_v8, %v5882_v8  ;;  %v625_v52 = vadd.f32 %v593_v42, %v529_v0 }
 0x17c   : > { %vm1273_vm4 = vcmp.eq.s32.totalorder %v1241_v22, 1  ;;  %v700_v34 = vcvt.s32.f32 %v4223_v27  ;;  %v530_v36 = vmul.f32 0.31830987, %v5888_v59  ;;  %v395_v11 = vadd.f32 %v5294_v7, %v343_v19 }
 0x17d   : > { %v1209_v63 = vadd.f32 %v1177_v39, %v5812_v23  ;;  %v986_v30 = vadd.f32 -0.0001984127, %v954_v33  ;;  %v891_v6 = vmul.f32 -2.5052108e-08, %v5896_v56  ;;  %vm4164_vm5 = vcmp.lt.s32.totalorder %v625_v52, 0 }
 0x17e   : > { %v732_v17 = vmul.f32 3.140625, %v700_v34  ;;  %v796_v51 = vmul.f32 0.0009676536, %v700_v34  ;;  %v4165_v25 = vceil.f32 %v625_v52  ;;  %v4166_v38 = vfloor.f32 %v625_v52 }
 0x17f   : > { %v1305_v5 = vsub.f32 0.0, %v1209_v63  ;;  %v1018_v21 = vmul.f32 %v986_v30, %v5873_v41  ;;  %v923_v40 = vadd.f32 2.7557319e-06, %v891_v6  ;;  %vm562_vm6 = vcmp.ge.f32.partialorder %v530_v36, 0.0 }
 0x180   : > { %v764_v47 = vsub.f32 %v5831_v49, %v732_v17  ;;  %v467_v23 = vmul.f32 %v5519_v2, %v5274_v10  ;;  %v344_v53 = vmul.f32 %v5544_v9, %v5120_v44  ;;  %v5912_v31 = vsel %vm4164_vm5, %v4165_v25, %v4166_v38 }
 0x181   : > { %v1337_v24 = vsel %vm1273_vm4, %v1305_v5, %v1209_v63  ;;  %v1050_v18 = vadd.f32 0.008333334, %v1018_v21  ;;  %v955_v13 = vmul.f32 %v923_v40, %v5896_v56  ;;  %v4168_v29 = vcvt.f32.s32 %v5912_v31 }
 0x182   : > { %1528 = vmatpush.msrb.mxu0 %v1337_v24  ;;  %v5914_v3 = vsub.f32 %v764_v47, %v796_v51  ;;  %v594_v49 = vsel %vm562_vm6, 0.5, %v8294_v1  ;;  %v5918_v0 = vadd.f32 %v467_v23, %v395_v11  ;;  %v1242_v9 = vand.u32 1, %v4213_v62 }
 0x183   : > { %v1082_v2 = vmul.f32 %v1050_v18, %v5873_v41  ;;  %v987_v61 = vadd.f32 -0.0001984127, %v955_v13  ;;  %v626_v44 = vadd.f32 %v594_v49, %v530_v36  ;;  %v689_v22 = vcvt.s32.f32 %v4168_v29 }
 0x184   : > { %v5925_v4 = vmul.f32 %v5914_v3, %v5914_v3  ;;  %v531_v14 = vmul.f32 0.31830987, %v5918_v0  ;;  %v396_v48 = vadd.f32 %v5294_v7, %v344_v53  ;;  %v468_v43 = vmul.f32 %v5564_v15, %v5274_v10 }
 0x185   : > { %v1114_v45 = vadd.f32 -0.16666667, %v1082_v2  ;;  %v1019_v37 = vmul.f32 %v987_v61, %v5896_v56  ;;  %v4170_v55 = vceil.f32 %v626_v44  ;;  %v721_v60 = vmul.f32 3.140625, %v689_v22 }
 0x186   : > { %v892_v46 = vmul.f32 -2.5052108e-08, %v5925_v4  ;;  %v785_v50 = vmul.f32 0.0009676536, %v689_v22  ;;  %vm4169_vm7 = vcmp.lt.s32.totalorder %v626_v44, 0  ;;  %v4171_v58 = vfloor.f32 %v626_v44 }
 0x187   : > { %v1146_v62 = vmul.f32 %v1114_v45, %v5873_v41  ;;  %v1051_v32 = vadd.f32 0.008333334, %v1019_v37  ;;  %vm563_vm8 = vcmp.ge.f32.partialorder %v531_v14, 0.0  ;;  %v753_v12 = vsub.f32 %v5856_v16, %v721_v60 }
 0x188   : > { %v924_v26 = vadd.f32 2.7557319e-06, %v892_v46  ;;  %v595_v54 = vsel %vm563_vm8, 0.5, %v8294_v1  ;;  %v5940_v19 = vsel %vm4169_vm7, %v4170_v55, %v4171_v58  ;;  %v5946_v34 = vadd.f32 %v468_v43, %v396_v48 }
 0x189   : > { %v1178_v7 = vmul.f32 %v1146_v62, %v5860_v35  ;;  %v1083_v42 = vmul.f32 %v1051_v32, %v5896_v56  ;;  %v627_v39 = vadd.f32 %v595_v54, %v531_v14  ;;  %v5943_v33 = vsub.f32 %v753_v12, %v785_v50 }
 0x18a   : > { %v956_v41 = vmul.f32 %v924_v26, %v5925_v4  ;;  %v4173_v52 = vcvt.f32.s32 %v5940_v19  ;;  %vm1274_vm9 = vcmp.eq.s32.totalorder %v1242_v9, 1  ;;  %v532_v51 = vmul.f32 0.31830987, %v5946_v34 }
 0x18b   : > { %v1210_v16 = vadd.f32 %v1178_v7, %v5860_v35  ;;  %v1115_v36 = vadd.f32 -0.16666667, %v1083_v42  ;;  %v4175_v10 = vceil.f32 %v627_v39  ;;  %v5951_v63 = vmul.f32 %v5943_v33, %v5943_v33 }
 0x18c   : > { %v988_v15 = vadd.f32 -0.0001984127, %v956_v41  ;;  %v690_v30 = vcvt.s32.f32 %v4173_v52  ;;  %vm4174_vm10 = vcmp.lt.s32.totalorder %v627_v39, 0  ;;  %v4176_v17 = vfloor.f32 %v627_v39 }
 0x18d   : > { %v1306_v6 = vsub.f32 0.0, %v1210_v16  ;;  %v1147_v11 = vmul.f32 %v1115_v36, %v5896_v56  ;;  %v1243_v35 = vand.u32 1, %v4218_v20  ;;  %v881_v5 = vmul.f32 -2.5052108e-08, %v5951_v63 }
 0x18e   : > { %v1020_v25 = vmul.f32 %v988_v15, %v5925_v4  ;;  %v722_v21 = vmul.f32 3.140625, %v690_v30  ;;  %v786_v47 = vmul.f32 0.0009676536, %v690_v30  ;;  %v5962_v23 = vsel %vm4174_vm10, %v4175_v10, %v4176_v17 }
 0x18f   : > { %v1338_v40 = vsel %vm1274_vm9, %v1306_v6, %v1210_v16  ;;  %v1179_v38 = vmul.f32 %v1147_v11, %v5882_v8  ;;  %v913_v56 = vadd.f32 2.7557319e-06, %v881_v5  ;;  %v4178_v18 = vcvt.f32.s32 %v5962_v23 }
 0x190   : > { %1557 = vmatpush.msrb.mxu1 %v1338_v40  ;;  %v1052_v53 = vadd.f32 0.008333334, %v1020_v25  ;;  %v754_v24 = vsub.f32 %v5888_v59, %v722_v21  ;;  %vm564_vm11 = vcmp.ge.f32.partialorder %v532_v51, 0.0  ;;  %vm1275_vm12 = vcmp.eq.s32.totalorder %v1243_v35, 1  ;;  %v1361_v35 = vld [vmem:[%s8278_s4] sm:$0xff]  ;;  %v1362_v40 = vld [vmem:[%s8278_s4 + $0x8] sm:$0xff] }
 0x191   : > { %v1211_v57 = vadd.f32 %v1179_v38, %v5882_v8  ;;  %v945_v13 = vmul.f32 %v913_v56, %v5951_v63  ;;  %v691_v2 = vcvt.s32.f32 %v4178_v18  ;;  %v596_v44 = vsel %vm564_vm11, 0.5, %v8294_v1  ;;  %1367 = vperm.xlu1 %4713, %v1361_v35   ;;  %1372 = vperm.xlu0 %4714, %v1362_v40  }
 0x192   : > { %v1084_v20 = vmul.f32 %v1052_v53, %v5925_v4  ;;  %v5969_v49 = vsub.f32 %v754_v24, %v786_v47  ;;  %v628_v37 = vadd.f32 %v596_v44, %v532_v51  ;;  %v1244_v54 = vand.u32 1, %v4223_v27  ;;  %v5998_v51 = vld [vmem:[%s8277_s3 + $0x8] sm:$0xff]  ;;  %v4098_v44 = vld [vmem:[%s8278_s4 + $0x30] sm:$0xff] }
 0x193   : > { %v1307_v61 = vsub.f32 0.0, %v1211_v57  ;;  %v977_v59 = vadd.f32 -0.0001984127, %v945_v13  ;;  %v723_v8 = vmul.f32 3.140625, %v691_v2  ;;  %v787_v45 = vmul.f32 0.0009676536, %v691_v2  ;;  %4061 = vmatmul.msk.f32.gmra.mxu0 %vm1385_vm14, %v5998_v51  ;;  %4065 = vmatmul.msk.f32.gmra.mxu1 %vm1385_vm14, %v5998_v51 }
 0x194   : > { %v1116_v9 = vadd.f32 -0.16666667, %v1084_v20  ;;  %v850_v22 = vmul.f32 %v5969_v49, %v5969_v49  ;;  %vm4179_vm13 = vcmp.lt.s32.totalorder %v628_v37, 0  ;;  %v4180_v50 = vceil.f32 %v628_v37  ;;  %4069 = vmatmul.msk.f32.gmra.mxu2 %vm1385_vm14, %v5998_v51  ;;  %4073 = vmatmul.msk.f32.gmra.mxu3 %vm1385_vm14, %v5998_v51 }
 0x195   : > { %v1339_v14 = vsel %vm1275_vm12, %v1307_v61, %v1211_v57  ;;  %v1009_v48 = vmul.f32 %v977_v59, %v5951_v63  ;;  %v755_v60 = vsub.f32 %v5918_v0, %v723_v8  ;;  %v4181_v62 = vfloor.f32 %v628_v37 }
 0x196   : > { %1586 = vmatpush.msrb.mxu2 %v1339_v14  ;;  %v1148_v55 = vmul.f32 %v1116_v9, %v5925_v4  ;;  %v882_v46 = vmul.f32 -2.5052108e-08, %v850_v22  ;;  %vm1276_vm15 = vcmp.eq.s32.totalorder %v1244_v54, 1  ;;  %v1233_v25 = vand.u32 1, %v4168_v29 }
 0x197   : > { %v1041_v58 = vadd.f32 0.008333334, %v1009_v48  ;;  %v5980_v12 = vsub.f32 %v755_v60, %v787_v45  ;;  %v5984_v43 = vsel %vm4179_vm13, %v4180_v50, %v4181_v62  ;;  %v1234_v9 = vand.u32 1, %v4173_v52  ;;  %v1360_v48 = vld [vmem:[%s8277_s3 + $0x18] sm:$0xff]  ;;  %v3569_v50 = vld [vmem:[#allocation2] sm:$0x1] }
 0x198   : > { %v1180_v32 = vmul.f32 %v1148_v55, %v5914_v3  ;;  %v914_v26 = vadd.f32 2.7557319e-06, %v882_v46  ;;  %v4183_v39 = vcvt.f32.s32 %v5984_v43  ;;  %vm1265_vm0 = vcmp.eq.s32.totalorder %v1233_v25, 1 }
 0x199   : > { %v1073_v7 = vmul.f32 %v1041_v58, %v5951_v63  ;;  %v851_v0 = vmul.f32 %v5980_v12, %v5980_v12  ;;  %2484 = vperm.xlu1 %4713, %v4098_v44   ;;  %vm1266_vm1 = vcmp.eq.s32.totalorder %v1234_v9, 1  ;;  %v1235_v60 = vand.u32 1, %v4178_v18 }
 0x19a   : > { %v1212_v4 = vadd.f32 %v1180_v32, %v5914_v3  ;;  %v946_v42 = vmul.f32 %v914_v26, %v850_v22  ;;  %v692_v28 = vcvt.s32.f32 %v4183_v39 }
 0x19b   : > { %v1105_v16 = vadd.f32 -0.16666667, %v1073_v7  ;;  %v883_v10 = vmul.f32 -2.5052108e-08, %v851_v0  ;;  %vm1267_vm2 = vcmp.eq.s32.totalorder %v1235_v60, 1  ;;  %v4096_v7 = vld [vmem:[%s8278_s4 + $0x20] sm:$0xff] }
 0x19c   : > { %v1308_v41 = vsub.f32 0.0, %v1212_v4  ;;  %v978_v36 = vadd.f32 -0.0001984127, %v946_v42  ;;  %v724_v6 = vmul.f32 3.140625, %v692_v28  ;;  %v788_v21 = vmul.f32 0.0009676536, %v692_v28  ;;  %2474 = vperm.xlu0 %4714, %v4096_v7  }
 0x19d   : > { %v1137_v15 = vmul.f32 %v1105_v16, %v5951_v63  ;;  %v915_v30 = vadd.f32 2.7557319e-06, %v883_v10  ;;  %v1236_v42 = vand.u32 1, %v4183_v39  ;;  %v1415_v39 = vpop.f32.mrf.mxu0 }
 0x19e   : > { %v1340_v27 = vsel %vm1276_vm15, %v1308_v41, %v1212_v4  ;;  %v1010_v3 = vmul.f32 %v978_v36, %v850_v22  ;;  %v756_v5 = vsub.f32 %v5946_v34, %v724_v6 }
 0x19f   : > { %1615 = vmatpush.msrb.mxu3 %v1340_v27  ;;  %v1169_v11 = vmul.f32 %v1137_v15, %v5943_v33  ;;  %v947_v63 = vmul.f32 %v915_v30, %v851_v0  ;;  %vm1268_vm3 = vcmp.eq.s32.totalorder %v1236_v42, 1 }
 0x1a0   : > { %v1042_v17 = vadd.f32 0.008333334, %v1010_v3  ;;  %v820_v29 = vsub.f32 %v756_v5, %v788_v21  ;;  %v1444_v36 = vpop.f32.mrf.mxu1 }
 0x1a1   : > { %v1201_v38 = vadd.f32 %v1169_v11, %v5943_v33  ;;  %v979_v31 = vadd.f32 -0.0001984127, %v947_v63  ;;  %v6021_v33 = vld [vmem:[%s8277_s3 + $0x10] sm:$0xff]  ;;  %3572 = vperm.xlu1 %4713, %v3569_v50  }
 0x1a2   : > { %v1074_v47 = vmul.f32 %v1042_v17, %v850_v22  ;;  %v852_v24 = vmul.f32 %v820_v29, %v820_v29  ;;  %4062 = vmatmul.msk.f32.gmra.mxu0 %vm1385_vm14, %v6021_v33  ;;  %4066 = vmatmul.msk.f32.gmra.mxu1 %vm1385_vm14, %v6021_v33 }
 0x1a3   : > { %v1297_v34 = vsub.f32 0.0, %v1201_v38  ;;  %v1011_v56 = vmul.f32 %v979_v31, %v851_v0  ;;  %4070 = vmatmul.msk.f32.gmra.mxu2 %vm1385_vm14, %v6021_v33  ;;  %4074 = vmatmul.msk.f32.gmra.mxu3 %vm1385_vm14, %v6021_v33 }
 0x1a4   : > { %v1106_v53 = vadd.f32 -0.16666667, %v1074_v47  ;;  %v884_v2 = vmul.f32 -2.5052108e-08, %v852_v24 }
 0x1a5   : > { %v1329_v57 = vsel %vm1265_vm0, %v1297_v34, %v1201_v38  ;;  %v1043_v13 = vadd.f32 0.008333334, %v1011_v56 }
 0x1a6   : > { %v1138_v20 = vmul.f32 %v1106_v53, %v850_v22  ;;  %1529 = vmatpush.msrb.mxu0 %v1329_v57  ;;  %v916_v8 = vadd.f32 2.7557319e-06, %v884_v2 }
 0x1a7   : > { %v1075_v59 = vmul.f32 %v1043_v13, %v851_v0 }
 0x1a8   : > { %v1170_v61 = vmul.f32 %v1138_v20, %v5969_v49  ;;  %v948_v45 = vmul.f32 %v916_v8, %v852_v24 }
 0x1a9   : > { %v1107_v14 = vadd.f32 -0.16666667, %v1075_v59 }
 0x1aa   : > { %v1202_v22 = vadd.f32 %v1170_v61, %v5969_v49  ;;  %v980_v37 = vadd.f32 -0.0001984127, %v948_v45  ;;  %4063 = vmatmul.msk.f32.gmra.mxu0 %vm1385_vm14, %v1360_v48  ;;  %4067 = vmatmul.msk.f32.gmra.mxu1 %vm1385_vm14, %v1360_v48 }
 0x1ab   : > { %v1139_v52 = vmul.f32 %v1107_v14, %v851_v0  ;;  %4071 = vmatmul.msk.f32.gmra.mxu2 %vm1385_vm14, %v1360_v48  ;;  %4075 = vmatmul.msk.f32.gmra.mxu3 %vm1385_vm14, %v1360_v48 }
 0x1ac   : > { %v1298_v19 = vsub.f32 0.0, %v1202_v22  ;;  %v1012_v46 = vmul.f32 %v980_v37, %v852_v24 }
 0x1ad   : > { %v1171_v49 = vmul.f32 %v1139_v52, %v5980_v12 }
 0x1ae   : > { %v1330_v55 = vsel %vm1266_vm1, %v1298_v19, %v1202_v22  ;;  %v1044_v32 = vadd.f32 0.008333334, %v1012_v46 }
 0x1af   : > { %1558 = vmatpush.msrb.mxu1 %v1330_v55  ;;  %v1203_v62 = vadd.f32 %v1171_v49, %v5980_v12  ;;  %v4715_v12 = vld [vmem:[%s8277_s3] sm:$0xff] }
 0x1b0   : > { %v1076_v26 = vmul.f32 %v1044_v32, %v852_v24 }
 0x1b1   : > { %v1299_v58 = vsub.f32 0.0, %v1203_v62 }
 0x1b2   : > { %v1108_v4 = vadd.f32 -0.16666667, %v1076_v26  ;;  %4076 = vmatmul.msk.f32.vlgmr.msrb.gmra.mxu0 %vm1385_vm14, %v4715_v12  ;;  %4080 = vmatmul.msk.f32.vlgmr.msrb.gmra.mxu1 %vm1385_vm14, %v4715_v12  ;;  %v1473_v10 = vpop.f32.mrf.mxu2 }
 0x1b3   : > { %v1331_v54 = vsel %vm1267_vm2, %v1299_v58, %v1203_v62 }
 0x1b4   : > { %1587 = vmatpush.msrb.mxu2 %v1331_v54  ;;  %v1140_v23 = vmul.f32 %v1108_v4, %v852_v24 }
 0x1b5   : > { %4084 = vmatmul.msk.f32.vlgmr.msrb.gmra.mxu2 %vm1385_vm14, %v4715_v12 }
 0x1b6   : > { %v1172_v18 = vmul.f32 %v1140_v23, %v820_v29 }
 0x1b8   : > { %v1204_v0 = vadd.f32 %v1172_v18, %v820_v29  ;;  %v1502_v28 = vpop.f32.mrf.mxu3 }
 0x1ba   : > { %v1300_v41 = vsub.f32 0.0, %v1204_v0  ;;  %4077 = vmatmul.msk.f32.gmra.mxu0 %vm1385_vm14, %v5998_v51  ;;  %4081 = vmatmul.msk.f32.gmra.mxu1 %vm1385_vm14, %v5998_v51 }
 0x1bc   : > { %v1332_v16 = vsel %vm1268_vm3, %v1300_v41, %v1204_v0 }
 0x1bd   : > { %1616 = vmatpush.msrb.mxu3 %v1332_v16  ;;  %4085 = vmatmul.msk.f32.gmra.mxu2 %vm1385_vm14, %v5998_v51 }
 0x1be   : > { %4088 = vmatmul.msk.f32.vlgmr.msrb.gmra.mxu3 %vm1385_vm14, %v4715_v12 }
 0x1c2   : > { %4078 = vmatmul.msk.f32.gmra.mxu0 %vm1385_vm14, %v6021_v33  ;;  %4082 = vmatmul.msk.f32.gmra.mxu1 %vm1385_vm14, %v6021_v33 }
 0x1c5   : > { %4086 = vmatmul.msk.f32.gmra.mxu2 %vm1385_vm14, %v6021_v33 }
 0x1c6   : > { %4089 = vmatmul.msk.f32.gmra.mxu3 %vm1385_vm14, %v5998_v51  ;;  %v6081_v43 = vpop.permute.xlu1 %1382 }
 0x1ca   : > { %4079 = vmatmul.msk.f32.gmra.mxu0 %vm1385_vm14, %v1360_v48  ;;  %4083 = vmatmul.msk.f32.gmra.mxu1 %vm1385_vm14, %v1360_v48 }
 0x1cd   : > { %4087 = vmatmul.msk.f32.gmra.mxu2 %vm1385_vm14, %v1360_v48 }
 0x1ce   : > { %4090 = vmatmul.msk.f32.gmra.mxu3 %vm1385_vm14, %v6021_v33 }
 0x1d6   : > { %4091 = vmatmul.msk.f32.gmra.mxu3 %vm1385_vm14, %v1360_v48 }
 0x203   : > { %v6083_v27 = vpop.permute.xlu1 %1367  ;;  %v6105_v53 = vpop.permute.xlu0 %1372 }
 0x204   : > { %v6086_v15 = vadd.f32 %v1415_v39, %v6083_v27  ;;  %v6089_v3 = vadd.f32 %v1444_v36, %v6083_v27  ;;  %v6092_v30 = vadd.f32 %v1473_v10, %v6083_v27  ;;  %v6095_v6 = vadd.f32 %v1502_v28, %v6083_v27 }
 0x206   : > { %v1630_v11 = vmul.f32 0.31830987, %v6086_v15  ;;  %v1631_v17 = vmul.f32 0.31830987, %v6089_v3  ;;  %v1632_v51 = vmul.f32 0.31830987, %v6092_v30 }
 0x207   : > { %v1633_v35 = vmul.f32 0.31830987, %v6095_v6 }
 0x208   : > { %vm1662_vm4 = vcmp.ge.f32.partialorder %v1630_v11, 0.0  ;;  %vm1663_vm5 = vcmp.ge.f32.partialorder %v1631_v17, 0.0  ;;  %vm1664_vm6 = vcmp.ge.f32.partialorder %v1632_v51, 0.0 }
 0x209   : > { %v1694_v25 = vsel %vm1662_vm4, 0.5, %v8294_v1  ;;  %v1695_v63 = vsel %vm1663_vm5, 0.5, %v8294_v1  ;;  %v1696_v5 = vsel %vm1664_vm6, 0.5, %v8294_v1  ;;  %vm1665_vm7 = vcmp.ge.f32.partialorder %v1633_v35, 0.0 }
 0x20a   : > { %v1726_v21 = vadd.f32 %v1694_v25, %v1630_v11  ;;  %v1727_v40 = vadd.f32 %v1695_v63, %v1631_v17  ;;  %v1728_v38 = vadd.f32 %v1696_v5, %v1632_v51  ;;  %v1697_v47 = vsel %vm1665_vm7, 0.5, %v8294_v1  ;;  %v6149_v63 = vpop.permute.xlu2 %1377 }
 0x20b   : > { %v1729_v31 = vadd.f32 %v1697_v47, %v1633_v35 }
 0x20c   : > { %vm4304_vm8 = vcmp.lt.s32.totalorder %v1726_v21, 0  ;;  %v4305_v29 = vceil.f32 %v1726_v21  ;;  %v4306_v34 = vfloor.f32 %v1726_v21  ;;  %vm4309_vm9 = vcmp.lt.s32.totalorder %v1727_v40, 0 }
 0x20d   : > { %v4310_v24 = vceil.f32 %v1727_v40  ;;  %v4311_v57 = vfloor.f32 %v1727_v40  ;;  %vm4314_vm10 = vcmp.lt.s32.totalorder %v1728_v38, 0  ;;  %v4315_v20 = vceil.f32 %v1728_v38 }
 0x20e   : > { %v6107_v13 = vsel %vm4304_vm8, %v4305_v29, %v4306_v34  ;;  %v4316_v2 = vfloor.f32 %v1728_v38  ;;  %vm4319_vm11 = vcmp.lt.s32.totalorder %v1729_v31, 0  ;;  %v4320_v61 = vceil.f32 %v1729_v31 }
 0x20f   : > { %v8288_v44 = vcvt.f32.s32 %v6107_v13  ;;  %v6110_v9 = vsel %vm4309_vm9, %v4310_v24, %v4311_v57  ;;  %v4321_v59 = vfloor.f32 %v1729_v31 }
 0x210   : > { %v1418_v56 = vpop.f32.mrf.mxu0  ;;  %v1447_v33 = vpop.f32.mrf.mxu1  ;;  %8474 = vst [vmem:[#allocation6_spill] sm:$0xff] %v6110_v9  ;;  %v8287_v22 = vcvt.f32.s32 %v6110_v9  ;;  %v6116_v14 = vsel %vm4314_vm10, %v4315_v20, %v4316_v2 }
 0x211   : > { %v6113_v8 = vadd.f32 %v1418_v56, %v6105_v53  ;;  %8475 = vst [vmem:[#allocation7_spill] sm:$0xff] %v6116_v14  ;;  %v6119_v45 = vadd.f32 %v1447_v33, %v6105_v53  ;;  %v1790_v19 = vcvt.s32.f32 %v8288_v44  ;;  %v6123_v52 = vsel %vm4319_vm11, %v4320_v61, %v4321_v59 }
 0x212   : > { %8476 = vst [vmem:[#allocation8_spill] sm:$0xff] %v6123_v52  ;;  %v8283_v55 = vcvt.f32.s32 %v6116_v14  ;;  %v1791_v49 = vcvt.s32.f32 %v8287_v22  ;;  %v8282_v46 = vcvt.f32.s32 %v6123_v52 }
 0x213   : > { %v1638_v37 = vmul.f32 0.31830987, %v6113_v8  ;;  %v1639_v48 = vmul.f32 0.31830987, %v6119_v45  ;;  %v1822_v62 = vmul.f32 3.140625, %v1790_v19 }
 0x214   : > { %v1792_v58 = vcvt.s32.f32 %v8283_v55  ;;  %v1823_v54 = vmul.f32 3.140625, %v1791_v49  ;;  %v1793_v4 = vcvt.s32.f32 %v8282_v46  ;;  %v1886_v18 = vmul.f32 0.0009676536, %v1790_v19 }
 0x215   : > { %vm1670_vm12 = vcmp.ge.f32.partialorder %v1638_v37, 0.0  ;;  %vm1671_vm13 = vcmp.ge.f32.partialorder %v1639_v48, 0.0  ;;  %v1854_v42 = vsub.f32 %v6086_v15, %v1822_v62  ;;  %v1887_v0 = vmul.f32 0.0009676536, %v1791_v49 }
 0x216   : > { %v1702_v50 = vsel %vm1670_vm12, 0.5, %v8294_v1  ;;  %v1703_v7 = vsel %vm1671_vm13, 0.5, %v8294_v1  ;;  %v1824_v39 = vmul.f32 3.140625, %v1792_v58  ;;  %v1888_v36 = vmul.f32 0.0009676536, %v1792_v58 }
 0x217   : > { %v1476_v60 = vpop.f32.mrf.mxu2  ;;  %v1734_v32 = vadd.f32 %v1702_v50, %v1638_v37  ;;  %v1505_v26 = vpop.f32.mrf.mxu3  ;;  %v1735_v41 = vadd.f32 %v1703_v7, %v1639_v48  ;;  %v1855_v51 = vsub.f32 %v6089_v3, %v1823_v54  ;;  %v6147_v35 = vmul.f32 3.140625, %v1793_v4 }
 0x218   : > { %v6139_v16 = vadd.f32 %v1476_v60, %v6105_v53  ;;  %v6144_v28 = vadd.f32 %v1505_v26, %v6105_v53  ;;  %v1889_v47 = vmul.f32 0.0009676536, %v1793_v4  ;;  %v6163_v34 = vsub.f32 %v1854_v42, %v1886_v18 }
 0x219   : > { %vm4344_vm15 = vcmp.lt.s32.totalorder %v1734_v32, 0  ;;  %v4345_v23 = vceil.f32 %v1734_v32  ;;  %v4346_v12 = vfloor.f32 %v1734_v32  ;;  %vm4349_vm0 = vcmp.lt.s32.totalorder %v1735_v41, 0 }
 0x21a   : > { %v4350_v15 = vceil.f32 %v1735_v41  ;;  %v4351_v21 = vfloor.f32 %v1735_v41  ;;  %v1640_v40 = vmul.f32 0.31830987, %v6139_v16  ;;  %v1641_v38 = vmul.f32 0.31830987, %v6144_v28  ;;  %8477 = vst [vmem:[#allocation9_spill] sm:$0xff] %v6163_v34 }
 0x21b   : > { %v6141_v10 = vsel %vm4344_vm15, %v4345_v23, %v4346_v12  ;;  %v6167_v24 = vsub.f32 %v1855_v51, %v1887_v0  ;;  %v1856_v57 = vsub.f32 %v6092_v30, %v1824_v39  ;;  %v6182_v32 = vmul.f32 %v6163_v34, %v6163_v34 }
 0x21c   : > { %v8290_v5 = vcvt.f32.s32 %v6141_v10  ;;  %v6165_v56 = vsel %vm4349_vm0, %v4350_v15, %v4351_v21  ;;  %vm1672_vm1 = vcmp.ge.f32.partialorder %v1640_v40, 0.0  ;;  %vm1673_vm2 = vcmp.ge.f32.partialorder %v1641_v38, 0.0 }
 0x21d   : > { %8478 = vst [vmem:[#allocation10_spill] sm:$0xff] %v6167_v24  ;;  %v8289_v20 = vcvt.f32.s32 %v6165_v56  ;;  %v1704_v33 = vsel %vm1672_vm1, 0.5, %v8294_v1  ;;  %v1705_v59 = vsel %vm1673_vm2, 0.5, %v8294_v1  ;;  %v1857_v58 = vsub.f32 %v6095_v6, %v6147_v35 }
 0x21e   : > { %v1798_v2 = vcvt.s32.f32 %v8290_v5  ;;  %v1736_v61 = vadd.f32 %v1704_v33, %v1640_v40  ;;  %v1737_v49 = vadd.f32 %v1705_v59, %v1641_v38  ;;  %v6192_v12 = vsub.f32 %v1856_v57, %v1888_v36 }
 0x21f   : > { %v1421_v11 = vpop.f32.mrf.mxu0  ;;  %v1450_v17 = vpop.f32.mrf.mxu1  ;;  %v1799_v48 = vcvt.s32.f32 %v8289_v20 }
 0x220   : > { %v6155_v31 = vadd.f32 %v1421_v11, %v6149_v63  ;;  %v6158_v3 = vadd.f32 %v1450_v17, %v6149_v63  ;;  %vm4354_vm3 = vcmp.lt.s32.totalorder %v1736_v61, 0  ;;  %v4355_v50 = vceil.f32 %v1736_v61  ;;  %8480 = vst [vmem:[#allocation12_spill] sm:$0xff] %v6192_v12 }
 0x221   : > { %v4356_v62 = vfloor.f32 %v1736_v61  ;;  %vm4359_vm5 = vcmp.lt.s32.totalorder %v1737_v49, 0  ;;  %v4360_v4 = vceil.f32 %v1737_v49  ;;  %v4361_v23 = vfloor.f32 %v1737_v49 }
 0x222   : > { %v1646_v19 = vmul.f32 0.31830987, %v6155_v31  ;;  %v1647_v60 = vmul.f32 0.31830987, %v6158_v3  ;;  %v1830_v7 = vmul.f32 3.140625, %v1798_v2  ;;  %v1831_v41 = vmul.f32 3.140625, %v1799_v48 }
 0x223   : > { %v6189_v54 = vsel %vm4354_vm3, %v4355_v50, %v4356_v62  ;;  %v6195_v39 = vsel %vm4359_vm5, %v4360_v4, %v4361_v23  ;;  %v1894_v21 = vmul.f32 0.0009676536, %v1798_v2  ;;  %v1895_v57 = vmul.f32 0.0009676536, %v1799_v48 }
 0x224   : > { %vm1678_vm4 = vcmp.ge.f32.partialorder %v1646_v19, 0.0  ;;  %8479 = vst [vmem:[#allocation11_spill] sm:$0xff] %v6189_v54  ;;  %v8285_v42 = vcvt.f32.s32 %v6189_v54  ;;  %vm1679_vm6 = vcmp.ge.f32.partialorder %v1647_v60, 0.0  ;;  %v8284_v11 = vcvt.f32.s32 %v6195_v39 }
 0x225   : > { %v1710_v18 = vsel %vm1678_vm4, 0.5, %v8294_v1  ;;  %8481 = vst [vmem:[#allocation13_spill] sm:$0xff] %v6195_v39  ;;  %v1711_v35 = vsel %vm1679_vm6, 0.5, %v8294_v1  ;;  %v6210_v62 = vsub.f32 %v1857_v58, %v1889_v47 }
 0x226   : > { %v1479_v25 = vpop.f32.mrf.mxu2  ;;  %v1508_v37 = vpop.f32.mrf.mxu3  ;;  %v1742_v0 = vadd.f32 %v1710_v18, %v1646_v19  ;;  %v1800_v6 = vcvt.s32.f32 %v8285_v42  ;;  %v1801_v38 = vcvt.s32.f32 %v8284_v11  ;;  %v1743_v61 = vadd.f32 %v1711_v35, %v1647_v60 }
 0x227   : > { %v6161_v29 = vadd.f32 %v1479_v25, %v6149_v63  ;;  %v6187_v26 = vadd.f32 %v1508_v37, %v6149_v63  ;;  %v1862_v25 = vsub.f32 %v6113_v8, %v1830_v7  ;;  %v1863_v19 = vsub.f32 %v6119_v45, %v1831_v41  ;;  %v1424_v50 = vpop.f32.mrf.mxu0  ;;  %8482 = vst [vmem:[#allocation14_spill] sm:$0xff] %v6210_v62  ;;  %v1453_v47 = vpop.f32.mrf.mxu1 }
 0x228   : > { %vm4384_vm8 = vcmp.lt.s32.totalorder %v1742_v0, 0  ;;  %v4385_v51 = vceil.f32 %v1742_v0  ;;  %v4386_v36 = vfloor.f32 %v1742_v0  ;;  %v1832_v40 = vmul.f32 3.140625, %v1800_v6 }
 0x229   : > { %v1648_v30 = vmul.f32 0.31830987, %v6161_v29  ;;  %v1649_v17 = vmul.f32 0.31830987, %v6187_v26  ;;  %v1833_v37 = vmul.f32 3.140625, %v1801_v38  ;;  %vm4389_vm10 = vcmp.lt.s32.totalorder %v1743_v61, 0 }
 0x22a   : > { %v6206_v33 = vsel %vm4384_vm8, %v4385_v51, %v4386_v36  ;;  %v4390_v8 = vceil.f32 %v1743_v61  ;;  %v4391_v2 = vfloor.f32 %v1743_v61  ;;  %v1864_v4 = vsub.f32 %v6139_v16, %v1832_v40 }
 0x22b   : > { %vm1680_vm7 = vcmp.ge.f32.partialorder %v1648_v30, 0.0  ;;  %v8292_v49 = vcvt.f32.s32 %v6206_v33  ;;  %vm1681_vm9 = vcmp.ge.f32.partialorder %v1649_v17, 0.0  ;;  %v6219_v18 = vadd.f32 %v1424_v50, %v6081_v43 }
 0x22c   : > { %v1712_v15 = vsel %vm1680_vm7, 0.5, %v8294_v1  ;;  %v1713_v23 = vsel %vm1681_vm9, 0.5, %v8294_v1  ;;  %v6221_v58 = vsub.f32 %v1862_v25, %v1894_v21  ;;  %v6223_v7 = vsub.f32 %v1863_v19, %v1895_v57 }
 0x22d   : > { %v1744_v59 = vadd.f32 %v1712_v15, %v1648_v30  ;;  %v1806_v48 = vcvt.s32.f32 %v8292_v49  ;;  %v6215_v30 = vsel %vm4389_vm10, %v4390_v8, %v4391_v2  ;;  %v1896_v0 = vmul.f32 0.0009676536, %v1800_v6 }
 0x22e   : > { %v1865_v16 = vsub.f32 %v6144_v28, %v1833_v37  ;;  %v8291_v41 = vcvt.f32.s32 %v6215_v30  ;;  %v1745_v36 = vadd.f32 %v1713_v23, %v1649_v17  ;;  %v1654_v35 = vmul.f32 0.31830987, %v6219_v18  ;;  %v1482_v2 = vpop.f32.mrf.mxu2  ;;  %v1511_v23 = vpop.f32.mrf.mxu3 }
 0x22f   : > { %vm4394_vm11 = vcmp.lt.s32.totalorder %v1744_v59, 0  ;;  %v4395_v60 = vceil.f32 %v1744_v59  ;;  %v4396_v45 = vfloor.f32 %v1744_v59  ;;  %v1897_v15 = vmul.f32 0.0009676536, %v1801_v38 }
 0x230   : > { %v1838_v40 = vmul.f32 3.140625, %v1806_v48  ;;  %v6232_v59 = vadd.f32 %v1453_v47, %v6081_v43  ;;  %v6236_v25 = vmul.f32 %v6167_v24, %v6167_v24  ;;  %v6240_v28 = vmul.f32 %v6192_v12, %v6192_v12 }
 0x231   : > { %v6227_v51 = vsel %vm4394_vm11, %v4395_v60, %v4396_v45  ;;  %v6244_v6 = vmul.f32 %v6210_v62, %v6210_v62  ;;  %v6246_v17 = vsub.f32 %v1864_v4, %v1896_v0  ;;  %v6248_v21 = vsub.f32 %v1865_v16, %v1897_v15 }
 0x232   : > { %8483 = vst [vmem:[#allocation15_spill] sm:$0xff] %v6227_v51  ;;  %v8286_v61 = vcvt.f32.s32 %v6227_v51  ;;  %v1807_v38 = vcvt.s32.f32 %v8291_v41  ;;  %vm1686_vm12 = vcmp.ge.f32.partialorder %v1654_v35, 0.0  ;;  %v1655_v57 = vmul.f32 0.31830987, %v6232_v59 }
 0x233   : > { %8484 = vst [vmem:[#allocation16_spill] sm:$0xff] %v6240_v28  ;;  %v6255_v19 = vmul.f32 %v6221_v58, %v6221_v58  ;;  %v4400_v37 = vceil.f32 %v1745_v36  ;;  %v4401_v50 = vfloor.f32 %v1745_v36  ;;  %v1718_v8 = vsel %vm1686_vm12, 0.5, %v8294_v1 }
 0x234   : > { %8485 = vst [vmem:[#allocation17_spill] sm:$0xff] %v6244_v6  ;;  %v6260_v4 = vmul.f32 %v6223_v7, %v6223_v7  ;;  %v1870_v60 = vsub.f32 %v6155_v31, %v1838_v40  ;;  %v1808_v45 = vcvt.s32.f32 %v8286_v61  ;;  %vm4399_vm13 = vcmp.lt.s32.totalorder %v1745_v36, 0 }
 0x235   : > { %8486 = vst [vmem:[#allocation18_spill] sm:$0xff] %v6246_v17  ;;  %v6267_v47 = vmul.f32 %v6246_v17, %v6246_v17  ;;  %v1902_v0 = vmul.f32 0.0009676536, %v1806_v48  ;;  %v1750_v16 = vadd.f32 %v1718_v8, %v1654_v35  ;;  %vm1687_vm15 = vcmp.ge.f32.partialorder %v1655_v57, 0.0 }
 0x236   : > { %8487 = vst [vmem:[#allocation19_spill] sm:$0xff] %v6248_v21  ;;  %v6271_v15 = vmul.f32 %v6248_v21, %v6248_v21  ;;  %v6273_v46 = vmul.f32 3.140625, %v1807_v38  ;;  %v1719_v31 = vsel %vm1687_vm15, 0.5, %v8294_v1  ;;  %v6277_v40 = vadd.f32 %v1482_v2, %v6081_v43 }
 0x237   : > { %8488 = vst [vmem:[#allocation20_spill] sm:$0xff] %v6267_v47  ;;  %v6279_v36 = vsel %vm4399_vm13, %v4400_v37, %v4401_v50  ;;  %vm4424_vm0 = vcmp.lt.s32.totalorder %v1750_v16, 0  ;;  %v4425_v55 = vceil.f32 %v1750_v16  ;;  %v4426_v11 = vfloor.f32 %v1750_v16  ;;  %v1531_v37 = vpop.f32.mrf.mxu0 }
 0x238   : > { %8489 = vst [vmem:[#allocation21_spill] sm:$0xff] %v6271_v15  ;;  %v6281_v42 = vsub.f32 %v1870_v60, %v1902_v0  ;;  %v6283_v48 = vmul.f32 0.0009676536, %v1807_v38  ;;  %v6285_v35 = vmul.f32 3.140625, %v1808_v45  ;;  %v1751_v8 = vadd.f32 %v1719_v31, %v1655_v57  ;;  %v1560_v0 = vpop.f32.mrf.mxu1  ;;  %v1589_v50 = vpop.f32.mrf.mxu2 }
 0x239   : > { %8490 = vst [vmem:[#allocation22_spill] sm:$0xff] %v6279_v36  ;;  %v6287_v61 = vmul.f32 0.0009676536, %v1808_v45  ;;  %v6289_v22 = vsel %vm4424_vm0, %v4425_v55, %v4426_v11  ;;  %v1656_v44 = vmul.f32 0.31830987, %v6277_v40  ;;  %v6293_v2 = vadd.f32 %v1511_v23, %v6081_v43 }
 0x23a   : > { %v8298_v60 = vcvt.f32.s32 %v6279_v36  ;;  %v8293_v38 = vcvt.f32.s32 %v6289_v22  ;;  %vm4429_vm1 = vcmp.lt.s32.totalorder %v1751_v8, 0  ;;  %v4430_v57 = vceil.f32 %v1751_v8 }
 0x23b   : > { %v4431_v45 = vfloor.f32 %v1751_v8  ;;  %vm1688_vm2 = vcmp.ge.f32.partialorder %v1656_v44, 0.0  ;;  %v1657_v55 = vmul.f32 0.31830987, %v6293_v2  ;;  %v6306_v31 = vadd.f32 %v1531_v37, %v6083_v27 }
 0x23c   : > { %v1814_v23 = vcvt.s32.f32 %v8293_v38  ;;  %v1720_v16 = vsel %vm1688_vm2, 0.5, %v8294_v1  ;;  %v6311_v8 = vadd.f32 %v1560_v0, %v6083_v27  ;;  %v6315_v41 = vcvt.s32.f32 %v8298_v60 }
 0x23d   : > { %v6308_v20 = vsel %vm4429_vm1, %v4430_v57, %v4431_v45  ;;  %v1752_v5 = vadd.f32 %v1720_v16, %v1656_v44  ;;  %vm1689_vm3 = vcmp.ge.f32.partialorder %v1657_v55, 0.0  ;;  %v8491_v57 = vmov -0.5  }
 0x23e   : > { %v1846_v49 = vmul.f32 3.140625, %v1814_v23  ;;  %v1910_v11 = vmul.f32 0.0009676536, %v1814_v23  ;;  %v8305_v38 = vcvt.f32.s32 %v6308_v20  ;;  %v1721_v45 = vsel %vm1689_vm3, 0.5, %v8491_v57 }
 0x23f   : > { %vm4434_vm4 = vcmp.lt.s32.totalorder %v1752_v5, 0  ;;  %v4435_v37 = vceil.f32 %v1752_v5  ;;  %v4436_v62 = vfloor.f32 %v1752_v5  ;;  %v1753_v16 = vadd.f32 %v1721_v45, %v1657_v55 }
 0x240   : > { %v1878_v44 = vsub.f32 %v6219_v18, %v1846_v49  ;;  %v1815_v0 = vcvt.s32.f32 %v8305_v38  ;;  %v1634_v60 = vmul.f32 0.31830987, %v6306_v31  ;;  %v1635_v23 = vmul.f32 0.31830987, %v6311_v8 }
 0x241   : > { %v1618_v1 = vpop.f32.mrf.mxu3  ;;  %v6323_v12 = vsel %vm4434_vm4, %v4435_v37, %v4436_v62  ;;  %v6327_v52 = vadd.f32 %v1589_v50, %v6083_v27  ;;  %vm4439_vm5 = vcmp.lt.s32.totalorder %v1753_v16, 0  ;;  %v4440_v55 = vceil.f32 %v1753_v16 }
 0x242   : > { %v6330_v14 = vadd.f32 %v1618_v1, %v6083_v27  ;;  %v6332_v5 = vsub.f32 %v1878_v44, %v1910_v11  ;;  %v1847_v21 = vmul.f32 3.140625, %v1815_v0  ;;  %v1911_v49 = vmul.f32 0.0009676536, %v1815_v0 }
 0x243   : > { %v8309_v18 = vcvt.f32.s32 %v6323_v12  ;;  %v4441_v45 = vfloor.f32 %v1753_v16  ;;  %vm1666_vm6 = vcmp.ge.f32.partialorder %v1634_v60, 0.0  ;;  %vm1667_vm7 = vcmp.ge.f32.partialorder %v1635_v23, 0.0 }
 0x244   : > { %v6337_v62 = vmul.f32 %v6332_v5, %v6332_v5  ;;  %v1879_v50 = vsub.f32 %v6232_v59, %v1847_v21  ;;  %v1698_v27 = vsel %vm1666_vm6, 0.5, %v8491_v57  ;;  %v1636_v44 = vmul.f32 0.31830987, %v6327_v52 }
 0x245   : > { %v1816_v1 = vcvt.s32.f32 %v8309_v18  ;;  %v6343_v11 = vsel %vm4439_vm5, %v4440_v55, %v4441_v45  ;;  %v1730_v37 = vadd.f32 %v1698_v27, %v1634_v60  ;;  %v1699_v45 = vsel %vm1667_vm7, 0.5, %v8491_v57 }
 0x246   : > { %v2006_v0 = vmul.f32 -2.5052108e-08, %v6337_v62  ;;  %v6347_v16 = vsub.f32 %v1879_v50, %v1911_v49  ;;  %v8315_v39 = vcvt.f32.s32 %v6343_v11  ;;  %vm1668_vm9 = vcmp.ge.f32.partialorder %v1636_v44, 0.0 }
 0x247   : > { %v1848_v38 = vmul.f32 3.140625, %v1816_v1  ;;  %v1912_v17 = vmul.f32 0.0009676536, %v1816_v1  ;;  %vm4324_vm8 = vcmp.lt.s32.totalorder %v1730_v37, 0  ;;  %v4325_v59 = vceil.f32 %v1730_v37 }
 0x248   : > { %v4326_v21 = vfloor.f32 %v1730_v37  ;;  %v2038_v18 = vadd.f32 2.7557319e-06, %v2006_v0  ;;  %v6352_v55 = vmul.f32 %v6347_v16, %v6347_v16  ;;  %v1817_v49 = vcvt.s32.f32 %v8315_v39 }
 0x249   : > { %v1880_v60 = vsub.f32 %v6277_v40, %v1848_v38  ;;  %v1731_v1 = vadd.f32 %v1699_v45, %v1635_v23  ;;  %v1841_v54 = vmul.f32 3.140625, %v6315_v41  ;;  %v8495_v51 = vsub.f32 %v6161_v29, %v6285_v35 }
 0x24a   : > { %v6358_v50 = vsel %vm4324_vm8, %v4325_v59, %v4326_v21  ;;  %v2070_v27 = vmul.f32 %v2038_v18, %v6337_v62  ;;  %v2007_v37 = vmul.f32 -2.5052108e-08, %v6352_v55  ;;  %v1849_v40 = vmul.f32 3.140625, %v1817_v49 }
 0x24b   : > { %8492 = vst [vmem:[#allocation23_spill] sm:$0xff] %v6358_v50  ;;  %v6362_v0 = vsub.f32 %v1880_v60, %v1912_v17  ;;  %v8319_v6 = vcvt.f32.s32 %v6358_v50  ;;  %vm4329_vm10 = vcmp.lt.s32.totalorder %v1731_v1, 0  ;;  %v4330_v38 = vceil.f32 %v1731_v1 }
 0x24c   : > { %v2102_v24 = vadd.f32 -0.0001984127, %v2070_v27  ;;  %v2039_v36 = vadd.f32 2.7557319e-06, %v2007_v37  ;;  %v1881_v18 = vsub.f32 %v6293_v2, %v1849_v40  ;;  %v1913_v17 = vmul.f32 0.0009676536, %v1817_v49 }
 0x24d   : > { %v6368_v59 = vmul.f32 %v6362_v0, %v6362_v0  ;;  %v1794_v23 = vcvt.s32.f32 %v8319_v6  ;;  %v4331_v21 = vfloor.f32 %v1731_v1  ;;  %v1700_v60 = vsel %vm1668_vm9, 0.5, %v8491_v57 }
 0x24e   : > { %v2134_v45 = vmul.f32 %v2102_v24, %v6337_v62  ;;  %v2071_v39 = vmul.f32 %v2039_v36, %v6352_v55  ;;  %v1637_v37 = vmul.f32 0.31830987, %v6330_v14  ;;  %v6379_v34 = vsub.f32 %v1881_v18, %v1913_v17 }
 0x24f   : > { %v2008_v27 = vmul.f32 -2.5052108e-08, %v6368_v59  ;;  %v1826_v28 = vmul.f32 3.140625, %v1794_v23  ;;  %v6382_v6 = vsel %vm4329_vm10, %v4330_v38, %v4331_v21  ;;  %v1732_v2 = vadd.f32 %v1700_v60, %v1636_v44  ;;  %v1534_v60 = vpop.f32.mrf.mxu0 }
 0x250   : > { %8493 = vst [vmem:[#allocation24_spill] sm:$0xff] %v6382_v6  ;;  %v8494_v49 = vsub.f32 %v6158_v3, %v6273_v46  ;;  %v2166_v24 = vadd.f32 0.008333334, %v2134_v45  ;;  %v2103_v50 = vadd.f32 -0.0001984127, %v2071_v39  ;;  %v6394_v18 = vsub.f32 %v8495_v51, %v6287_v61 }
 0x251   : > { %v2040_v36 = vadd.f32 2.7557319e-06, %v2008_v27  ;;  %v6398_v1 = vmul.f32 %v6379_v34, %v6379_v34  ;;  %v8323_v44 = vcvt.f32.s32 %v6382_v6  ;;  %v4335_v38 = vceil.f32 %v1732_v2 }
 0x252   : > { %v6388_v40 = vsub.f32 %v8494_v49, %v6283_v48  ;;  %8496 = vst [vmem:[#allocation25_spill] sm:$0xff] %v6394_v18  ;;  %v2198_v46 = vmul.f32 %v2166_v24, %v6337_v62  ;;  %v2135_v3 = vmul.f32 %v2103_v50, %v6352_v55  ;;  %vm4334_vm11 = vcmp.lt.s32.totalorder %v1732_v2, 0 }
 0x253   : > { %v2072_v39 = vmul.f32 %v2040_v36, %v6368_v59  ;;  %v1873_v48 = vsub.f32 %v6187_v26, %v1841_v54  ;;  %v2009_v29 = vmul.f32 -2.5052108e-08, %v6398_v1  ;;  %v1795_v51 = vcvt.s32.f32 %v8323_v44 }
 0x254   : > { %v4336_v61 = vfloor.f32 %v1732_v2  ;;  %v2167_v35 = vadd.f32 0.008333334, %v2135_v3  ;;  %v1858_v21 = vsub.f32 %v6306_v31, %v1826_v28  ;;  %vm1669_vm12 = vcmp.ge.f32.partialorder %v1637_v37, 0.0 }
 0x255   : > { %v2104_v17 = vadd.f32 -0.0001984127, %v2072_v39  ;;  %v1905_v45 = vmul.f32 0.0009676536, %v6315_v41  ;;  %v2041_v50 = vadd.f32 2.7557319e-06, %v2009_v29  ;;  %v6418_v31 = vadd.f32 %v1534_v60, %v6105_v53 }
 0x256   : > { %v1827_v27 = vmul.f32 3.140625, %v1795_v51  ;;  %v6410_v49 = vsel %vm4334_vm11, %v4335_v38, %v4336_v61  ;;  %v2230_v24 = vadd.f32 -0.16666667, %v2198_v46  ;;  %v2199_v26 = vmul.f32 %v2167_v35, %v6352_v55 }
 0x257   : > { %8497 = vst [vmem:[#allocation26_spill] sm:$0xff] %v6410_v49  ;;  %v2136_v54 = vmul.f32 %v2104_v17, %v6368_v59  ;;  %v1890_v36 = vmul.f32 0.0009676536, %v1794_v23  ;;  %v2073_v2 = vmul.f32 %v2041_v50, %v6398_v1  ;;  %v8322_v3 = vcvt.f32.s32 %v6410_v49  ;;  %v1592_v50 = vpop.f32.mrf.mxu2 }
 0x258   : > { %v1701_v28 = vsel %vm1669_vm12, 0.5, %v8491_v57  ;;  %v6422_v41 = vmul.f32 %v6281_v42, %v6281_v42  ;;  %v6424_v38 = vsub.f32 %v1873_v48, %v1905_v45  ;;  %v1859_v39 = vsub.f32 %v6311_v8, %v1827_v27 }
 0x259   : > { %v6426_v46 = vsub.f32 %v1858_v21, %v1890_v36  ;;  %v6431_v23 = vmul.f32 %v6388_v40, %v6388_v40  ;;  %v2168_v29 = vadd.f32 0.008333334, %v2136_v54  ;;  %v1733_v61 = vadd.f32 %v1701_v28, %v1637_v37  ;;  %v1563_v21 = vpop.f32.mrf.mxu1 }
 0x25a   : > { %8498 = vst [vmem:[#allocation27_spill] sm:$0xff] %v6424_v38  ;;  %v1642_v35 = vmul.f32 0.31830987, %v6418_v31  ;;  %v6436_v17 = vmul.f32 %v6394_v18, %v6394_v18  ;;  %v2262_v60 = vmul.f32 %v2230_v24, %v6337_v62  ;;  %v2231_v48 = vadd.f32 -0.16666667, %v2199_v26 }
 0x25b   : > { %8499 = vst [vmem:[#allocation28_spill] sm:$0xff] %v6426_v46  ;;  %v1891_v45 = vmul.f32 0.0009676536, %v1795_v51  ;;  %v2105_v36 = vadd.f32 -0.0001984127, %v2073_v2  ;;  %v1796_v8 = vcvt.s32.f32 %v8322_v3  ;;  %vm4339_vm13 = vcmp.lt.s32.totalorder %v1733_v61, 0  ;;  %v1621_v2 = vpop.f32.mrf.mxu3 }
 0x25c   : > { %v4340_v27 = vceil.f32 %v1733_v61  ;;  %v6443_v37 = vmul.f32 %v6424_v38, %v6424_v38  ;;  %v6447_v54 = vmul.f32 %v6426_v46, %v6426_v46  ;;  %v4341_v62 = vfloor.f32 %v1733_v61  ;;  %v1537_v38 = vpop.f32.mrf.mxu0 }
 0x25d   : > { %v6449_v28 = vsub.f32 %v1859_v39, %v1891_v45  ;;  %v2200_v51 = vmul.f32 %v2168_v29, %v6368_v59  ;;  %vm1674_vm15 = vcmp.ge.f32.partialorder %v1642_v35, 0.0  ;;  %v6453_v24 = vadd.f32 %v1563_v21, %v6105_v53 }
 0x25e   : > { %8500 = vst [vmem:[#allocation29_spill] sm:$0xff] %v6447_v54  ;;  %v6456_v26 = vadd.f32 %v1592_v50, %v6105_v53  ;;  %v6459_v3 = vmul.f32 %v2262_v60, %v6332_v5  ;;  %v2263_v44 = vmul.f32 %v2231_v48, %v6352_v55  ;;  %v6462_v49 = vsel %vm4339_vm13, %v4340_v27, %v4341_v62 }
 0x25f   : > { %8501 = vst [vmem:[#allocation30_spill] sm:$0xff] %v6449_v28  ;;  %v1706_v39 = vsel %vm1674_vm15, 0.5, %v8491_v57  ;;  %v2137_v61 = vmul.f32 %v2105_v36, %v6398_v1  ;;  %v1828_v29 = vmul.f32 3.140625, %v1796_v8  ;;  %v1643_v21 = vmul.f32 0.31830987, %v6453_v24 }
 0x260   : > { %8502 = vst [vmem:[#allocation31_spill] sm:$0xff] %v6462_v49  ;;  %v1738_v45 = vadd.f32 %v1706_v39, %v1642_v35  ;;  %v6469_v50 = vmul.f32 %v6449_v28, %v6449_v28  ;;  %v1892_v6 = vmul.f32 0.0009676536, %v1796_v8  ;;  %v1644_v60 = vmul.f32 0.31830987, %v6456_v26 }
 0x261   : > { %v6473_v46 = vadd.f32 %v1621_v2, %v6105_v53  ;;  %v2232_v55 = vadd.f32 -0.16666667, %v2200_v51  ;;  %v8334_v48 = vcvt.f32.s32 %v6462_v49  ;;  %vm1675_vm1 = vcmp.ge.f32.partialorder %v1643_v21, 0.0  ;;  %v1566_v18 = vpop.f32.mrf.mxu1 }
 0x262   : > { %8503 = vst [vmem:[#allocation32_spill] sm:$0xff] %v6469_v50  ;;  %vm4364_vm0 = vcmp.lt.s32.totalorder %v1738_v45, 0  ;;  %v4365_v27 = vceil.f32 %v1738_v45  ;;  %v4366_v36 = vfloor.f32 %v1738_v45  ;;  %vm1676_vm2 = vcmp.ge.f32.partialorder %v1644_v60, 0.0 }
 0x263   : > { %v1645_v35 = vmul.f32 0.31830987, %v6473_v46  ;;  %v6478_v62 = vmul.f32 %v2263_v44, %v6347_v16  ;;  %v2169_v39 = vadd.f32 0.008333334, %v2137_v61  ;;  %v1860_v8 = vsub.f32 %v6327_v52, %v1828_v29 }
 0x264   : > { %v1707_v28 = vsel %vm1675_vm1, 0.5, %v8491_v57  ;;  %v6482_v53 = vsel %vm4364_vm0, %v4365_v27, %v4366_v36  ;;  %v1708_v2 = vsel %vm1676_vm2, 0.5, %v8491_v57  ;;  %v2264_v45 = vmul.f32 %v2232_v55, %v6368_v59  ;;  %v1540_v9 = vpop.f32.mrf.mxu0 }
 0x265   : > { %8504 = vst [vmem:[#allocation33_spill] sm:$0xff] %v6482_v53  ;;  %v1739_v51 = vadd.f32 %v1707_v28, %v1643_v21  ;;  %vm1677_vm3 = vcmp.ge.f32.partialorder %v1645_v35, 0.0  ;;  %v1797_v50 = vcvt.s32.f32 %v8334_v48  ;;  %v8339_v54 = vcvt.f32.s32 %v6482_v53 }
 0x266   : > { %v1740_v44 = vadd.f32 %v1708_v2, %v1644_v60  ;;  %v1709_v29 = vsel %vm1677_vm3, 0.5, %v8491_v57  ;;  %v2201_v27 = vmul.f32 %v2169_v39, %v6398_v1  ;;  %v6496_v48 = vadd.f32 %v1537_v38, %v6149_v63  ;;  %v1595_v39 = vpop.f32.mrf.mxu2 }
 0x267   : > { %vm4369_vm4 = vcmp.lt.s32.totalorder %v1739_v51, 0  ;;  %v4370_v61 = vceil.f32 %v1739_v51  ;;  %v4371_v52 = vfloor.f32 %v1739_v51  ;;  %v1802_v28 = vcvt.s32.f32 %v8339_v54 }
 0x268   : > { %vm4374_vm5 = vcmp.lt.s32.totalorder %v1740_v44, 0  ;;  %v4375_v21 = vceil.f32 %v1740_v44  ;;  %v4376_v55 = vfloor.f32 %v1740_v44  ;;  %v1741_v36 = vadd.f32 %v1709_v29, %v1645_v35 }
 0x269   : > { %v6493_v59 = vsel %vm4369_vm4, %v4370_v61, %v4371_v52  ;;  %v6498_v60 = vsub.f32 %v1860_v8, %v1892_v6  ;;  %v1829_v2 = vmul.f32 3.140625, %v1797_v50  ;;  %v1834_v51 = vmul.f32 3.140625, %v1802_v28 }
 0x26a   : > { %8505 = vst [vmem:[#allocation34_spill] sm:$0xff] %v6493_v59  ;;  %v8341_v49 = vcvt.f32.s32 %v6493_v59  ;;  %v6501_v15 = vsel %vm4374_vm5, %v4375_v21, %v4376_v55  ;;  %vm4379_vm6 = vcmp.lt.s32.totalorder %v1741_v36, 0  ;;  %v4380_v54 = vceil.f32 %v1741_v36 }
 0x26b   : > { %8506 = vst [vmem:[#allocation35_spill] sm:$0xff] %v6498_v60  ;;  %v4381_v53 = vfloor.f32 %v1741_v36  ;;  %v2233_v61 = vadd.f32 -0.16666667, %v2201_v27  ;;  %v8345_v38 = vcvt.f32.s32 %v6501_v15  ;;  %v1650_v6 = vmul.f32 0.31830987, %v6496_v48  ;;  %v1624_v36 = vpop.f32.mrf.mxu3 }
 0x26c   : > { %8507 = vst [vmem:[#allocation36_spill] sm:$0xff] %v6501_v15  ;;  %v1803_v35 = vcvt.s32.f32 %v8341_v49  ;;  %v6508_v8 = vmul.f32 %v2264_v45, %v6362_v0  ;;  %v6513_v52 = vadd.f32 %v1566_v18, %v6149_v63  ;;  %v6516_v29 = vadd.f32 %v1595_v39, %v6149_v63 }
 0x26d   : > { %v6510_v44 = vsel %vm4379_vm6, %v4380_v54, %v4381_v53  ;;  %v6520_v27 = vmul.f32 %v6498_v60, %v6498_v60  ;;  %v1861_v21 = vsub.f32 %v6330_v14, %v1829_v2  ;;  %v1866_v55 = vsub.f32 %v6418_v31, %v1834_v51 }
 0x26e   : > { %8508 = vst [vmem:[#allocation37_spill] sm:$0xff] %v6510_v44  ;;  %v1804_v45 = vcvt.s32.f32 %v8345_v38  ;;  %v8348_v54 = vcvt.f32.s32 %v6510_v44  ;;  %vm1682_vm7 = vcmp.ge.f32.partialorder %v1650_v6, 0.0  ;;  %v1651_v18 = vmul.f32 0.31830987, %v6513_v52 }
 0x26f   : > { %8509 = vst [vmem:[#allocation38_spill] sm:$0xff] %v6520_v27  ;;  %v1652_v53 = vmul.f32 0.31830987, %v6516_v29  ;;  %v2265_v39 = vmul.f32 %v2233_v61, %v6398_v1  ;;  %v1893_v49 = vmul.f32 0.0009676536, %v1797_v50  ;;  %v1835_v27 = vmul.f32 3.140625, %v1803_v35 }
 0x270   : > { %v1898_v60 = vmul.f32 0.0009676536, %v1802_v28  ;;  %v1805_v14 = vcvt.s32.f32 %v8348_v54  ;;  %v1714_v31 = vsel %vm1682_vm7, 0.5, %v8491_v57  ;;  %vm1683_vm8 = vcmp.ge.f32.partialorder %v1651_v18, 0.0 }
 0x271   : > { %vm1684_vm9 = vcmp.ge.f32.partialorder %v1652_v53, 0.0  ;;  %v6533_v2 = vsub.f32 %v1861_v21, %v1893_v49  ;;  %v1746_v51 = vadd.f32 %v1714_v31, %v1650_v6  ;;  %v1715_v38 = vsel %vm1683_vm8, 0.5, %v8491_v57  ;;  %v1569_v49 = vpop.f32.mrf.mxu1 }
 0x272   : > { %v6537_v15 = vadd.f32 %v1624_v36, %v6149_v63  ;;  %v6539_v59 = vsub.f32 %v1866_v55, %v1898_v60  ;;  %v1836_v1 = vmul.f32 3.140625, %v1804_v45  ;;  %v1747_v50 = vadd.f32 %v1715_v38, %v1651_v18 }
 0x273   : > { %8510 = vst [vmem:[#allocation39_spill] sm:$0xff] %v6533_v2  ;;  %v1716_v28 = vsel %vm1684_vm9, 0.5, %v8491_v57  ;;  %v1867_v61 = vsub.f32 %v6453_v24, %v1835_v27  ;;  %v1899_v54 = vmul.f32 0.0009676536, %v1803_v35  ;;  %vm4404_vm10 = vcmp.lt.s32.totalorder %v1746_v51, 0 }
 0x274   : > { %8511 = vst [vmem:[#allocation40_spill] sm:$0xff] %v6539_v59  ;;  %v4405_v44 = vceil.f32 %v1746_v51  ;;  %v1837_v21 = vmul.f32 3.140625, %v1805_v14  ;;  %v4406_v6 = vfloor.f32 %v1746_v51  ;;  %vm4409_vm11 = vcmp.lt.s32.totalorder %v1747_v50, 0  ;;  %v1598_v51 = vpop.f32.mrf.mxu2 }
 0x275   : > { %v4410_v31 = vceil.f32 %v1747_v50  ;;  %v1900_v47 = vmul.f32 0.0009676536, %v1804_v45  ;;  %v4411_v63 = vfloor.f32 %v1747_v50  ;;  %v1748_v36 = vadd.f32 %v1716_v28, %v1652_v53 }
 0x276   : > { %v1653_v60 = vmul.f32 0.31830987, %v6537_v15  ;;  %v1868_v38 = vsub.f32 %v6456_v26, %v1836_v1  ;;  %v6545_v55 = vsel %vm4404_vm10, %v4405_v44, %v4406_v6  ;;  %v6548_v24 = vadd.f32 %v1540_v9, %v6081_v43 }
 0x277   : > { %v6551_v35 = vadd.f32 %v1569_v49, %v6081_v43  ;;  %v8353_v27 = vcvt.f32.s32 %v6545_v55  ;;  %v6554_v18 = vsel %vm4409_vm11, %v4410_v31, %v4411_v63  ;;  %vm4414_vm12 = vcmp.lt.s32.totalorder %v1748_v36, 0 }
 0x278   : > { %8512 = vst [vmem:[#allocation41_spill] sm:$0xff] %v6554_v18  ;;  %v4415_v45 = vceil.f32 %v1748_v36  ;;  %v1869_v53 = vsub.f32 %v6473_v46, %v1837_v21  ;;  %v8352_v50 = vcvt.f32.s32 %v6554_v18  ;;  %v4416_v26 = vfloor.f32 %v1748_v36 }
 0x279   : > { %vm1685_vm13 = vcmp.ge.f32.partialorder %v1653_v60, 0.0  ;;  %v1901_v44 = vmul.f32 0.0009676536, %v1805_v14  ;;  %v1810_v9 = vcvt.s32.f32 %v8353_v27  ;;  %v1658_v28 = vmul.f32 0.31830987, %v6548_v24  ;;  %v1627_v27 = vpop.f32.mrf.mxu3 }
 0x27a   : > { %v1717_v1 = vsel %vm1685_vm13, 0.5, %v8491_v57  ;;  %v6562_v49 = vsel %vm4414_vm12, %v4415_v45, %v4416_v26  ;;  %v1659_v31 = vmul.f32 0.31830987, %v6551_v35  ;;  %v6566_v63 = vadd.f32 %v1598_v51, %v6081_v43 }
 0x27b   : > { %8513 = vst [vmem:[#allocation42_spill] sm:$0xff] %v6562_v49  ;;  %v1749_v6 = vadd.f32 %v1717_v1, %v1653_v60  ;;  %v6568_v46 = vsub.f32 %v1867_v61, %v1899_v54  ;;  %v6570_v21 = vsub.f32 %v1868_v38, %v1900_v47  ;;  %v1811_v14 = vcvt.s32.f32 %v8352_v50 }
 0x27c   : > { %vm1690_vm15 = vcmp.ge.f32.partialorder %v1658_v28, 0.0  ;;  %v6575_v36 = vmul.f32 %v2265_v39, %v6379_v34  ;;  %v6579_v45 = vmul.f32 %v6533_v2, %v6533_v2  ;;  %v6581_v60 = vsub.f32 %v1869_v53, %v1901_v44 }
 0x27d   : > { %8514 = vst [vmem:[#allocation43_spill] sm:$0xff] %v6568_v46  ;;  %v1842_v26 = vmul.f32 3.140625, %v1810_v9  ;;  %v8369_v51 = vcvt.f32.s32 %v6562_v49  ;;  %v4420_v54 = vceil.f32 %v1749_v6  ;;  %v4421_v61 = vfloor.f32 %v1749_v6 }
 0x27e   : > { %8515 = vst [vmem:[#allocation44_spill] sm:$0xff] %v6570_v21  ;;  %v1722_v47 = vsel %vm1690_vm15, 0.5, %v8491_v57  ;;  %vm4419_vm0 = vcmp.lt.s32.totalorder %v1749_v6, 0  ;;  %vm1691_vm1 = vcmp.ge.f32.partialorder %v1659_v31, 0.0  ;;  %v1660_v1 = vmul.f32 0.31830987, %v6566_v63 }
 0x27f   : > { %8516 = vst [vmem:[#allocation45_spill] sm:$0xff] %v6579_v45  ;;  %v1754_v38 = vadd.f32 %v1722_v47, %v1658_v28  ;;  %v6588_v39 = vmul.f32 %v6539_v59, %v6539_v59  ;;  %v6592_v53 = vmul.f32 %v6568_v46, %v6568_v46  ;;  %v6596_v44 = vmul.f32 %v6570_v21, %v6570_v21 }
 0x280   : > { %8517 = vst [vmem:[#allocation46_spill] sm:$0xff] %v6581_v60  ;;  %v1843_v50 = vmul.f32 3.140625, %v1811_v14  ;;  %v6600_v6 = vmul.f32 %v6581_v60, %v6581_v60  ;;  %v1874_v28 = vsub.f32 %v6496_v48, %v1842_v26  ;;  %v1812_v2 = vcvt.s32.f32 %v8369_v51 }
 0x281   : > { %8518 = vst [vmem:[#allocation47_spill] sm:$0xff] %v6596_v44  ;;  %vm4444_vm2 = vcmp.lt.s32.totalorder %v1754_v38, 0  ;;  %v4445_v47 = vceil.f32 %v1754_v38  ;;  %v6605_v45 = vsel %vm4419_vm0, %v4420_v54, %v4421_v61  ;;  %v4446_v46 = vfloor.f32 %v1754_v38 }
 0x282   : > { %8519 = vst [vmem:[#allocation48_spill] sm:$0xff] %v6600_v6  ;;  %v1723_v59 = vsel %vm1691_vm1, 0.5, %v8491_v57  ;;  %v1906_v21 = vmul.f32 0.0009676536, %v1810_v9  ;;  %v1907_v44 = vmul.f32 0.0009676536, %v1811_v14  ;;  %v1875_v60 = vsub.f32 %v6513_v52, %v1843_v50 }
 0x283   : > { %8520 = vst [vmem:[#allocation49_spill] sm:$0xff] %v6605_v45  ;;  %v1755_v18 = vadd.f32 %v1723_v59, %v1659_v31  ;;  %vm1692_vm3 = vcmp.ge.f32.partialorder %v1660_v1, 0.0  ;;  %v6609_v6 = vsel %vm4444_vm2, %v4445_v47, %v4446_v46  ;;  %v6613_v26 = vadd.f32 %v1627_v27, %v6081_v43 }
 0x284   : > { %v1724_v48 = vsel %vm1692_vm3, 0.5, %v8491_v57  ;;  %v6615_v49 = vsub.f32 %v1874_v28, %v1906_v21  ;;  %v8370_v54 = vcvt.f32.s32 %v6605_v45  ;;  %v8373_v61 = vcvt.f32.s32 %v6609_v6 }
 0x285   : > { %vm4449_vm4 = vcmp.lt.s32.totalorder %v1755_v18, 0  ;;  %v6619_v9 = vmul.f32 3.140625, %v1812_v2  ;;  %v4450_v59 = vceil.f32 %v1755_v18  ;;  %v4451_v31 = vfloor.f32 %v1755_v18 }
 0x286   : > { %8521 = vst [vmem:[#allocation50_spill] sm:$0xff] %v6615_v49  ;;  %v1756_v14 = vadd.f32 %v1724_v48, %v1660_v1  ;;  %v6621_v52 = vmul.f32 0.0009676536, %v1812_v2  ;;  %v1818_v50 = vcvt.s32.f32 %v8373_v61  ;;  %v1661_v43 = vmul.f32 0.31830987, %v6613_v26 }
 0x287   : > { %v2326_v27 = vadd.f32 %v6459_v3, %v6332_v5  ;;  %v6628_v46 = vsel %vm4449_vm4, %v4450_v59, %v4451_v31  ;;  %v6630_v28 = vsub.f32 %v1875_v60, %v1907_v44  ;;  %v1813_v18 = vcvt.s32.f32 %v8370_v54 }
 0x288   : > { %vm4454_vm5 = vcmp.lt.s32.totalorder %v1756_v14, 0  ;;  %v4455_v21 = vceil.f32 %v1756_v14  ;;  %v4456_v38 = vfloor.f32 %v1756_v14  ;;  %v1850_v2 = vmul.f32 3.140625, %v1818_v50 }
 0x289   : > { %8522 = vst [vmem:[#allocation51_spill] sm:$0xff] %v6630_v28  ;;  %v8371_v1 = vcvt.f32.s32 %v6628_v46  ;;  %vm1693_vm6 = vcmp.ge.f32.partialorder %v1661_v43, 0.0  ;;  %v8523_v48 = vcvt.f32.s32 %v6289_v22  ;;  %v2422_v5 = vsub.f32 0.0, %v2326_v27 }
 0x28a   : > { %v6635_v47 = vsel %vm4454_vm5, %v4455_v21, %v4456_v38  ;;  %v1882_v3 = vsub.f32 %v6548_v24, %v1850_v2  ;;  %v1914_v59 = vmul.f32 0.0009676536, %v1818_v50  ;;  %v1725_v31 = vsel %vm1693_vm6, 0.5, %v8491_v57 }
 0x28b   : > { %v2358_v51 = vand.u32 1, %v8523_v48  ;;  %v1819_v60 = vcvt.s32.f32 %v8371_v1  ;;  %v8372_v44 = vcvt.f32.s32 %v6635_v47  ;;  %v2327_v14 = vadd.f32 %v6478_v62, %v6347_v16 }
 0x28c   : > { %v8524_v21 = vcvt.f32.s32 %v6308_v20  ;;  %v6648_v22 = vsub.f32 %v1882_v3, %v1914_v59  ;;  %v1757_v50 = vadd.f32 %v1725_v31, %v1661_v43 }
 0x28d   : > { %vm2390_vm7 = vcmp.eq.s32.totalorder %v2358_v51, 1  ;;  %v1851_v48 = vmul.f32 3.140625, %v1819_v60  ;;  %v1915_v54 = vmul.f32 0.0009676536, %v1819_v60  ;;  %v1820_v24 = vcvt.s32.f32 %v8372_v44 }
 0x28e   : > { %v2359_v38 = vand.u32 1, %v8524_v21  ;;  %v2454_v2 = vsel %vm2390_vm7, %v2422_v5, %v2326_v27  ;;  %v2423_v1 = vsub.f32 0.0, %v2327_v14  ;;  %v6654_v51 = vmul.f32 %v6648_v22, %v6648_v22 }
 0x28f   : > { %v1883_v16 = vsub.f32 %v6551_v35, %v1851_v48  ;;  %v1852_v62 = vmul.f32 3.140625, %v1820_v24  ;;  %v1916_v20 = vmul.f32 0.0009676536, %v1820_v24  ;;  %2516 = vmatpush.msra.mxu0 %v2454_v2  ;;  %vm4459_vm9 = vcmp.lt.s32.totalorder %v1757_v50, 0 }
 0x290   : > { %vm2391_vm8 = vcmp.eq.s32.totalorder %v2359_v38, 1  ;;  %v4460_v3 = vceil.f32 %v1757_v50  ;;  %v4461_v59 = vfloor.f32 %v1757_v50  ;;  %v2010_v21 = vmul.f32 -2.5052108e-08, %v6654_v51 }
 0x291   : > { %v2455_v60 = vsel %vm2391_vm8, %v2423_v1, %v2327_v14  ;;  %v6658_v44 = vsub.f32 %v1883_v16, %v1915_v54  ;;  %v1884_v43 = vsub.f32 %v6566_v63, %v1852_v62  ;;  %v1998_v27 = vmul.f32 -2.5052108e-08, %v6422_v41 }
 0x292   : > { %2545 = vmatpush.msra.mxu1 %v2455_v60  ;;  %v6664_v5 = vmul.f32 %v6615_v49, %v6615_v49  ;;  %v1876_v35 = vsub.f32 %v6516_v29, %v6619_v9  ;;  %v6668_v31 = vsel %vm4459_vm9, %v4460_v3, %v4461_v59  ;;  %v1999_v1 = vmul.f32 -2.5052108e-08, %v6431_v23 }
 0x293   : > { %v2042_v14 = vadd.f32 2.7557319e-06, %v2010_v21  ;;  %v6673_v54 = vmul.f32 %v6658_v44, %v6658_v44  ;;  %v6675_v63 = vsub.f32 %v1884_v43, %v1916_v20  ;;  %v8376_v38 = vcvt.f32.s32 %v6668_v31 }
 0x294   : > { %v6680_v48 = vmul.f32 %v6630_v28, %v6630_v28  ;;  %v1845_v24 = vmul.f32 3.140625, %v1813_v18  ;;  %v2030_v50 = vadd.f32 2.7557319e-06, %v1998_v27  ;;  %v2031_v29 = vadd.f32 2.7557319e-06, %v1999_v1 }
 0x295   : > { %v2074_v9 = vmul.f32 %v2042_v14, %v6654_v51  ;;  %v2011_v2 = vmul.f32 -2.5052108e-08, %v6673_v54  ;;  %v6686_v16 = vmul.f32 %v6675_v63, %v6675_v63  ;;  %v1821_v62 = vcvt.s32.f32 %v8376_v38 }
 0x296   : > { %v1909_v20 = vmul.f32 0.0009676536, %v1813_v18  ;;  %v2062_v3 = vmul.f32 %v2030_v50, %v6422_v41  ;;  %v2063_v59 = vmul.f32 %v2031_v29, %v6431_v23  ;;  %v1990_v60 = vmul.f32 -2.5052108e-08, %v6255_v19 }
 0x297   : > { %v6694_v21 = vsub.f32 %v1876_v35, %v6621_v52  ;;  %v2106_v43 = vadd.f32 -0.0001984127, %v2074_v9  ;;  %v2043_v27 = vadd.f32 2.7557319e-06, %v2011_v2  ;;  %v2012_v1 = vmul.f32 -2.5052108e-08, %v6686_v16 }
 0x298   : > { %v1877_v14 = vsub.f32 %v6537_v15, %v1845_v24  ;;  %v1853_v61 = vmul.f32 3.140625, %v1821_v62  ;;  %v1917_v57 = vmul.f32 0.0009676536, %v1821_v62  ;;  %v2094_v45 = vadd.f32 -0.0001984127, %v2062_v3 }
 0x299   : > { %v2138_v18 = vmul.f32 %v2106_v43, %v6654_v51  ;;  %v2075_v50 = vmul.f32 %v2043_v27, %v6673_v54  ;;  %v2044_v38 = vadd.f32 2.7557319e-06, %v2012_v1  ;;  %v2095_v29 = vadd.f32 -0.0001984127, %v2063_v59 }
 0x29a   : > { %v1885_v28 = vsub.f32 %v6613_v26, %v1853_v61  ;;  %v2126_v52 = vmul.f32 %v2094_v45, %v6422_v41  ;;  %v2022_v35 = vadd.f32 2.7557319e-06, %v1990_v60  ;;  %v1991_v9 = vmul.f32 -2.5052108e-08, %v6260_v4 }
 0x29b   : > { %v2170_v2 = vadd.f32 0.008333334, %v2138_v18  ;;  %v2107_v49 = vadd.f32 -0.0001984127, %v2075_v50  ;;  %v2076_v15 = vmul.f32 %v2044_v38, %v6686_v16  ;;  %v2127_v24 = vmul.f32 %v2095_v29, %v6431_v23 }
 0x29c   : > { %v6705_v62 = vsub.f32 %v1885_v28, %v1917_v57  ;;  %v2158_v3 = vadd.f32 0.008333334, %v2126_v52  ;;  %v2054_v43 = vmul.f32 %v2022_v35, %v6255_v19  ;;  %v2023_v27 = vadd.f32 2.7557319e-06, %v1991_v9 }
 0x29d   : > { %v6708_v59 = vsub.f32 %v1877_v14, %v1909_v20  ;;  %v2139_v26 = vmul.f32 %v2107_v49, %v6673_v54  ;;  %v2108_v45 = vadd.f32 -0.0001984127, %v2076_v15  ;;  %v2159_v61 = vadd.f32 0.008333334, %v2127_v24 }
 0x29e   : > { %v6713_v60 = vmul.f32 %v6705_v62, %v6705_v62  ;;  %v2190_v38 = vmul.f32 %v2158_v3, %v6422_v41  ;;  %v2086_v1 = vadd.f32 -0.0001984127, %v2054_v43  ;;  %v2055_v57 = vmul.f32 %v2023_v27, %v6260_v4 }
 0x29f   : > { %8525 = vst [vmem:[#allocation52_spill] sm:$0xff] %v6708_v59  ;;  %v6719_v28 = vmul.f32 %v6694_v21, %v6694_v21  ;;  %v2202_v20 = vmul.f32 %v2170_v2, %v6654_v51  ;;  %v2171_v14 = vadd.f32 0.008333334, %v2139_v26  ;;  %v2191_v49 = vmul.f32 %v2159_v61, %v6431_v23 }
 0x2a0   : > { %v2013_v18 = vmul.f32 -2.5052108e-08, %v6713_v60  ;;  %v2222_v50 = vadd.f32 -0.16666667, %v2190_v38  ;;  %v2118_v29 = vmul.f32 %v2086_v1, %v6255_v19  ;;  %v2087_v52 = vadd.f32 -0.0001984127, %v2055_v57 }
 0x2a1   : > { %v6727_v35 = vmul.f32 %v6708_v59, %v6708_v59  ;;  %v2140_v9 = vmul.f32 %v2108_v45, %v6686_v16  ;;  %v8526_v15 = vcvt.f32.s32 %v6206_v33  ;;  %v2223_v3 = vadd.f32 -0.16666667, %v2191_v49 }
 0x2a2   : > { %v2045_v2 = vadd.f32 2.7557319e-06, %v2013_v18  ;;  %v2254_v43 = vmul.f32 %v2222_v50, %v6422_v41  ;;  %v2150_v27 = vadd.f32 0.008333334, %v2118_v29  ;;  %v2119_v26 = vmul.f32 %v2087_v52, %v6260_v4 }
 0x2a3   : > { %v2350_v24 = vand.u32 1, %v8526_v15  ;;  %v2234_v61 = vadd.f32 -0.16666667, %v2202_v20  ;;  %v2203_v38 = vmul.f32 %v2171_v14, %v6673_v54  ;;  %v2255_v1 = vmul.f32 %v2223_v3, %v6431_v23 }
 0x2a4   : > { %v8527_v57 = vcvt.f32.s32 %v6215_v30  ;;  %v2077_v45 = vmul.f32 %v2045_v2, %v6713_v60  ;;  %v2286_v33 = vmul.f32 %v2254_v43, %v6281_v42  ;;  %v2182_v49 = vmul.f32 %v2150_v27, %v6255_v19 }
 0x2a5   : > { %v2151_v18 = vadd.f32 0.008333334, %v2119_v26  ;;  %v2172_v15 = vadd.f32 0.008333334, %v2140_v9  ;;  %vm2382_vm10 = vcmp.eq.s32.totalorder %v2350_v24, 1  ;;  %v2287_v41 = vmul.f32 %v2255_v1, %v6388_v40 }
 0x2a6   : > { %v2351_v59 = vand.u32 1, %v8527_v57  ;;  %v8528_v20 = vcvt.f32.s32 %v6141_v10  ;;  %v2109_v14 = vadd.f32 -0.0001984127, %v2077_v45  ;;  %v2318_v23 = vadd.f32 %v2286_v33, %v6281_v42 }
 0x2a7   : > { %v2214_v29 = vadd.f32 -0.16666667, %v2182_v49  ;;  %v2183_v30 = vmul.f32 %v2151_v18, %v6260_v4  ;;  %v2266_v52 = vmul.f32 %v2234_v61, %v6654_v51  ;;  %v2235_v3 = vadd.f32 -0.16666667, %v2203_v38 }
 0x2a8   : > { %v2342_v50 = vand.u32 1, %v8528_v20  ;;  %v2319_v2 = vadd.f32 %v2287_v41, %v6388_v40  ;;  %vm2383_vm11 = vcmp.eq.s32.totalorder %v2351_v59, 1  ;;  %v2141_v9 = vmul.f32 %v2109_v14, %v6713_v60 }
 0x2a9   : > { %v2414_v43 = vsub.f32 0.0, %v2318_v23  ;;  %v2246_v27 = vmul.f32 %v2214_v29, %v6255_v19  ;;  %v2215_v26 = vadd.f32 -0.16666667, %v2183_v30  ;;  %v2204_v10 = vmul.f32 %v2172_v15, %v6686_v16 }
 0x2aa   : > { %v2415_v1 = vsub.f32 0.0, %v2319_v2  ;;  %vm2374_vm12 = vcmp.eq.s32.totalorder %v2342_v50, 1  ;;  %v1982_v42 = vmul.f32 -2.5052108e-08, %v6182_v32  ;;  %v8529_v40 = vcvt.f32.s32 %v6165_v56 }
 0x2ab   : > { %v2446_v57 = vsel %vm2382_vm10, %v2414_v43, %v2318_v23  ;;  %v2278_v51 = vmul.f32 %v2246_v27, %v6221_v58  ;;  %v2247_v61 = vmul.f32 %v2215_v26, %v6260_v4  ;;  %v2173_v38 = vadd.f32 0.008333334, %v2141_v9 }
 0x2ac   : > { %v2343_v59 = vand.u32 1, %v8529_v40  ;;  %2517 = vmatpush.msra.mxu0 %v2446_v57  ;;  %v2447_v45 = vsel %vm2383_vm11, %v2415_v1, %v2319_v2  ;;  %v2014_v19 = vadd.f32 2.7557319e-06, %v1982_v42  ;;  %v1983_v33 = vmul.f32 -2.5052108e-08, %v6236_v25 }
 0x2ad   : > { %v6759_v49 = vmul.f32 %v2266_v52, %v6648_v22  ;;  %v2267_v18 = vmul.f32 %v2235_v3, %v6673_v54  ;;  %2546 = vmatpush.msra.mxu1 %v2447_v45  ;;  %v2310_v24 = vadd.f32 %v2278_v51, %v6221_v58  ;;  %v2279_v15 = vmul.f32 %v2247_v61, %v6223_v7  ;;  %v8533_v45 = vld [vmem:[#allocation20_spill] sm:$0xff] }
 0x2ae   : > { %v2046_v4 = vmul.f32 %v2014_v19, %v6182_v32  ;;  %v2015_v56 = vadd.f32 2.7557319e-06, %v1983_v33  ;;  %v2328_v41 = vadd.f32 %v6508_v8, %v6362_v0  ;;  %v8530_v20 = vcvt.f32.s32 %v6323_v12  ;;  %v8534_v33 = vld [vmem:[#allocation6_spill] sm:$0xff] }
 0x2af   : > { %v2236_v23 = vadd.f32 -0.16666667, %v2204_v10  ;;  %v2406_v29 = vsub.f32 0.0, %v2310_v24  ;;  %v2311_v30 = vadd.f32 %v2279_v15, %v6223_v7  ;;  %vm2375_vm13 = vcmp.eq.s32.totalorder %v2343_v59, 1 }
 0x2b0   : > { %v2360_v14 = vand.u32 1, %v8530_v20  ;;  %v2205_v54 = vmul.f32 %v2173_v38, %v6713_v60  ;;  %v2078_v52 = vadd.f32 -0.0001984127, %v2046_v4  ;;  %v2047_v58 = vmul.f32 %v2015_v56, %v6236_v25 }
 0x2b1   : > { %v2424_v3 = vsub.f32 0.0, %v2328_v41  ;;  %v2438_v2 = vsel %vm2374_vm12, %v2406_v29, %v2310_v24  ;;  %v2407_v9 = vsub.f32 0.0, %v2311_v30  ;;  %v2329_v0 = vadd.f32 %v6575_v36, %v6379_v34 }
 0x2b2   : > { %vm2392_vm15 = vcmp.eq.s32.totalorder %v2360_v14, 1  ;;  %2518 = vmatpush.msra.mxu0 %v2438_v2  ;;  %v2110_v12 = vmul.f32 %v2078_v52, %v6182_v32  ;;  %v2079_v8 = vadd.f32 -0.0001984127, %v2047_v58  ;;  %v8531_v7 = vcvt.f32.s32 %v6343_v11  ;;  %v8536_v14 = vld [vmem:[#allocation21_spill] sm:$0xff] }
 0x2b3   : > { %v2456_v43 = vsel %vm2392_vm15, %v2424_v3, %v2328_v41  ;;  %v2268_v26 = vmul.f32 %v2236_v23, %v6686_v16  ;;  %v2439_v10 = vsel %vm2375_vm13, %v2407_v9, %v2311_v30  ;;  %v2425_v1 = vsub.f32 0.0, %v2329_v0 }
 0x2b4   : > { %v2361_v27 = vand.u32 1, %v8531_v7  ;;  %2574 = vmatpush.msra.mxu2 %v2456_v43  ;;  %v2000_v50 = vmul.f32 -2.5052108e-08, %v6436_v17  ;;  %2547 = vmatpush.msra.mxu1 %v2439_v10  ;;  %v2142_v42 = vadd.f32 0.008333334, %v2110_v12  ;;  %v8532_v57 = vcvt.f32.s32 %v6107_v13 }
 0x2b5   : > { %v2111_v36 = vmul.f32 %v2079_v8, %v6236_v25  ;;  %v2237_v51 = vadd.f32 -0.16666667, %v2205_v54  ;;  %v2001_v11 = vmul.f32 -2.5052108e-08, %v6443_v37  ;;  %v6785_v16 = vmul.f32 %v2267_v18, %v6658_v44 }
 0x2b6   : > { %v2334_v34 = vand.u32 1, %v8532_v57  ;;  %vm2393_vm0 = vcmp.eq.s32.totalorder %v2361_v27, 1  ;;  %v2032_v40 = vadd.f32 2.7557319e-06, %v2000_v50  ;;  %v2174_v59 = vmul.f32 %v2142_v42, %v6182_v32  ;;  %v8540_v27 = vld [vmem:[#allocation9_spill] sm:$0xff]  ;;  %v8541_v57 = vld [vmem:[#allocation22_spill] sm:$0xff] }
 0x2b7   : > { %v2457_v61 = vsel %vm2393_vm0, %v2425_v1, %v2329_v0  ;;  %v2143_v38 = vadd.f32 0.008333334, %v2111_v36  ;;  %v1992_v19 = vmul.f32 -2.5052108e-08, %v8533_v45  ;;  %v6790_v13 = vmul.f32 %v2268_v26, %v6675_v63  ;;  %v8537_v0 = vld [vmem:[#allocation15_spill] sm:$0xff] }
 0x2b8   : > { %2603 = vmatpush.msra.mxu3 %v2457_v61  ;;  %v8535_v24 = vcvt.f32.s32 %v8534_v33  ;;  %v2064_v4 = vmul.f32 %v2032_v40, %v6436_v17  ;;  %v2033_v56 = vadd.f32 2.7557319e-06, %v2001_v11  ;;  %v2206_v41 = vadd.f32 -0.16666667, %v2174_v59  ;;  %v8543_v11 = vld [vmem:[#allocation10_spill] sm:$0xff] }
 0x2b9   : > { %v2175_v20 = vmul.f32 %v2143_v38, %v6236_v25  ;;  %v2024_v18 = vadd.f32 2.7557319e-06, %v1992_v19  ;;  %v1993_v23 = vmul.f32 -2.5052108e-08, %v8536_v14  ;;  %v6798_v29 = vmul.f32 %v2237_v51, %v6713_v60  ;;  %v8539_v60 = vld [vmem:[#allocation16_spill] sm:$0xff] }
 0x2ba   : > { %v2335_v15 = vand.u32 1, %v8535_v24  ;;  %vm2366_vm1 = vcmp.eq.s32.totalorder %v2334_v34, 1  ;;  %v2096_v30 = vadd.f32 -0.0001984127, %v2064_v4  ;;  %v2065_v54 = vmul.f32 %v2033_v56, %v6443_v37  ;;  %v8544_v24 = vld [vmem:[#allocation11_spill] sm:$0xff] }
 0x2bb   : > { %v2238_v52 = vmul.f32 %v2206_v41, %v6182_v32  ;;  %v2207_v58 = vadd.f32 -0.16666667, %v2175_v20  ;;  %v2056_v3 = vmul.f32 %v2024_v18, %v8533_v45  ;;  %v2025_v2 = vadd.f32 2.7557319e-06, %v1993_v23  ;;  %v6830_v23 = vld [vmem:[%s8277_s3 + $0x20] sm:$0xff] }
 0x2bc   : > { %vm2367_vm2 = vcmp.eq.s32.totalorder %v2335_v15, 1  ;;  %v2128_v9 = vmul.f32 %v2096_v30, %v6436_v17  ;;  %v8538_v12 = vcvt.f32.s32 %v8537_v0  ;;  %v2097_v43 = vadd.f32 -0.0001984127, %v2065_v54 }
 0x2bd   : > { %v1984_v7 = vmul.f32 -2.5052108e-08, %v8539_v60  ;;  %v2270_v26 = vmul.f32 %v2238_v52, %v8540_v27  ;;  %v2239_v10 = vmul.f32 %v2207_v58, %v6236_v25  ;;  %v2088_v1 = vadd.f32 -0.0001984127, %v2056_v3 }
 0x2be   : > { %v6806_v8 = vand.u32 1, %v8538_v12  ;;  %v2057_v32 = vmul.f32 %v2025_v2, %v8536_v14  ;;  %v2160_v50 = vadd.f32 0.008333334, %v2128_v9  ;;  %v2129_v42 = vmul.f32 %v2097_v43, %v6443_v37  ;;  %v8546_v2 = vld [vmem:[#allocation17_spill] sm:$0xff] }
 0x2bf   : > { %v8542_v36 = vcvt.f32.s32 %v8541_v57  ;;  %v2016_v61 = vadd.f32 2.7557319e-06, %v1984_v7  ;;  %v2302_v40 = vadd.f32 %v2270_v26, %v8540_v27  ;;  %v2271_v59 = vmul.f32 %v2239_v10, %v8543_v11 }
 0x2c0   : > { %v2120_v38 = vmul.f32 %v2088_v1, %v8533_v45  ;;  %v2089_v19 = vadd.f32 -0.0001984127, %v2057_v32  ;;  %v2192_v25 = vmul.f32 %v2160_v50, %v6436_v17  ;;  %v2161_v33 = vadd.f32 0.008333334, %v2129_v42  ;;  %v8547_v42 = vld [vmem:[#allocation13_spill] sm:$0xff] }
 0x2c1   : > { %v6815_v51 = vand.u32 1, %v8542_v36  ;;  %v8545_v4 = vcvt.f32.s32 %v8544_v24  ;;  %v2048_v41 = vmul.f32 %v2016_v61, %v8539_v60  ;;  %v2398_v20 = vsub.f32 0.0, %v2302_v40  ;;  %v8549_v61 = vld [vmem:[#allocation25_spill] sm:$0xff] }
 0x2c2   : > { %v2303_v18 = vadd.f32 %v2271_v59, %v8543_v11  ;;  %v2152_v30 = vadd.f32 0.008333334, %v2120_v38  ;;  %v2121_v54 = vmul.f32 %v2089_v19, %v8536_v14  ;;  %v2224_v52 = vadd.f32 -0.16666667, %v2192_v25  ;;  %v8550_v25 = vld [vmem:[#allocation27_spill] sm:$0xff] }
 0x2c3   : > { %v6823_v56 = vand.u32 1, %v8545_v4  ;;  %v2193_v58 = vmul.f32 %v2161_v33, %v6443_v37  ;;  %v2080_v3 = vadd.f32 -0.0001984127, %v2048_v41  ;;  %v1985_v9 = vmul.f32 -2.5052108e-08, %v8546_v2  ;;  %v8551_v4 = vld [vmem:[#allocation18_spill] sm:$0xff] }
 0x2c4   : > { %v2430_v0 = vsel %vm2366_vm1, %v2398_v20, %v2302_v40  ;;  %v2399_v12 = vsub.f32 0.0, %v2303_v18  ;;  %v2184_v43 = vmul.f32 %v2152_v30, %v8533_v45  ;;  %v2153_v7 = vadd.f32 0.008333334, %v2121_v54 }
 0x2c5   : > { %2519 = vmatpush.msra.mxu0 %v2430_v0  ;;  %v2256_v27 = vmul.f32 %v2224_v52, %v6436_v17  ;;  %v2225_v26 = vadd.f32 -0.16666667, %v2193_v58  ;;  %v2112_v10 = vmul.f32 %v2080_v3, %v8539_v60  ;;  %v2017_v1 = vadd.f32 2.7557319e-06, %v1985_v9  ;;  %v6864_v52 = vld [vmem:[%s8277_s3 + $0x28] sm:$0xff]  ;;  %v8552_v3 = vld [vmem:[#allocation19_spill] sm:$0xff] }
 0x2c6   : > { %v2431_v32 = vsel %vm2367_vm2, %v2399_v12, %v2303_v18  ;;  %4100 = vmatmul.msk.f32.vlgmr.msra.gmra.mxu0 %vm1385_vm14, %v6830_v23  ;;  %v2216_v50 = vadd.f32 -0.16666667, %v2184_v43  ;;  %v2185_v34 = vmul.f32 %v2153_v7, %v8536_v14  ;;  %v8548_v57 = vcvt.f32.s32 %v8547_v42  ;;  %v8553_v0 = vld [vmem:[#allocation7_spill] sm:$0xff] }
 0x2c7   : > { %2548 = vmatpush.msra.mxu1 %v2431_v32  ;;  %v2288_v40 = vmul.f32 %v2256_v27, %v8549_v61  ;;  %v2257_v17 = vmul.f32 %v2225_v26, %v6443_v37  ;;  %v2144_v11 = vadd.f32 0.008333334, %v2112_v10  ;;  %v2049_v59 = vmul.f32 %v2017_v1, %v8546_v2 }
 0x2c8   : > { %v2345_v36 = vand.u32 1, %v8548_v57  ;;  %4104 = vmatmul.msk.f32.vlgmr.msra.gmra.mxu1 %vm1385_vm14, %v6830_v23  ;;  %vm2384_vm3 = vcmp.eq.s32.totalorder %v6806_v8, 1  ;;  %vm2385_vm4 = vcmp.eq.s32.totalorder %v6815_v51, 1  ;;  %v2248_v15 = vmul.f32 %v2216_v50, %v8533_v45 }
 0x2c9   : > { %v2217_v38 = vadd.f32 -0.16666667, %v2185_v34  ;;  %v2320_v19 = vadd.f32 %v2288_v40, %v8549_v61  ;;  %v2289_v33 = vmul.f32 %v2257_v17, %v8550_v25  ;;  %v2176_v24 = vmul.f32 %v2144_v11, %v8539_v60  ;;  %v8558_v40 = vld [vmem:[#allocation12_spill] sm:$0xff] }
 0x2ca   : > { %v2081_v37 = vadd.f32 -0.0001984127, %v2049_v59  ;;  %v2280_v41 = vmul.f32 %v2248_v15, %v8551_v4  ;;  %vm2376_vm5 = vcmp.eq.s32.totalorder %v6823_v56, 1  ;;  %vm2377_vm6 = vcmp.eq.s32.totalorder %v2345_v36, 1 }
 0x2cb   : > { %v2249_v20 = vmul.f32 %v2217_v38, %v8536_v14  ;;  %v2416_v18 = vsub.f32 0.0, %v2320_v19  ;;  %v2321_v30 = vadd.f32 %v2289_v33, %v8550_v25  ;;  %v2208_v54 = vadd.f32 -0.16666667, %v2176_v24  ;;  %v8555_v14 = vld [vmem:[#allocation8_spill] sm:$0xff]  ;;  %v8560_v25 = vld [vmem:[#allocation29_spill] sm:$0xff] }
 0x2cc   : > { %v2113_v45 = vmul.f32 %v2081_v37, %v8546_v2  ;;  %v2312_v58 = vadd.f32 %v2280_v41, %v8551_v4  ;;  %v8554_v12 = vcvt.f32.s32 %v8553_v0  ;;  %v8556_v7 = vcvt.f32.s32 %v8555_v14  ;;  %v6904_v4 = vld [vmem:[%s8277_s3 + $0x30] sm:$0xff] }
 0x2cd   : > { %v2281_v9 = vmul.f32 %v2249_v20, %v8552_v3  ;;  %v2448_v26 = vsel %vm2384_vm3, %v2416_v18, %v2320_v19  ;;  %v2417_v10 = vsub.f32 0.0, %v2321_v30  ;;  %v2240_v1 = vmul.f32 %v2208_v54, %v8539_v60 }
 0x2ce   : > { %v2336_v43 = vand.u32 1, %v8554_v12  ;;  %v6872_v27 = vand.u32 1, %v8556_v7  ;;  %v2145_v32 = vadd.f32 0.008333334, %v2113_v45  ;;  %2575 = vmatpush.msra.mxu2 %v2448_v26  ;;  %v2408_v50 = vsub.f32 0.0, %v2312_v58  ;;  %4101 = vmatmul.msk.f32.gmra.mxu0 %vm1385_vm14, %v6864_v52 }
 0x2cf   : > { %v2313_v34 = vadd.f32 %v2281_v9, %v8552_v3  ;;  %v2330_v42 = vadd.f32 %v6759_v49, %v6648_v22  ;;  %v8557_v57 = vcvt.f32.s32 %v6609_v6  ;;  %v2449_v8 = vsel %vm2385_vm4, %v2417_v10, %v2321_v30  ;;  %v8561_v30 = vld [vmem:[#allocation14_spill] sm:$0xff] }
 0x2d0   : > { %v2272_v17 = vmul.f32 %v2240_v1, %v8558_v40  ;;  %v2177_v60 = vmul.f32 %v2145_v32, %v8546_v2  ;;  %v2331_v11 = vadd.f32 %v6785_v16, %v6658_v44  ;;  %2604 = vmatpush.msra.mxu3 %v2449_v8  ;;  %v2440_v59 = vsel %vm2376_vm5, %v2408_v50, %v2312_v58  ;;  %v8564_v32 = vld [vmem:[#allocation32_spill] sm:$0xff] }
 0x2d1   : > { %v2362_v61 = vand.u32 1, %v8557_v57  ;;  %v2409_v15 = vsub.f32 0.0, %v2313_v34  ;;  %4105 = vmatmul.msk.f32.gmra.mxu1 %vm1385_vm14, %v6864_v52  ;;  %v2426_v6 = vsub.f32 0.0, %v2330_v42  ;;  %2576 = vmatpush.msra.mxu2 %v2440_v59  ;;  %v8559_v51 = vcvt.f32.s32 %v6628_v46 }
 0x2d2   : > { %v2304_v22 = vadd.f32 %v2272_v17, %v8558_v40  ;;  %v2209_v49 = vadd.f32 -0.16666667, %v2177_v60  ;;  %v2427_v19 = vsub.f32 0.0, %v2331_v11  ;;  %v2002_v56 = vmul.f32 -2.5052108e-08, %v6664_v5 }
 0x2d3   : > { %vm2394_vm7 = vcmp.eq.s32.totalorder %v2362_v61, 1  ;;  %v2363_v38 = vand.u32 1, %v8559_v51  ;;  %v2441_v44 = vsel %vm2377_vm6, %v2409_v15, %v2313_v34  ;;  %v1986_v33 = vmul.f32 -2.5052108e-08, %v8560_v25  ;;  %v8565_v61 = vld [vmem:[#allocation34_spill] sm:$0xff] }
 0x2d4   : > { %v2458_v16 = vsel %vm2394_vm7, %v2426_v6, %v2330_v42  ;;  %2605 = vmatpush.msra.mxu3 %v2441_v44  ;;  %v2400_v24 = vsub.f32 0.0, %v2304_v22  ;;  %v2241_v37 = vmul.f32 %v2209_v49, %v8546_v2  ;;  %v2003_v46 = vmul.f32 -2.5052108e-08, %v6680_v48  ;;  %v6942_v6 = vld [vmem:[%s8277_s3 + $0x38] sm:$0xff] }
 0x2d5   : > { %2632 = vmatpush.msrb.mxu0 %v2458_v16  ;;  %vm2395_vm8 = vcmp.eq.s32.totalorder %v2363_v38, 1  ;;  %v6909_v36 = vmul.f32 %v6798_v29, %v6705_v62  ;;  %vm2368_vm9 = vcmp.eq.s32.totalorder %v2336_v43, 1  ;;  %v2034_v20 = vadd.f32 2.7557319e-06, %v2002_v56  ;;  %v8562_v43 = vld [vmem:[#allocation33_spill] sm:$0xff] }
 0x2d6   : > { %v2459_v41 = vsel %vm2395_vm8, %v2427_v19, %v2331_v11  ;;  %v2432_v18 = vsel %vm2368_vm9, %v2400_v24, %v2304_v22  ;;  %v2273_v54 = vmul.f32 %v2241_v37, %v8561_v30  ;;  %v2035_v2 = vadd.f32 2.7557319e-06, %v2003_v46  ;;  %4102 = vmatmul.msk.f32.gmra.mxu0 %vm1385_vm14, %v6904_v4 }
 0x2d7   : > { %2661 = vmatpush.msrb.mxu1 %v2459_v41  ;;  %v1994_v45 = vmul.f32 -2.5052108e-08, %v6588_v39  ;;  %2577 = vmatpush.msra.mxu2 %v2432_v18  ;;  %vm2369_vm10 = vcmp.eq.s32.totalorder %v6872_v27, 1  ;;  %v2066_v58 = vmul.f32 %v2034_v20, %v6664_v5  ;;  %v1995_v29 = vmul.f32 -2.5052108e-08, %v6592_v53 }
 0x2d8   : > { %v2018_v3 = vadd.f32 2.7557319e-06, %v1986_v33  ;;  %v2305_v9 = vadd.f32 %v2273_v54, %v8561_v30  ;;  %4108 = vmatmul.msk.f32.vlgmr.msra.gmra.mxu2 %vm1385_vm14, %v6830_v23  ;;  %v2067_v0 = vmul.f32 %v2035_v2, %v6680_v48  ;;  %v8563_v14 = vcvt.f32.s32 %v8562_v43  ;;  %v8568_v33 = vld [vmem:[#allocation41_spill] sm:$0xff] }
 0x2d9   : > { %v2026_v12 = vadd.f32 2.7557319e-06, %v1994_v45  ;;  %4106 = vmatmul.msk.f32.gmra.mxu1 %vm1385_vm14, %v6904_v4  ;;  %v2098_v26 = vadd.f32 -0.0001984127, %v2066_v58  ;;  %v2027_v10 = vadd.f32 2.7557319e-06, %v1995_v29  ;;  %v8566_v8 = vcvt.f32.s32 %v8565_v61 }
 0x2da   : > { %v6924_v7 = vand.u32 1, %v8563_v14  ;;  %v2050_v1 = vmul.f32 %v2018_v3, %v8560_v25  ;;  %v1987_v50 = vmul.f32 -2.5052108e-08, %v8564_v32  ;;  %v2401_v34 = vsub.f32 0.0, %v2305_v9  ;;  %v8572_v61 = vld [vmem:[#allocation50_spill] sm:$0xff] }
 0x2db   : > { %v2099_v42 = vadd.f32 -0.0001984127, %v2067_v0  ;;  %v2058_v57 = vmul.f32 %v2026_v12, %v6588_v39  ;;  %v6933_v40 = vand.u32 1, %v8566_v8  ;;  %v2130_v17 = vmul.f32 %v2098_v26, %v6664_v5 }
 0x2dc   : > { %v2059_v60 = vmul.f32 %v2027_v10, %v6592_v53  ;;  %v2082_v11 = vadd.f32 -0.0001984127, %v2050_v1  ;;  %v2019_v59 = vadd.f32 2.7557319e-06, %v1987_v50  ;;  %v2433_v15 = vsel %vm2369_vm10, %v2401_v34, %v2305_v9 }
 0x2dd   : > { %v8567_v22 = vcvt.f32.s32 %v6545_v55  ;;  %v2131_v51 = vmul.f32 %v2099_v42, %v6680_v48  ;;  %v2090_v38 = vadd.f32 -0.0001984127, %v2058_v57  ;;  %2606 = vmatpush.msra.mxu3 %v2433_v15  ;;  %v2162_v19 = vadd.f32 0.008333334, %v2130_v17  ;;  %v8573_v17 = vld [vmem:[#allocation51_spill] sm:$0xff]  ;;  %v8574_v15 = vld [vmem:[#allocation28_spill] sm:$0xff] }
 0x2de   : > { %v2091_v44 = vadd.f32 -0.0001984127, %v2059_v60  ;;  %v2114_v16 = vmul.f32 %v2082_v11, %v8560_v25  ;;  %v2051_v27 = vmul.f32 %v2019_v59, %v8564_v32  ;;  %4112 = vmatmul.msk.f32.vlgmr.msra.gmra.mxu3 %vm1385_vm14, %v6830_v23  ;;  %v8569_v24 = vcvt.f32.s32 %v8568_v33  ;;  %4103 = vmatmul.msk.f32.gmra.mxu0 %vm1385_vm14, %v6942_v6 }
 0x2df   : > { %v6946_v49 = vand.u32 1, %v8567_v22  ;;  %v2163_v56 = vadd.f32 0.008333334, %v2131_v51  ;;  %v2122_v55 = vmul.f32 %v2090_v38, %v6588_v39  ;;  %v2332_v46 = vadd.f32 %v6790_v13, %v6675_v63  ;;  %v8575_v38 = vld [vmem:[#allocation40_spill] sm:$0xff] }
 0x2e0   : > { %v6955_v37 = vand.u32 1, %v8569_v24  ;;  %v2194_v41 = vmul.f32 %v2162_v19, %v6664_v5  ;;  %v2123_v20 = vmul.f32 %v2091_v44, %v6592_v53  ;;  %v2146_v18 = vadd.f32 0.008333334, %v2114_v16  ;;  %4109 = vmatmul.msk.f32.gmra.mxu2 %vm1385_vm14, %v6864_v52 }
 0x2e1   : > { %v2083_v30 = vadd.f32 -0.0001984127, %v2051_v27  ;;  %v2195_v54 = vmul.f32 %v2163_v56, %v6680_v48  ;;  %v2154_v2 = vadd.f32 0.008333334, %v2122_v55  ;;  %v8570_v45 = vcvt.f32.s32 %v6635_v47  ;;  %4107 = vmatmul.msk.f32.gmra.mxu1 %vm1385_vm14, %v6942_v6  ;;  %v8576_v27 = vld [vmem:[#allocation43_spill] sm:$0xff] }
 0x2e2   : > { %v2428_v29 = vsub.f32 0.0, %v2332_v46  ;;  %v2226_v63 = vadd.f32 -0.16666667, %v2194_v41  ;;  %v2155_v13 = vadd.f32 0.008333334, %v2123_v20  ;;  %v2178_v3 = vmul.f32 %v2146_v18, %v8560_v25 }
 0x2e3   : > { %v2364_v58 = vand.u32 1, %v8570_v45  ;;  %v2115_v9 = vmul.f32 %v2083_v30, %v8564_v32  ;;  %vm2386_vm11 = vcmp.eq.s32.totalorder %v6946_v49, 1  ;;  %v2227_v0 = vadd.f32 -0.16666667, %v2195_v54 }
 0x2e4   : > { %v2186_v12 = vmul.f32 %v2154_v2, %v6588_v39  ;;  %v2333_v47 = vadd.f32 %v6909_v36, %v6705_v62  ;;  %v2258_v43 = vmul.f32 %v2226_v63, %v6664_v5  ;;  %vm2387_vm13 = vcmp.eq.s32.totalorder %v6955_v37, 1  ;;  %v8579_v2 = vld [vmem:[#allocation30_spill] sm:$0xff] }
 0x2e5   : > { %vm2396_vm12 = vcmp.eq.s32.totalorder %v2364_v58, 1  ;;  %v2187_v14 = vmul.f32 %v2155_v13, %v6592_v53  ;;  %v2210_v26 = vadd.f32 -0.16666667, %v2178_v3  ;;  %v2147_v10 = vadd.f32 0.008333334, %v2115_v9  ;;  %v8580_v58 = vld [vmem:[#allocation24_spill] sm:$0xff] }
 0x2e6   : > { %v2259_v1 = vmul.f32 %v2227_v0, %v6680_v48  ;;  %v2218_v50 = vadd.f32 -0.16666667, %v2186_v12  ;;  %v2460_v34 = vsel %vm2396_vm12, %v2428_v29, %v2332_v46  ;;  %v8571_v42 = vcvt.f32.s32 %v6668_v31  ;;  %4113 = vmatmul.msk.f32.gmra.mxu3 %vm1385_vm14, %v6864_v52  ;;  %v8577_v46 = vld [vmem:[#allocation23_spill] sm:$0xff] }
 0x2e7   : > { %v2290_v8 = vmul.f32 %v2258_v43, %v8572_v61  ;;  %vm2378_vm15 = vcmp.eq.s32.totalorder %v6924_v7, 1  ;;  %v2219_v62 = vadd.f32 -0.16666667, %v2187_v14  ;;  %v2242_v5 = vmul.f32 %v2210_v26, %v8560_v25  ;;  %2690 = vmatpush.msrb.mxu2 %v2460_v34  ;;  %v8582_v43 = vld [vmem:[#allocation47_spill] sm:$0xff] }
 0x2e8   : > { %v2365_v57 = vand.u32 1, %v8571_v42  ;;  %v2179_v36 = vmul.f32 %v2147_v10, %v8564_v32  ;;  %v2291_v48 = vmul.f32 %v2259_v1, %v8573_v17  ;;  %v2250_v60 = vmul.f32 %v2218_v50, %v6588_v39  ;;  %4110 = vmatmul.msk.f32.gmra.mxu2 %vm1385_vm14, %v6904_v4  ;;  %v8583_v42 = vld [vmem:[#allocation48_spill] sm:$0xff] }
 0x2e9   : > { %v2429_v31 = vsub.f32 0.0, %v2333_v47  ;;  %v2322_v11 = vadd.f32 %v2290_v8, %v8572_v61  ;;  %v2251_v59 = vmul.f32 %v2219_v62, %v6592_v53  ;;  %v2274_v22 = vmul.f32 %v2242_v5, %v8574_v15 }
 0x2ea   : > { %vm2397_vm0 = vcmp.eq.s32.totalorder %v2365_v57, 1  ;;  %v2211_v51 = vadd.f32 -0.16666667, %v2179_v36  ;;  %v2323_v25 = vadd.f32 %v2291_v48, %v8573_v17  ;;  %v2282_v19 = vmul.f32 %v2250_v60, %v8575_v38  ;;  %v8584_v36 = vld [vmem:[#allocation38_spill] sm:$0xff]  ;;  %v8585_v60 = vld [vmem:[#allocation45_spill] sm:$0xff] }
 0x2eb   : > { %v2461_v44 = vsel %vm2397_vm0, %v2429_v31, %v2333_v47  ;;  %v2004_v16 = vmul.f32 -2.5052108e-08, %v6719_v28  ;;  %v2418_v39 = vsub.f32 0.0, %v2322_v11  ;;  %v2283_v56 = vmul.f32 %v2251_v59, %v8576_v27 }
 0x2ec   : > { %v2306_v33 = vadd.f32 %v2274_v22, %v8574_v15  ;;  %v2243_v53 = vmul.f32 %v2211_v51, %v8564_v32  ;;  %2719 = vmatpush.msrb.mxu3 %v2461_v44  ;;  %v2419_v24 = vsub.f32 0.0, %v2323_v25  ;;  %v2314_v55 = vadd.f32 %v2282_v19, %v8575_v38 }
 0x2ed   : > { %v8578_v41 = vcvt.f32.s32 %v8577_v46  ;;  %v2036_v18 = vadd.f32 2.7557319e-06, %v2004_v16  ;;  %v2450_v30 = vsel %vm2386_vm11, %v2418_v39, %v2322_v11  ;;  %v2315_v54 = vadd.f32 %v2283_v56, %v8576_v27 }
 0x2ee   : > { %v2275_v45 = vmul.f32 %v2243_v53, %v8579_v2  ;;  %v8581_v29 = vcvt.f32.s32 %v8580_v58  ;;  %2633 = vmatpush.msrb.mxu0 %v2450_v30  ;;  %v2451_v32 = vsel %vm2387_vm13, %v2419_v24, %v2323_v25  ;;  %v2410_v13 = vsub.f32 0.0, %v2314_v55  ;;  %4114 = vmatmul.msk.f32.gmra.mxu3 %vm1385_vm14, %v6904_v4 }
 0x2ef   : > { %v2338_v20 = vand.u32 1, %v8578_v41  ;;  %v2402_v3 = vsub.f32 0.0, %v2306_v33  ;;  %v2068_v9 = vmul.f32 %v2036_v18, %v6719_v28  ;;  %2662 = vmatpush.msrb.mxu1 %v2451_v32  ;;  %vm2379_vm1 = vcmp.eq.s32.totalorder %v6933_v40, 1 }
 0x2f0   : > { %v2339_v63 = vand.u32 1, %v8581_v29  ;;  %v2411_v49 = vsub.f32 0.0, %v2315_v54  ;;  %v2307_v0 = vadd.f32 %v2275_v45, %v8579_v2  ;;  %v2005_v12 = vmul.f32 -2.5052108e-08, %v6727_v35  ;;  %4111 = vmatmul.msk.f32.gmra.mxu2 %vm1385_vm14, %v6942_v6 }
 0x2f1   : > { %v2442_v47 = vsel %vm2378_vm15, %v2410_v13, %v2314_v55  ;;  %vm2370_vm2 = vcmp.eq.s32.totalorder %v2338_v20, 1  ;;  %v2100_v37 = vadd.f32 -0.0001984127, %v2068_v9  ;;  %v1996_v14 = vmul.f32 -2.5052108e-08, %v8582_v43 }
 0x2f2   : > { %2634 = vmatpush.msrb.mxu0 %v2442_v47  ;;  %v2443_v26 = vsel %vm2379_vm1, %v2411_v49, %v2315_v54  ;;  %vm2371_vm3 = vcmp.eq.s32.totalorder %v2339_v63, 1  ;;  %v2403_v10 = vsub.f32 0.0, %v2307_v0  ;;  %v2037_v40 = vadd.f32 2.7557319e-06, %v2005_v12  ;;  %v8586_v54 = vld [vmem:[#allocation42_spill] sm:$0xff] }
 0x2f3   : > { %2663 = vmatpush.msrb.mxu1 %v2443_v26  ;;  %v2434_v1 = vsel %vm2370_vm2, %v2402_v3, %v2306_v33  ;;  %v2132_v50 = vmul.f32 %v2100_v37, %v6719_v28  ;;  %v2028_v34 = vadd.f32 2.7557319e-06, %v1996_v14  ;;  %v1997_v7 = vmul.f32 -2.5052108e-08, %v8583_v42  ;;  %v8588_v37 = vld [vmem:[#allocation52_spill] sm:$0xff]  ;;  %v8589_v26 = vld [vmem:[#allocation49_spill] sm:$0xff] }
 0x2f4   : > { %2635 = vmatpush.msrb.mxu0 %v2434_v1  ;;  %v2435_v57 = vsel %vm2371_vm3, %v2403_v10, %v2307_v0  ;;  %v2069_v61 = vmul.f32 %v2037_v40, %v6727_v35  ;;  %v1988_v17 = vmul.f32 -2.5052108e-08, %v8584_v36  ;;  %v1989_v31 = vmul.f32 -2.5052108e-08, %v8585_v60 }
 0x2f5   : > { %2664 = vmatpush.msrb.mxu1 %v2435_v57  ;;  %4116 = vmatmul.msk.f32.vlgmr.msrb.gmra.mxu0 %vm1385_vm14, %v6830_v23  ;;  %v2164_v8 = vadd.f32 0.008333334, %v2132_v50  ;;  %v2060_v62 = vmul.f32 %v2028_v34, %v8582_v43  ;;  %v2029_v5 = vadd.f32 2.7557319e-06, %v1997_v7  ;;  %v8587_v2 = vcvt.f32.s32 %v8586_v54  ;;  %v8591_v50 = vld [vmem:[#allocation44_spill] sm:$0xff] }
 0x2f6   : > { %4120 = vmatmul.msk.f32.vlgmr.msrb.gmra.mxu1 %vm1385_vm14, %v6830_v23  ;;  %v2101_v48 = vadd.f32 -0.0001984127, %v2069_v61  ;;  %v2020_v22 = vadd.f32 2.7557319e-06, %v1988_v17  ;;  %v2021_v25 = vadd.f32 2.7557319e-06, %v1989_v31  ;;  %4115 = vmatmul.msk.f32.gmra.mxu3 %vm1385_vm14, %v6942_v6  ;;  %v8590_v10 = vcvt.f32.s32 %v8589_v26 }
 0x2f7   : > { %v2196_v11 = vmul.f32 %v2164_v8, %v6719_v28  ;;  %v2092_v59 = vadd.f32 -0.0001984127, %v2060_v62  ;;  %v2061_v15 = vmul.f32 %v2029_v5, %v8583_v42  ;;  %v8592_v57 = vld [vmem:[#allocation36_spill] sm:$0xff]  ;;  %v8594_v17 = vld [vmem:[#allocation46_spill] sm:$0xff] }
 0x2f8   : > { %v2133_v51 = vmul.f32 %v2101_v48, %v6727_v35  ;;  %v2052_v16 = vmul.f32 %v2020_v22, %v8584_v36  ;;  %v2053_v27 = vmul.f32 %v2021_v25, %v8585_v60  ;;  %v2357_v40 = vand.u32 1, %v8590_v10 }
 0x2f9   : > { %v2228_v38 = vadd.f32 -0.16666667, %v2196_v11  ;;  %v2124_v19 = vmul.f32 %v2092_v59, %v8582_v43  ;;  %v2093_v44 = vadd.f32 -0.0001984127, %v2061_v15  ;;  %v8593_v61 = vcvt.f32.s32 %v8592_v57  ;;  %v8595_v59 = vld [vmem:[#allocation37_spill] sm:$0xff] }
 0x2fa   : > { %v2165_v39 = vadd.f32 0.008333334, %v2133_v51  ;;  %v2084_v24 = vadd.f32 -0.0001984127, %v2052_v16  ;;  %v2085_v46 = vadd.f32 -0.0001984127, %v2053_v27 }
 0x2fb   : > { %v2260_v56 = vmul.f32 %v2228_v38, %v6719_v28  ;;  %v2156_v33 = vadd.f32 0.008333334, %v2124_v19  ;;  %v2125_v53 = vmul.f32 %v2093_v44, %v8583_v42  ;;  %v2356_v28 = vand.u32 1, %v8587_v2  ;;  %v8597_v38 = vld [vmem:[#allocation35_spill] sm:$0xff] }
 0x2fc   : > { %v2197_v55 = vmul.f32 %v2165_v39, %v6727_v35  ;;  %v2116_v30 = vmul.f32 %v2084_v24, %v8584_v36  ;;  %v2117_v58 = vmul.f32 %v2085_v46, %v8585_v60  ;;  %v2348_v8 = vand.u32 1, %v8593_v61  ;;  %v8600_v27 = vld [vmem:[#allocation39_spill] sm:$0xff] }
 0x2fd   : > { %v2292_v41 = vmul.f32 %v2260_v56, %v6694_v21  ;;  %v2188_v20 = vmul.f32 %v2156_v33, %v8582_v43  ;;  %v2157_v18 = vadd.f32 0.008333334, %v2125_v53  ;;  %4117 = vmatmul.msk.f32.gmra.mxu0 %vm1385_vm14, %v6864_v52  ;;  %vm2388_vm4 = vcmp.eq.s32.totalorder %v2356_v28, 1  ;;  %v8601_v24 = vld [vmem:[#allocation31_spill] sm:$0xff] }
 0x2fe   : > { %v2229_v45 = vadd.f32 -0.16666667, %v2197_v55  ;;  %4121 = vmatmul.msk.f32.gmra.mxu1 %vm1385_vm14, %v6864_v52  ;;  %v2148_v13 = vadd.f32 0.008333334, %v2116_v30  ;;  %v2149_v9 = vadd.f32 0.008333334, %v2117_v58  ;;  %v8602_v55 = vcvt.f32.s32 %v8601_v24  ;;  %v7110_v58 = vpop.permute.xlu0 %2474 }
 0x2ff   : > { %v2324_v29 = vadd.f32 %v2292_v41, %v6694_v21  ;;  %v2220_v63 = vadd.f32 -0.16666667, %v2188_v20  ;;  %v2189_v32 = vmul.f32 %v2157_v18, %v8583_v42  ;;  %vm2389_vm5 = vcmp.eq.s32.totalorder %v2357_v40, 1 }
 0x300   : > { %v2261_v3 = vmul.f32 %v2229_v45, %v6727_v35  ;;  %v2180_v47 = vmul.f32 %v2148_v13, %v8584_v36  ;;  %v2181_v21 = vmul.f32 %v2149_v9, %v8585_v60  ;;  %vm2380_vm6 = vcmp.eq.s32.totalorder %v2348_v8, 1 }
 0x301   : > { %v2420_v49 = vsub.f32 0.0, %v2324_v29  ;;  %v2252_v0 = vmul.f32 %v2220_v63, %v8582_v43  ;;  %v2221_v12 = vadd.f32 -0.16666667, %v2189_v32  ;;  %v2341_v46 = vand.u32 1, %v8602_v55 }
 0x302   : > { %v2293_v14 = vmul.f32 %v2261_v3, %v8588_v37  ;;  %v2212_v7 = vadd.f32 -0.16666667, %v2180_v47  ;;  %v2213_v62 = vadd.f32 -0.16666667, %v2181_v21 }
 0x303   : > { %v2452_v1 = vsel %vm2388_vm4, %v2420_v49, %v2324_v29  ;;  %v2284_v34 = vmul.f32 %v2252_v0, %v8591_v50  ;;  %v2253_v35 = vmul.f32 %v2221_v12, %v8583_v42  ;;  %v8596_v42 = vcvt.f32.s32 %v8595_v59 }
 0x304   : > { %2691 = vmatpush.msrb.mxu2 %v2452_v1  ;;  %v2325_v43 = vadd.f32 %v2293_v14, %v8588_v37  ;;  %v2244_v31 = vmul.f32 %v2212_v7, %v8584_v36  ;;  %v2245_v22 = vmul.f32 %v2213_v62, %v8585_v60  ;;  %v8598_v36 = vld [vmem:[#allocation26_spill] sm:$0xff]  ;;  %vm2373_vm9 = vcmp.eq.s32.totalorder %v2341_v46, 1  ;;  %v7131_v14 = vpop.permute.xlu1 %2484 }
 0x305   : > { %v2316_v5 = vadd.f32 %v2284_v34, %v8591_v50  ;;  %v2285_v48 = vmul.f32 %v2253_v35, %v8594_v17  ;;  %4118 = vmatmul.msk.f32.gmra.mxu0 %vm1385_vm14, %v6904_v4  ;;  %v2349_v15 = vand.u32 1, %v8596_v42  ;;  %v8599_v16 = vcvt.f32.s32 %v8598_v36 }
 0x306   : > { %v2421_v11 = vsub.f32 0.0, %v2325_v43  ;;  %4122 = vmatmul.msk.f32.gmra.mxu1 %vm1385_vm14, %v6904_v4  ;;  %v2276_v19 = vmul.f32 %v2244_v31, %v8597_v38  ;;  %v2277_v56 = vmul.f32 %v2245_v22, %v8600_v27  ;;  %v8603_v49 = vmov -0.5  }
 0x307   : > { %v2412_v51 = vsub.f32 0.0, %v2316_v5  ;;  %v2317_v25 = vadd.f32 %v2285_v48, %v8594_v17  ;;  %v2340_v39 = vand.u32 1, %v8599_v16  ;;  %vm2381_vm7 = vcmp.eq.s32.totalorder %v2349_v15, 1 }
 0x308   : > { %v2453_v44 = vsel %vm2389_vm5, %v2421_v11, %v2325_v43  ;;  %v2308_v60 = vadd.f32 %v2276_v19, %v8597_v38  ;;  %v2309_v41 = vadd.f32 %v2277_v56, %v8600_v27 }
 0x309   : > { %2720 = vmatpush.msrb.mxu3 %v2453_v44  ;;  %v2444_v33 = vsel %vm2380_vm6, %v2412_v51, %v2316_v5  ;;  %v2413_v53 = vsub.f32 0.0, %v2317_v25  ;;  %vm2372_vm8 = vcmp.eq.s32.totalorder %v2340_v39, 1 }
 0x30a   : > { %2692 = vmatpush.msrb.mxu2 %v2444_v33  ;;  %v2404_v18 = vsub.f32 0.0, %v2308_v60  ;;  %v2405_v30 = vsub.f32 0.0, %v2309_v41 }
 0x30b   : > { %v2445_v20 = vsel %vm2381_vm7, %v2413_v53, %v2317_v25 }
 0x30c   : > { %2721 = vmatpush.msrb.mxu3 %v2445_v20  ;;  %v2436_v54 = vsel %vm2372_vm8, %v2404_v18, %v2308_v60  ;;  %v2437_v2 = vsel %vm2373_vm9, %v2405_v30, %v2309_v41 }
 0x30d   : > { %4119 = vmatmul.msk.f32.gmra.mxu0 %vm1385_vm14, %v6942_v6  ;;  %2693 = vmatpush.msrb.mxu2 %v2436_v54 }
 0x30e   : > { %4123 = vmatmul.msk.f32.gmra.mxu1 %vm1385_vm14, %v6942_v6  ;;  %2722 = vmatpush.msrb.mxu3 %v2437_v2 }
 0x30f   : > { %4124 = vmatmul.msk.f32.vlgmr.msrb.gmra.mxu2 %vm1385_vm14, %v6830_v23  ;;  %4128 = vmatmul.msk.f32.vlgmr.msrb.gmra.mxu3 %vm1385_vm14, %v6830_v23  ;;  %v7108_v23 = vpop.permute.xlu2 %2489 }
 0x317   : > { %4125 = vmatmul.msk.f32.gmra.mxu2 %vm1385_vm14, %v6864_v52  ;;  %4129 = vmatmul.msk.f32.gmra.mxu3 %vm1385_vm14, %v6864_v52  ;;  %v7119_v13 = vpop.permute.xlu2 %2479 }
 0x31f   : > { %4126 = vmatmul.msk.f32.gmra.mxu2 %vm1385_vm14, %v6904_v4  ;;  %4130 = vmatmul.msk.f32.gmra.mxu3 %vm1385_vm14, %v6904_v4 }
 0x327   : > { %4127 = vmatmul.msk.f32.gmra.mxu2 %vm1385_vm14, %v6942_v6  ;;  %4131 = vmatmul.msk.f32.gmra.mxu3 %vm1385_vm14, %v6942_v6 }
 0x343   : > { %v2521_v28 = vpop.f32.mrf.mxu0 }
 0x344   : > { %v7113_v52 = vadd.f32 %v2521_v28, %v7110_v58 }
 0x345   : > { %v2550_v45 = vpop.f32.mrf.mxu1 }
 0x346   : > { %v2736_v29 = vmul.f32 0.31830987, %v7113_v52  ;;  %v7117_v63 = vadd.f32 %v2550_v45, %v7110_v58 }
 0x348   : > { %vm2768_vm10 = vcmp.ge.f32.partialorder %v2736_v29, 0.0  ;;  %v2737_v6 = vmul.f32 0.31830987, %v7117_v63 }
 0x349   : > { %v2800_v0 = vsel %vm2768_vm10, 0.5, %v8603_v49 }
 0x34a   : > { %vm2769_vm11 = vcmp.ge.f32.partialorder %v2737_v6, 0.0  ;;  %v2832_v47 = vadd.f32 %v2800_v0, %v2736_v29 }
 0x34b   : > { %v2524_v4 = vpop.f32.mrf.mxu0  ;;  %v2801_v26 = vsel %vm2769_vm11, 0.5, %v8603_v49 }
 0x34c   : > { %v7123_v3 = vadd.f32 %v2524_v4, %v7119_v13  ;;  %v4465_v1 = vceil.f32 %v2832_v47  ;;  %v4466_v50 = vfloor.f32 %v2832_v47  ;;  %vm4464_vm15 = vcmp.lt.s32.totalorder %v2832_v47, 0 }
 0x34d   : > { %v2833_v34 = vadd.f32 %v2801_v26, %v2737_v6 }
 0x34e   : > { %v2553_v32 = vpop.f32.mrf.mxu1  ;;  %v2744_v12 = vmul.f32 0.31830987, %v7123_v3  ;;  %v7146_v62 = vsel %vm4464_vm15, %v4465_v1, %v4466_v50 }
 0x34f   : > { %v7126_v9 = vadd.f32 %v2553_v32, %v7119_v13  ;;  %8604 = vst [vmem:[#allocation20_spill] sm:$0xff] %v7146_v62  ;;  %v4470_v17 = vceil.f32 %v2833_v34  ;;  %v4471_v48 = vfloor.f32 %v2833_v34  ;;  %vm4469_vm1 = vcmp.lt.s32.totalorder %v2833_v34, 0 }
 0x350   : > { %vm2776_vm12 = vcmp.ge.f32.partialorder %v2744_v12, 0.0  ;;  %v8388_v15 = vcvt.f32.s32 %v7146_v62 }
 0x351   : > { %v2745_v37 = vmul.f32 0.31830987, %v7126_v9  ;;  %v2808_v43 = vsel %vm2776_vm12, 0.5, %v8603_v49  ;;  %v7152_v51 = vsel %vm4469_vm1, %v4470_v17, %v4471_v48 }
 0x352   : > { %v2840_v31 = vadd.f32 %v2808_v43, %v2744_v12  ;;  %8605 = vst [vmem:[#allocation6_spill] sm:$0xff] %v7152_v51  ;;  %v2896_v60 = vcvt.s32.f32 %v8388_v15  ;;  %v8387_v41 = vcvt.f32.s32 %v7152_v51 }
 0x353   : > { %v2527_v10 = vpop.f32.mrf.mxu0  ;;  %vm2777_vm13 = vcmp.ge.f32.partialorder %v2745_v37, 0.0 }
 0x354   : > { %v7135_v40 = vadd.f32 %v2527_v10, %v7131_v14  ;;  %v2809_v8 = vsel %vm2777_vm13, 0.5, %v8603_v49  ;;  %v4505_v25 = vceil.f32 %v2840_v31  ;;  %v4506_v44 = vfloor.f32 %v2840_v31 }
 0x355   : > { %v2841_v11 = vadd.f32 %v2809_v8, %v2745_v37  ;;  %vm4504_vm4 = vcmp.lt.s32.totalorder %v2840_v31, 0  ;;  %v2928_v6 = vmul.f32 3.140625, %v2896_v60  ;;  %v2992_v12 = vmul.f32 0.0009676536, %v2896_v60 }
 0x356   : > { %v2556_v21 = vpop.f32.mrf.mxu1  ;;  %v2752_v7 = vmul.f32 0.31830987, %v7135_v40  ;;  %v7169_v20 = vsel %vm4504_vm4, %v4505_v25, %v4506_v44  ;;  %v2897_v47 = vcvt.s32.f32 %v8387_v41 }
 0x357   : > { %v7143_v61 = vadd.f32 %v2556_v21, %v7131_v14  ;;  %v4510_v36 = vceil.f32 %v2841_v11  ;;  %v4511_v16 = vfloor.f32 %v2841_v11  ;;  %vm4509_vm5 = vcmp.lt.s32.totalorder %v2841_v11, 0 }
 0x358   : > { %vm2784_vm0 = vcmp.ge.f32.partialorder %v2752_v7, 0.0  ;;  %v8390_v37 = vcvt.f32.s32 %v7169_v20  ;;  %v2960_v43 = vsub.f32 %v7113_v52, %v2928_v6  ;;  %v2929_v17 = vmul.f32 3.140625, %v2897_v47 }
 0x359   : > { %v2753_v59 = vmul.f32 0.31830987, %v7143_v61  ;;  %v2816_v22 = vsel %vm2784_vm0, 0.5, %v8603_v49  ;;  %v7171_v18 = vsel %vm4509_vm5, %v4510_v36, %v4511_v16  ;;  %v2993_v48 = vmul.f32 0.0009676536, %v2897_v47 }
 0x35a   : > { %v2848_v33 = vadd.f32 %v2816_v22, %v2752_v7  ;;  %v8389_v26 = vcvt.f32.s32 %v7171_v18 }
 0x35b   : > { %v2579_v35 = vpop.f32.mrf.mxu2  ;;  %vm2785_vm3 = vcmp.ge.f32.partialorder %v2753_v59, 0.0  ;;  %v2530_v27 = vpop.f32.mrf.mxu0 }
 0x35c   : > { %v7140_v57 = vadd.f32 %v2579_v35, %v7110_v58  ;;  %v2817_v24 = vsel %vm2785_vm3, 0.5, %v8603_v49  ;;  %v7166_v46 = vadd.f32 %v2530_v27, %v7108_v23  ;;  %v4545_v30 = vceil.f32 %v2848_v33 }
 0x35d   : > { %v4546_v54 = vfloor.f32 %v2848_v33  ;;  %vm4544_vm7 = vcmp.lt.s32.totalorder %v2848_v33, 0  ;;  %v2849_v4 = vadd.f32 %v2817_v24, %v2753_v59  ;;  %v2904_v59 = vcvt.s32.f32 %v8390_v37 }
 0x35e   : > { %v2738_v5 = vmul.f32 0.31830987, %v7140_v57  ;;  %v2760_v28 = vmul.f32 0.31830987, %v7166_v46  ;;  %v7200_v27 = vsub.f32 %v2960_v43, %v2992_v12 }
 0x35f   : > { %v7180_v10 = vsel %vm4544_vm7, %v4545_v30, %v4546_v54  ;;  %v4550_v35 = vceil.f32 %v2849_v4  ;;  %v4551_v7 = vfloor.f32 %v2849_v4  ;;  %vm4549_vm11 = vcmp.lt.s32.totalorder %v2849_v4, 0 }
 0x360   : > { %vm2770_vm2 = vcmp.ge.f32.partialorder %v2738_v5, 0.0  ;;  %vm2792_vm10 = vcmp.ge.f32.partialorder %v2760_v28, 0.0  ;;  %v8392_v31 = vcvt.f32.s32 %v7180_v10  ;;  %8607 = vst [vmem:[#allocation15_spill] sm:$0xff] %v7200_v27  ;;  %v2936_v30 = vmul.f32 3.140625, %v2904_v59 }
 0x361   : > { %v2608_v42 = vpop.f32.mrf.mxu3  ;;  %v2802_v38 = vsel %vm2770_vm2, 0.5, %v8603_v49  ;;  %v2824_v11 = vsel %vm2792_vm10, 0.5, %v8603_v49 }
 0x362   : > { %v7156_v19 = vadd.f32 %v2608_v42, %v7110_v58  ;;  %v2834_v53 = vadd.f32 %v2802_v38, %v2738_v5  ;;  %v2905_v42 = vcvt.s32.f32 %v8389_v26  ;;  %v7197_v38 = vsel %vm4549_vm11, %v4550_v35, %v4551_v7 }
 0x363   : > { %v2582_v39 = vpop.f32.mrf.mxu2 }
 0x364   : > { %v2739_v56 = vmul.f32 0.31830987, %v7156_v19  ;;  %v7163_v55 = vadd.f32 %v2582_v39, %v7119_v13  ;;  %v4475_v45 = vceil.f32 %v2834_v53  ;;  %v4476_v29 = vfloor.f32 %v2834_v53 }
 0x365   : > { %vm4474_vm8 = vcmp.lt.s32.totalorder %v2834_v53, 0  ;;  %v2856_v39 = vadd.f32 %v2824_v11, %v2760_v28  ;;  %v2961_v53 = vsub.f32 %v7117_v63, %v2929_v17  ;;  %v2937_v54 = vmul.f32 3.140625, %v2905_v42  ;;  %v2559_v28 = vpop.f32.mrf.mxu1 }
 0x366   : > { %vm2771_vm6 = vcmp.ge.f32.partialorder %v2739_v56, 0.0  ;;  %v2746_v2 = vmul.f32 0.31830987, %v7163_v55  ;;  %v7186_v50 = vsel %vm4474_vm8, %v4475_v45, %v4476_v29  ;;  %v8391_v45 = vcvt.f32.s32 %v7197_v38 }
 0x367   : > { %v2803_v0 = vsel %vm2771_vm6, 0.5, %v8603_v49  ;;  %8606 = vst [vmem:[#allocation21_spill] sm:$0xff] %v7186_v50  ;;  %v8384_v22 = vcvt.f32.s32 %v7186_v50  ;;  %vm4584_vm0 = vcmp.lt.s32.totalorder %v2856_v39, 0  ;;  %v4585_v60 = vceil.f32 %v2856_v39 }
 0x368   : > { %vm2778_vm9 = vcmp.ge.f32.partialorder %v2746_v2, 0.0  ;;  %v2835_v34 = vadd.f32 %v2803_v0, %v2739_v56  ;;  %v2912_v56 = vcvt.s32.f32 %v8392_v31  ;;  %v4586_v24 = vfloor.f32 %v2856_v39 }
 0x369   : > { %v2611_v32 = vpop.f32.mrf.mxu3  ;;  %v2810_v21 = vsel %vm2778_vm9, 0.5, %v8603_v49  ;;  %v2898_v29 = vcvt.s32.f32 %v8384_v22  ;;  %v7216_v63 = vadd.f32 %v2559_v28, %v7108_v23  ;;  %v7225_v7 = vsub.f32 %v2961_v53, %v2993_v48 }
 0x36a   : > { %v7184_v1 = vadd.f32 %v2611_v32, %v7119_v13  ;;  %v2842_v8 = vadd.f32 %v2810_v21, %v2746_v2  ;;  %vm4479_vm13 = vcmp.lt.s32.totalorder %v2835_v34, 0  ;;  %v4480_v52 = vceil.f32 %v2835_v34 }
 0x36b   : > { %v4481_v25 = vfloor.f32 %v2835_v34  ;;  %v7213_v32 = vsel %vm4584_vm0, %v4585_v60, %v4586_v24  ;;  %v2944_v6 = vmul.f32 3.140625, %v2912_v56  ;;  %v7221_v21 = vmul.f32 %v7200_v27, %v7200_v27  ;;  %8610 = vst [vmem:[#allocation22_spill] sm:$0xff] %v7225_v7 }
 0x36c   : > { %v2747_v5 = vmul.f32 0.31830987, %v7184_v1  ;;  %v4515_v44 = vceil.f32 %v2842_v8  ;;  %v4516_v36 = vfloor.f32 %v2842_v8  ;;  %vm4514_vm15 = vcmp.lt.s32.totalorder %v2842_v8, 0 }
 0x36d   : > { %v7206_v2 = vsel %vm4479_vm13, %v4480_v52, %v4481_v25  ;;  %v8394_v47 = vcvt.f32.s32 %v7213_v32  ;;  %v2761_v35 = vmul.f32 0.31830987, %v7216_v63  ;;  %v2913_v43 = vcvt.s32.f32 %v8391_v45 }
 0x36e   : > { %vm2779_vm12 = vcmp.ge.f32.partialorder %v2747_v5, 0.0  ;;  %8608 = vst [vmem:[#allocation16_spill] sm:$0xff] %v7206_v2  ;;  %v7211_v4 = vsel %vm4514_vm15, %v4515_v44, %v4516_v36  ;;  %v8383_v34 = vcvt.f32.s32 %v7206_v2  ;;  %v2968_v17 = vsub.f32 %v7123_v3, %v2936_v30 }
 0x36f   : > { %v2811_v16 = vsel %vm2779_vm12, 0.5, %v8603_v49  ;;  %8609 = vst [vmem:[#allocation9_spill] sm:$0xff] %v7211_v4  ;;  %v8386_v8 = vcvt.f32.s32 %v7211_v4  ;;  %v3000_v11 = vmul.f32 0.0009676536, %v2904_v59  ;;  %v2969_v52 = vsub.f32 %v7126_v9, %v2937_v54 }
 0x370   : > { %v2843_v33 = vadd.f32 %v2811_v16, %v2747_v5  ;;  %v2920_v5 = vcvt.s32.f32 %v8394_v47  ;;  %vm2793_vm2 = vcmp.ge.f32.partialorder %v2761_v35, 0.0  ;;  %v7234_v25 = vmul.f32 3.140625, %v2898_v29 }
 0x371   : > { %v2976_v44 = vsub.f32 %v7135_v40, %v2944_v6  ;;  %v3001_v16 = vmul.f32 0.0009676536, %v2905_v42  ;;  %v2899_v39 = vcvt.s32.f32 %v8383_v34  ;;  %v2825_v53 = vsel %vm2793_vm2, 0.5, %v8603_v49 }
 0x372   : > { %v4520_v0 = vceil.f32 %v2843_v33  ;;  %v4521_v12 = vfloor.f32 %v2843_v33  ;;  %vm4519_vm1 = vcmp.lt.s32.totalorder %v2843_v33, 0  ;;  %v2952_v36 = vmul.f32 3.140625, %v2920_v5 }
 0x373   : > { %v3008_v33 = vmul.f32 0.0009676536, %v2912_v56  ;;  %v7242_v60 = vmul.f32 3.140625, %v2913_v43  ;;  %v2906_v3 = vcvt.s32.f32 %v8386_v8  ;;  %v3016_v59 = vmul.f32 0.0009676536, %v2920_v5 }
 0x374   : > { %v7237_v48 = vsel %vm4519_vm1, %v4520_v0, %v4521_v12  ;;  %v2984_v9 = vsub.f32 %v7166_v46, %v2952_v36  ;;  %v7247_v24 = vsub.f32 %v2968_v17, %v3000_v11  ;;  %v7249_v40 = vsub.f32 %v2969_v52, %v3001_v16  ;;  %v2585_v11 = vpop.f32.mrf.mxu2  ;;  %v2614_v52 = vpop.f32.mrf.mxu3 }
 0x375   : > { %8611 = vst [vmem:[#allocation10_spill] sm:$0xff] %v7237_v48  ;;  %v8385_v42 = vcvt.f32.s32 %v7237_v48  ;;  %v2857_v30 = vadd.f32 %v2825_v53, %v2761_v35  ;;  %v7254_v54 = vmul.f32 0.0009676536, %v2898_v29  ;;  %v7256_v28 = vsub.f32 %v2976_v44, %v3008_v33  ;;  %v2666_v53 = vpop.f32.mrf.mxu1 }
 0x376   : > { %v7258_v6 = vsub.f32 %v2984_v9, %v3016_v59  ;;  %v7260_v0 = vmul.f32 3.140625, %v2899_v39  ;;  %v7264_v17 = vmul.f32 0.0009676536, %v2913_v43  ;;  %v7266_v35 = vmul.f32 3.140625, %v2906_v3  ;;  %v2637_v43 = vpop.f32.mrf.mxu0 }
 0x377   : > { %vm4589_vm3 = vcmp.lt.s32.totalorder %v2857_v30, 0  ;;  %v4590_v46 = vceil.f32 %v2857_v30  ;;  %v4591_v12 = vfloor.f32 %v2857_v30  ;;  %v2907_v44 = vcvt.s32.f32 %v8385_v42 }
 0x378   : > { %v7270_v29 = vmul.f32 %v7258_v6, %v7258_v6  ;;  %v7277_v16 = vadd.f32 %v2585_v11, %v7131_v14  ;;  %v7280_v33 = vadd.f32 %v2614_v52, %v7131_v14  ;;  %v2995_v9 = vmul.f32 0.0009676536, %v2899_v39 }
 0x379   : > { %v7274_v36 = vsel %vm4589_vm3, %v4590_v46, %v4591_v12  ;;  %v7285_v34 = vadd.f32 %v2637_v43, %v7110_v58  ;;  %v2963_v46 = vsub.f32 %v7156_v19, %v7260_v0  ;;  %v7292_v52 = vadd.f32 %v2666_v53, %v7110_v58 }
 0x37a   : > { %v3112_v59 = vmul.f32 -2.5052108e-08, %v7270_v29  ;;  %v8393_v30 = vcvt.f32.s32 %v7274_v36  ;;  %v2754_v12 = vmul.f32 0.31830987, %v7277_v16  ;;  %v2755_v11 = vmul.f32 0.31830987, %v7280_v33 }
 0x37b   : > { %v3002_v22 = vmul.f32 0.0009676536, %v2906_v3  ;;  %v2740_v8 = vmul.f32 0.31830987, %v7285_v34  ;;  %v2970_v43 = vsub.f32 %v7163_v55, %v7266_v35  ;;  %v2939_v41 = vmul.f32 3.140625, %v2907_v44 }
 0x37c   : > { %v3144_v42 = vadd.f32 2.7557319e-06, %v3112_v59  ;;  %v2921_v39 = vcvt.s32.f32 %v8393_v30  ;;  %vm2786_vm4 = vcmp.ge.f32.partialorder %v2754_v12, 0.0  ;;  %vm2787_vm5 = vcmp.ge.f32.partialorder %v2755_v11, 0.0 }
 0x37d   : > { %v2818_v15 = vsel %vm2786_vm4, 0.5, %v8603_v49  ;;  %v2741_v53 = vmul.f32 0.31830987, %v7292_v52  ;;  %v2819_v26 = vsel %vm2787_vm5, 0.5, %v8603_v49  ;;  %vm2772_vm6 = vcmp.ge.f32.partialorder %v2740_v8, 0.0 }
 0x37e   : > { %v3176_v19 = vmul.f32 %v3144_v42, %v7270_v29  ;;  %v2953_v0 = vmul.f32 3.140625, %v2921_v39  ;;  %v3017_v3 = vmul.f32 0.0009676536, %v2921_v39  ;;  %v2850_v59 = vadd.f32 %v2818_v15, %v2754_v12  ;;  %v2588_v15 = vpop.f32.mrf.mxu2 }
 0x37f   : > { %v2851_v31 = vadd.f32 %v2819_v26, %v2755_v11  ;;  %v2804_v55 = vsel %vm2772_vm6, 0.5, %v8603_v49  ;;  %v2971_v12 = vsub.f32 %v7184_v1, %v2939_v41  ;;  %vm2773_vm9 = vcmp.ge.f32.partialorder %v2741_v53, 0.0 }
 0x380   : > { %v3208_v37 = vadd.f32 -0.0001984127, %v3176_v19  ;;  %v2985_v45 = vsub.f32 %v7216_v63, %v2953_v0  ;;  %vm4554_vm7 = vcmp.lt.s32.totalorder %v2850_v59, 0  ;;  %v4555_v35 = vceil.f32 %v2850_v59 }
 0x381   : > { %v4556_v30 = vfloor.f32 %v2850_v59  ;;  %v2836_v42 = vadd.f32 %v2804_v55, %v2740_v8  ;;  %vm4559_vm8 = vcmp.lt.s32.totalorder %v2851_v31, 0  ;;  %v4560_v39 = vceil.f32 %v2851_v31 }
 0x382   : > { %v3240_v47 = vmul.f32 %v3208_v37, %v7270_v29  ;;  %v7306_v5 = vsub.f32 %v2985_v45, %v3017_v3  ;;  %v4561_v19 = vfloor.f32 %v2851_v31  ;;  %v7319_v0 = vadd.f32 %v2588_v15, %v7108_v23 }
 0x383   : > { %v7309_v56 = vsel %vm4554_vm7, %v4555_v35, %v4556_v30  ;;  %vm4484_vm10 = vcmp.lt.s32.totalorder %v2836_v42, 0  ;;  %v4485_v45 = vceil.f32 %v2836_v42  ;;  %v4486_v11 = vfloor.f32 %v2836_v42 }
 0x384   : > { %8612 = vst [vmem:[#allocation11_spill] sm:$0xff] %v7309_v56  ;;  %v3272_v26 = vadd.f32 0.008333334, %v3240_v47  ;;  %v7313_v63 = vmul.f32 %v7306_v5, %v7306_v5  ;;  %v8395_v8 = vcvt.f32.s32 %v7309_v56  ;;  %v7316_v37 = vsel %vm4559_vm8, %v4560_v39, %v4561_v19 }
 0x385   : > { %8613 = vst [vmem:[#allocation17_spill] sm:$0xff] %v7316_v37  ;;  %v8396_v47 = vcvt.f32.s32 %v7316_v37  ;;  %v8614_v30 = vsub.f32 %v7140_v57, %v7234_v25  ;;  %v3003_v59 = vmul.f32 0.0009676536, %v2907_v44  ;;  %v2805_v55 = vsel %vm2773_vm9, 0.5, %v8603_v49 }
 0x386   : > { %v3304_v41 = vmul.f32 %v3272_v26, %v7270_v29  ;;  %v3113_v1 = vmul.f32 -2.5052108e-08, %v7313_v63  ;;  %v2914_v31 = vcvt.s32.f32 %v8395_v8  ;;  %v2762_v35 = vmul.f32 0.31830987, %v7319_v0 }
 0x387   : > { %v7330_v3 = vsub.f32 %v8614_v30, %v7254_v54  ;;  %v7336_v39 = vmul.f32 %v7225_v7, %v7225_v7  ;;  %v7338_v15 = vsub.f32 %v2963_v46, %v2995_v9  ;;  %v8617_v19 = vsub.f32 %v7143_v61, %v7242_v60  ;;  %v2617_v60 = vpop.f32.mrf.mxu3 }
 0x388   : > { %v3145_v57 = vadd.f32 2.7557319e-06, %v3113_v1  ;;  %v7348_v25 = vmul.f32 %v7247_v24, %v7247_v24  ;;  %v7350_v54 = vsub.f32 %v2970_v43, %v3002_v22  ;;  %v7352_v44 = vsub.f32 %v2971_v12, %v3003_v59 }
 0x389   : > { %8615 = vst [vmem:[#allocation13_spill] sm:$0xff] %v7330_v3  ;;  %v7344_v26 = vsub.f32 %v8617_v19, %v7264_v17  ;;  %v7355_v30 = vsel %vm4484_vm10, %v4485_v45, %v4486_v11  ;;  %v3336_v9 = vadd.f32 -0.16666667, %v3304_v41  ;;  %v2946_v46 = vmul.f32 3.140625, %v2914_v31  ;;  %v2640_v11 = vpop.f32.mrf.mxu0  ;;  %v2669_v19 = vpop.f32.mrf.mxu1 }
 0x38a   : > { %8616 = vst [vmem:[#allocation25_spill] sm:$0xff] %v7338_v15  ;;  %v2915_v8 = vcvt.s32.f32 %v8396_v47  ;;  %v2837_v61 = vadd.f32 %v2805_v55, %v2741_v53  ;;  %v7361_v17 = vmul.f32 %v7249_v40, %v7249_v40  ;;  %v7365_v22 = vmul.f32 %v7330_v3, %v7330_v3 }
 0x38b   : > { %8618 = vst [vmem:[#allocation27_spill] sm:$0xff] %v7350_v54  ;;  %v7369_v43 = vmul.f32 %v7256_v28, %v7256_v28  ;;  %vm2794_vm11 = vcmp.ge.f32.partialorder %v2762_v35, 0.0  ;;  %v7373_v42 = vmul.f32 %v7338_v15, %v7338_v15  ;;  %v7377_v53 = vmul.f32 %v7344_v26, %v7344_v26 }
 0x38c   : > { %8619 = vst [vmem:[#allocation18_spill] sm:$0xff] %v7352_v44  ;;  %v3177_v12 = vmul.f32 %v3145_v57, %v7313_v63  ;;  %v7383_v41 = vmul.f32 %v7350_v54, %v7350_v54  ;;  %v7387_v1 = vmul.f32 %v7352_v44, %v7352_v44  ;;  %v3010_v59 = vmul.f32 0.0009676536, %v2914_v31 }
 0x38d   : > { %8620 = vst [vmem:[#allocation19_spill] sm:$0xff] %v7355_v30  ;;  %v2826_v55 = vsel %vm2794_vm11, 0.5, %v8603_v49  ;;  %v3368_v47 = vmul.f32 %v3336_v9, %v7270_v29  ;;  %v2978_v2 = vsub.f32 %v7277_v16, %v2946_v46  ;;  %v7392_v57 = vmul.f32 3.140625, %v2915_v8 }
 0x38e   : > { %8621 = vst [vmem:[#allocation7_spill] sm:$0xff] %v7365_v22  ;;  %v4490_v45 = vceil.f32 %v2837_v61  ;;  %v4491_v15 = vfloor.f32 %v2837_v61  ;;  %v2858_v3 = vadd.f32 %v2826_v55, %v2762_v35  ;;  %v7395_v50 = vadd.f32 %v2617_v60, %v7108_v23 }
 0x38f   : > { %8622 = vst [vmem:[#allocation8_spill] sm:$0xff] %v7373_v42  ;;  %v7398_v54 = vadd.f32 %v2640_v11, %v7119_v13  ;;  %v3209_v44 = vadd.f32 -0.0001984127, %v3177_v12  ;;  %v8625_v31 = vcvt.f32.s32 %v7355_v30  ;;  %vm4489_vm12 = vcmp.lt.s32.totalorder %v2837_v61, 0 }
 0x390   : > { %8623 = vst [vmem:[#allocation12_spill] sm:$0xff] %v7383_v41  ;;  %v7403_v29 = vadd.f32 %v2669_v19, %v7119_v13  ;;  %v7405_v16 = vmul.f32 0.0009676536, %v2915_v8  ;;  %vm4594_vm13 = vcmp.lt.s32.totalorder %v2858_v3, 0  ;;  %v4595_v9 = vceil.f32 %v2858_v3 }
 0x391   : > { %8624 = vst [vmem:[#allocation29_spill] sm:$0xff] %v7387_v1  ;;  %v2900_v48 = vcvt.s32.f32 %v8625_v31  ;;  %v4596_v46 = vfloor.f32 %v2858_v3  ;;  %v7408_v35 = vmul.f32 %v3368_v47, %v7258_v6  ;;  %v7410_v60 = vsub.f32 %v2978_v2, %v3010_v59  ;;  %v2672_v27 = vpop.f32.mrf.mxu1 }
 0x392   : > { %v2763_v11 = vmul.f32 0.31830987, %v7395_v50  ;;  %v2695_v55 = vpop.f32.mrf.mxu2  ;;  %v7415_v61 = vsel %vm4489_vm12, %v4490_v45, %v4491_v15  ;;  %v2748_v8 = vmul.f32 0.31830987, %v7398_v54  ;;  %v2749_v31 = vmul.f32 0.31830987, %v7403_v29  ;;  %v2724_v59 = vpop.f32.mrf.mxu3 }
 0x393   : > { %8626 = vst [vmem:[#allocation14_spill] sm:$0xff] %v7410_v60  ;;  %v7417_v19 = vsel %vm4594_vm13, %v4595_v9, %v4596_v46  ;;  %v3241_v3 = vmul.f32 %v3209_v44, %v7313_v63  ;;  %v7422_v47 = vmul.f32 3.140625, %v2900_v48  ;;  %v7427_v15 = vadd.f32 %v2695_v55, %v7110_v58 }
 0x394   : > { %8627 = vst [vmem:[#allocation33_spill] sm:$0xff] %v7415_v61  ;;  %v8414_v2 = vcvt.f32.s32 %v7417_v19  ;;  %vm2795_vm15 = vcmp.ge.f32.partialorder %v2763_v11, 0.0  ;;  %vm2780_vm0 = vcmp.ge.f32.partialorder %v2748_v8, 0.0  ;;  %vm2781_vm1 = vcmp.ge.f32.partialorder %v2749_v31, 0.0 }
 0x395   : > { %v2827_v12 = vsel %vm2795_vm15, 0.5, %v8603_v49  ;;  %v7429_v45 = vmul.f32 0.0009676536, %v2900_v48  ;;  %v2812_v30 = vsel %vm2780_vm0, 0.5, %v8603_v49  ;;  %v2813_v4 = vsel %vm2781_vm1, 0.5, %v8603_v49 }
 0x396   : > { %v2922_v44 = vcvt.s32.f32 %v8414_v2  ;;  %v2859_v46 = vadd.f32 %v2827_v12, %v2763_v11  ;;  %v2742_v42 = vmul.f32 0.31830987, %v7427_v15  ;;  %v7438_v37 = vadd.f32 %v2724_v59, %v7110_v58 }
 0x397   : > { %v3273_v56 = vadd.f32 0.008333334, %v3241_v3  ;;  %v7442_v48 = vmul.f32 %v7410_v60, %v7410_v60  ;;  %v2844_v12 = vadd.f32 %v2812_v30, %v2748_v8  ;;  %v2845_v7 = vadd.f32 %v2813_v4, %v2749_v31  ;;  %v2643_v30 = vpop.f32.mrf.mxu0 }
 0x398   : > { %v2954_v55 = vmul.f32 3.140625, %v2922_v44  ;;  %v3018_v9 = vmul.f32 0.0009676536, %v2922_v44  ;;  %vm4599_vm2 = vcmp.lt.s32.totalorder %v2859_v46, 0  ;;  %v4600_v22 = vceil.f32 %v2859_v46 }
 0x399   : > { %8628 = vst [vmem:[#allocation32_spill] sm:$0xff] %v7442_v48  ;;  %v4601_v2 = vfloor.f32 %v2859_v46  ;;  %vm2774_vm3 = vcmp.ge.f32.partialorder %v2742_v42, 0.0  ;;  %v2743_v1 = vmul.f32 0.31830987, %v7438_v37  ;;  %v8629_v58 = vcvt.f32.s32 %v7415_v61 }
 0x39a   : > { %v2986_v11 = vsub.f32 %v7319_v0, %v2954_v55  ;;  %v4525_v51 = vceil.f32 %v2844_v12  ;;  %v4526_v60 = vfloor.f32 %v2844_v12  ;;  %v3305_v41 = vmul.f32 %v3273_v56, %v7313_v63 }
 0x39b   : > { %v2901_v59 = vcvt.s32.f32 %v8629_v58  ;;  %v7448_v3 = vsel %vm4599_vm2, %v4600_v22, %v4601_v2  ;;  %vm4524_vm4 = vcmp.lt.s32.totalorder %v2844_v12, 0  ;;  %v4530_v0 = vceil.f32 %v2845_v7 }
 0x39c   : > { %v7451_v44 = vsub.f32 %v2986_v11, %v3018_v9  ;;  %v8427_v46 = vcvt.f32.s32 %v7448_v3  ;;  %v4531_v4 = vfloor.f32 %v2845_v7  ;;  %v2806_v8 = vsel %vm2774_vm3, 0.5, %v8603_v49 }
 0x39d   : > { %vm2775_vm5 = vcmp.ge.f32.partialorder %v2743_v1, 0.0  ;;  %vm4529_vm6 = vcmp.lt.s32.totalorder %v2845_v7, 0  ;;  %v2838_v56 = vadd.f32 %v2806_v8, %v2742_v42  ;;  %v2964_v2 = vsub.f32 %v7285_v34, %v7422_v47 }
 0x39e   : > { %v7457_v31 = vmul.f32 %v7451_v44, %v7451_v44  ;;  %v2923_v22 = vcvt.s32.f32 %v8427_v46  ;;  %v2933_v9 = vmul.f32 3.140625, %v2901_v59  ;;  %v7463_v55 = vsel %vm4524_vm4, %v4525_v51, %v4526_v60 }
 0x39f   : > { %8630 = vst [vmem:[#allocation34_spill] sm:$0xff] %v7463_v55  ;;  %v7466_v12 = vadd.f32 %v2643_v30, %v7131_v14  ;;  %v3337_v11 = vadd.f32 -0.16666667, %v3305_v41  ;;  %v2807_v62 = vsel %vm2775_vm5, 0.5, %v8603_v49  ;;  %v7470_v48 = vsel %vm4529_vm6, %v4530_v0, %v4531_v4 }
 0x3a0   : > { %v3114_v58 = vmul.f32 -2.5052108e-08, %v7457_v31  ;;  %v2955_v61 = vmul.f32 3.140625, %v2923_v22  ;;  %8631 = vst [vmem:[#allocation41_spill] sm:$0xff] %v7470_v48  ;;  %vm4494_vm7 = vcmp.lt.s32.totalorder %v2838_v56, 0  ;;  %v4495_v7 = vceil.f32 %v2838_v56 }
 0x3a1   : > { %v4496_v42 = vfloor.f32 %v2838_v56  ;;  %v3019_v51 = vmul.f32 0.0009676536, %v2923_v22  ;;  %v8429_v60 = vcvt.f32.s32 %v7463_v55  ;;  %v2839_v41 = vadd.f32 %v2807_v62, %v2743_v1 }
 0x3a2   : > { %v3146_v8 = vadd.f32 2.7557319e-06, %v3114_v58  ;;  %v2987_v34 = vsub.f32 %v7395_v50, %v2955_v61  ;;  %v2756_v30 = vmul.f32 0.31830987, %v7466_v12  ;;  %v7478_v46 = vadd.f32 %v2672_v27, %v7131_v14 }
 0x3a3   : > { %v7474_v47 = vsel %vm4494_vm7, %v4495_v7, %v4496_v42  ;;  %v8633_v0 = vsub.f32 %v7280_v33, %v7392_v57  ;;  %v8428_v61 = vcvt.f32.s32 %v7470_v48  ;;  %v3369_v22 = vmul.f32 %v3337_v11, %v7313_v63 }
 0x3a4   : > { %8632 = vst [vmem:[#allocation50_spill] sm:$0xff] %v7474_v47  ;;  %v3178_v56 = vmul.f32 %v3146_v8, %v7457_v31  ;;  %v7487_v50 = vsub.f32 %v2987_v34, %v3019_v51  ;;  %v7492_v62 = vsub.f32 %v2964_v2, %v7429_v45  ;;  %v2965_v27 = vsub.f32 %v7292_v52, %v2933_v9  ;;  %v2698_v2 = vpop.f32.mrf.mxu2 }
 0x3a5   : > { %v7484_v4 = vsub.f32 %v8633_v0, %v7405_v16  ;;  %v2997_v1 = vmul.f32 0.0009676536, %v2901_v59  ;;  %v2908_v57 = vcvt.s32.f32 %v8429_v60  ;;  %v8435_v16 = vcvt.f32.s32 %v7474_v47 }
 0x3a6   : > { %8635 = vst [vmem:[#allocation28_spill] sm:$0xff] %v7492_v62  ;;  %v3210_v58 = vadd.f32 -0.0001984127, %v3178_v56  ;;  %v7497_v33 = vmul.f32 %v7487_v50, %v7487_v50  ;;  %v4500_v7 = vceil.f32 %v2839_v41  ;;  %v4501_v42 = vfloor.f32 %v2839_v41 }
 0x3a7   : > { %8634 = vst [vmem:[#allocation51_spill] sm:$0xff] %v7484_v4  ;;  %vm2788_vm8 = vcmp.ge.f32.partialorder %v2756_v30, 0.0  ;;  %v2757_v63 = vmul.f32 0.31830987, %v7478_v46  ;;  %v2909_v59 = vcvt.s32.f32 %v8428_v61  ;;  %vm4499_vm9 = vcmp.lt.s32.totalorder %v2839_v41, 0 }
 0x3a8   : > { %v3242_v45 = vmul.f32 %v3210_v58, %v7457_v31  ;;  %v3115_v52 = vmul.f32 -2.5052108e-08, %v7497_v33  ;;  %v7509_v9 = vmul.f32 %v7484_v4, %v7484_v4  ;;  %v7513_v11 = vmul.f32 %v7492_v62, %v7492_v62  ;;  %v2646_v4 = vpop.f32.mrf.mxu0 }
 0x3a9   : > { %v7515_v8 = vsub.f32 %v2965_v27, %v2997_v1  ;;  %v2820_v34 = vsel %vm2788_vm8, 0.5, %v8603_v49  ;;  %v7519_v51 = vmul.f32 %v3369_v22, %v7306_v5  ;;  %v2940_v56 = vmul.f32 3.140625, %v2908_v57 }
 0x3aa   : > { %8636 = vst [vmem:[#allocation40_spill] sm:$0xff] %v7513_v11  ;;  %v3147_v0 = vadd.f32 2.7557319e-06, %v3115_v52  ;;  %v2902_v41 = vcvt.s32.f32 %v8435_v16  ;;  %v7523_v58 = vsel %vm4499_vm9, %v4500_v7, %v4501_v42  ;;  %v2852_v61 = vadd.f32 %v2820_v34, %v2756_v30 }
 0x3ab   : > { %8637 = vst [vmem:[#allocation43_spill] sm:$0xff] %v7515_v8  ;;  %vm2789_vm10 = vcmp.ge.f32.partialorder %v2757_v63, 0.0  ;;  %v7526_v60 = vadd.f32 %v2698_v2, %v7119_v13  ;;  %v3274_v62 = vadd.f32 0.008333334, %v3242_v45  ;;  %v3004_v1 = vmul.f32 0.0009676536, %v2908_v57 }
 0x3ac   : > { %8638 = vst [vmem:[#allocation23_spill] sm:$0xff] %v7523_v58  ;;  %v3179_v27 = vmul.f32 %v3147_v0, %v7497_v33  ;;  %v2941_v48 = vmul.f32 3.140625, %v2909_v59  ;;  %vm4564_vm11 = vcmp.lt.s32.totalorder %v2852_v61, 0  ;;  %v4565_v22 = vceil.f32 %v2852_v61  ;;  %v2727_v0 = vpop.f32.mrf.mxu3 }
 0x3ad   : > { %v4566_v55 = vfloor.f32 %v2852_v61  ;;  %v2821_v52 = vsel %vm2789_vm10, 0.5, %v8603_v49  ;;  %v2972_v16 = vsub.f32 %v7398_v54, %v2940_v56  ;;  %v2934_v7 = vmul.f32 3.140625, %v2902_v41 }
 0x3ae   : > { %v3211_v11 = vadd.f32 -0.0001984127, %v3179_v27  ;;  %v8439_v30 = vcvt.f32.s32 %v7523_v58  ;;  %v3005_v42 = vmul.f32 0.0009676536, %v2909_v59  ;;  %v2853_v2 = vadd.f32 %v2821_v52, %v2757_v63 }
 0x3af   : > { %v7532_v34 = vsel %vm4564_vm11, %v4565_v22, %v4566_v55  ;;  %v2750_v45 = vmul.f32 0.31830987, %v7526_v60  ;;  %v3306_v57 = vmul.f32 %v3274_v62, %v7457_v31  ;;  %v2973_v61 = vsub.f32 %v7403_v29, %v2941_v48 }
 0x3b0   : > { %8639 = vst [vmem:[#allocation30_spill] sm:$0xff] %v7532_v34  ;;  %v3243_v47 = vmul.f32 %v3211_v11, %v7497_v33  ;;  %v8440_v27 = vcvt.f32.s32 %v7532_v34  ;;  %vm4569_vm12 = vcmp.lt.s32.totalorder %v2853_v2, 0  ;;  %v4570_v54 = vceil.f32 %v2853_v2 }
 0x3b1   : > { %v4571_v56 = vfloor.f32 %v2853_v2  ;;  %vm2782_vm13 = vcmp.ge.f32.partialorder %v2750_v45, 0.0  ;;  %v2966_v55 = vsub.f32 %v7427_v15, %v2934_v7  ;;  %v2903_v63 = vcvt.s32.f32 %v8439_v30  ;;  %v2675_v2 = vpop.f32.mrf.mxu1  ;;  %v2701_v30 = vpop.f32.mrf.mxu2 }
 0x3b2   : > { %v3275_v59 = vadd.f32 0.008333334, %v3243_v47  ;;  %v2916_v62 = vcvt.s32.f32 %v8440_v27  ;;  %v2814_v29 = vsel %vm2782_vm13, 0.5, %v8603_v49  ;;  %v7548_v48 = vadd.f32 %v2727_v0, %v7119_v13 }
 0x3b3   : > { %v7544_v22 = vsel %vm4569_vm12, %v4570_v54, %v4571_v56  ;;  %v7551_v11 = vadd.f32 %v2646_v4, %v7108_v23  ;;  %v7554_v52 = vsub.f32 %v2972_v16, %v3004_v1  ;;  %v7556_v15 = vsub.f32 %v2973_v61, %v3005_v42 }
 0x3b4   : > { %8640 = vst [vmem:[#allocation24_spill] sm:$0xff] %v7544_v22  ;;  %v3307_v47 = vmul.f32 %v3275_v59, %v7497_v33  ;;  %v2948_v7 = vmul.f32 3.140625, %v2916_v62  ;;  %v3338_v27 = vadd.f32 -0.16666667, %v3306_v57  ;;  %v2998_v54 = vmul.f32 0.0009676536, %v2902_v41 }
 0x3b5   : > { %8641 = vst [vmem:[#allocation47_spill] sm:$0xff] %v7554_v52  ;;  %v2846_v56 = vadd.f32 %v2814_v29, %v2750_v45  ;;  %v2764_v58 = vmul.f32 0.31830987, %v7551_v11  ;;  %v7561_v13 = vmul.f32 %v7515_v8, %v7515_v8  ;;  %v2935_v4 = vmul.f32 3.140625, %v2903_v63 }
 0x3b6   : > { %8642 = vst [vmem:[#allocation48_spill] sm:$0xff] %v7556_v15  ;;  %v2751_v16 = vmul.f32 0.31830987, %v7548_v48  ;;  %v3339_v1 = vadd.f32 -0.16666667, %v3307_v47  ;;  %v7565_v42 = vsub.f32 %v2966_v55, %v2998_v54  ;;  %v7568_v61 = vadd.f32 %v2675_v2, %v7108_v23  ;;  %v2730_v47 = vpop.f32.mrf.mxu3 }
 0x3b7   : > { %8643 = vst [vmem:[#allocation38_spill] sm:$0xff] %v7561_v13  ;;  %v7571_v41 = vadd.f32 %v2701_v30, %v7131_v14  ;;  %v2980_v45 = vsub.f32 %v7466_v12, %v2948_v7  ;;  %v4535_v57 = vceil.f32 %v2846_v56  ;;  %v4536_v59 = vfloor.f32 %v2846_v56 }
 0x3b8   : > { %8644 = vst [vmem:[#allocation45_spill] sm:$0xff] %v7565_v42  ;;  %vm2796_vm15 = vcmp.ge.f32.partialorder %v2764_v58, 0.0  ;;  %v3370_v29 = vmul.f32 %v3338_v27, %v7457_v31  ;;  %v7577_v0 = vmul.f32 %v7554_v52, %v7554_v52  ;;  %v7581_v55 = vmul.f32 %v7556_v15, %v7556_v15 }
 0x3b9   : > { %vm4534_vm0 = vcmp.lt.s32.totalorder %v2846_v56, 0  ;;  %v2967_v30 = vsub.f32 %v7438_v37, %v2935_v4  ;;  %v3012_v2 = vmul.f32 0.0009676536, %v2916_v62  ;;  %v8647_v12 = vcvt.f32.s32 %v7544_v22 }
 0x3ba   : > { %8645 = vst [vmem:[#allocation42_spill] sm:$0xff] %v7577_v0  ;;  %vm2783_vm1 = vcmp.ge.f32.partialorder %v2751_v16, 0.0  ;;  %v7588_v31 = vmul.f32 %v7565_v42, %v7565_v42  ;;  %v2828_v27 = vsel %vm2796_vm15, 0.5, %v8603_v49  ;;  %v2765_v54 = vmul.f32 0.31830987, %v7568_v61 }
 0x3bb   : > { %8646 = vst [vmem:[#allocation52_spill] sm:$0xff] %v7581_v55  ;;  %v2917_v7 = vcvt.s32.f32 %v8647_v12  ;;  %v2758_v8 = vmul.f32 0.31830987, %v7571_v41  ;;  %v3371_v56 = vmul.f32 %v3339_v1, %v7497_v33  ;;  %v2999_v15 = vmul.f32 0.0009676536, %v2903_v63  ;;  %v2704_v1 = vpop.f32.mrf.mxu2 }
 0x3bc   : > { %8648 = vst [vmem:[#allocation49_spill] sm:$0xff] %v7588_v31  ;;  %v7594_v52 = vsub.f32 %v2980_v45, %v3012_v2  ;;  %v7596_v37 = vsel %vm4534_vm0, %v4535_v57, %v4536_v59  ;;  %v2815_v62 = vsel %vm2783_vm1, 0.5, %v8603_v49  ;;  %v2860_v4 = vadd.f32 %v2828_v27, %v2764_v58 }
 0x3bd   : > { %8650 = vst [vmem:[#allocation36_spill] sm:$0xff] %v7596_v37  ;;  %vm2797_vm2 = vcmp.ge.f32.partialorder %v2765_v54, 0.0  ;;  %vm2790_vm3 = vcmp.ge.f32.partialorder %v2758_v8, 0.0  ;;  %v7600_v12 = vmul.f32 %v3370_v29, %v7451_v44  ;;  %v7602_v42 = vsub.f32 %v2967_v30, %v2999_v15 }
 0x3be   : > { %8649 = vst [vmem:[#allocation44_spill] sm:$0xff] %v7594_v52  ;;  %v2949_v31 = vmul.f32 3.140625, %v2917_v7  ;;  %v2829_v22 = vsel %vm2797_vm2, 0.5, %v8603_v49  ;;  %v3013_v13 = vmul.f32 0.0009676536, %v2917_v7  ;;  %v8453_v33 = vcvt.f32.s32 %v7596_v37 }
 0x3bf   : > { %8651 = vst [vmem:[#allocation46_spill] sm:$0xff] %v7602_v42  ;;  %vm4604_vm4 = vcmp.lt.s32.totalorder %v2860_v4, 0  ;;  %v4605_v63 = vceil.f32 %v2860_v4  ;;  %v2847_v45 = vadd.f32 %v2815_v62, %v2751_v16  ;;  %v4606_v57 = vfloor.f32 %v2860_v4  ;;  %v2733_v4 = vpop.f32.mrf.mxu3 }
 0x3c0   : > { %v2861_v59 = vadd.f32 %v2829_v22, %v2765_v54  ;;  %v2822_v58 = vsel %vm2790_vm3, 0.5, %v8603_v49  ;;  %v7608_v2 = vmul.f32 %v3371_v56, %v7487_v50  ;;  %v7612_v15 = vmul.f32 %v7594_v52, %v7594_v52 }
 0x3c1   : > { %v2854_v29 = vadd.f32 %v2822_v58, %v2758_v8  ;;  %v7615_v30 = vadd.f32 %v2730_v47, %v7131_v14  ;;  %v7617_v7 = vsel %vm4604_vm4, %v4605_v63, %v4606_v57  ;;  %v7620_v16 = vadd.f32 %v2704_v1, %v7108_v23 }
 0x3c2   : > { %vm4609_vm5 = vcmp.lt.s32.totalorder %v2861_v59, 0  ;;  %v4610_v27 = vceil.f32 %v2861_v59  ;;  %v2981_v22 = vsub.f32 %v7478_v46, %v2949_v31  ;;  %v2910_v54 = vcvt.s32.f32 %v8453_v33 }
 0x3c3   : > { %v8458_v56 = vcvt.f32.s32 %v7617_v7  ;;  %v4611_v62 = vfloor.f32 %v2861_v59  ;;  %vm4539_vm6 = vcmp.lt.s32.totalorder %v2847_v45, 0  ;;  %v4540_v8 = vceil.f32 %v2847_v45 }
 0x3c4   : > { %v4541_v14 = vfloor.f32 %v2847_v45  ;;  %v4575_v47 = vceil.f32 %v2854_v29  ;;  %v4576_v1 = vfloor.f32 %v2854_v29  ;;  %v2759_v58 = vmul.f32 0.31830987, %v7615_v30 }
 0x3c5   : > { %v2924_v63 = vcvt.s32.f32 %v8458_v56  ;;  %v7628_v57 = vsel %vm4609_vm5, %v4610_v27, %v4611_v62  ;;  %vm4574_vm7 = vcmp.lt.s32.totalorder %v2854_v29, 0  ;;  %v2766_v31 = vmul.f32 0.31830987, %v7620_v16 }
 0x3c6   : > { %v8460_v46 = vcvt.f32.s32 %v7628_v57  ;;  %v7634_v59 = vadd.f32 %v2733_v4, %v7108_v23  ;;  %v7636_v33 = vsub.f32 %v2981_v22, %v3013_v13  ;;  %v2942_v37 = vmul.f32 3.140625, %v2910_v54 }
 0x3c7   : > { %v3006_v42 = vmul.f32 0.0009676536, %v2910_v54  ;;  %v2956_v52 = vmul.f32 3.140625, %v2924_v63  ;;  %v7639_v56 = vsel %vm4539_vm6, %v4540_v8, %v4541_v14  ;;  %vm2791_vm8 = vcmp.ge.f32.partialorder %v2759_v58, 0.0 }
 0x3c8   : > { %8652 = vst [vmem:[#allocation37_spill] sm:$0xff] %v7639_v56  ;;  %v2925_v27 = vcvt.s32.f32 %v8460_v46  ;;  %vm2798_vm9 = vcmp.ge.f32.partialorder %v2766_v31, 0.0  ;;  %v3020_v62 = vmul.f32 0.0009676536, %v2924_v63  ;;  %v7644_v34 = vsel %vm4574_vm7, %v4575_v47, %v4576_v1 }
 0x3c9   : > { %v2988_v29 = vsub.f32 %v7551_v11, %v2956_v52  ;;  %8653 = vst [vmem:[#allocation35_spill] sm:$0xff] %v7644_v34  ;;  %v2823_v23 = vsel %vm2791_vm8, 0.5, %v8603_v49  ;;  %v2830_v54 = vsel %vm2798_vm9, 0.5, %v8603_v49  ;;  %v2767_v45 = vmul.f32 0.31830987, %v7634_v59 }
 0x3ca   : > { %v2957_v13 = vmul.f32 3.140625, %v2925_v27  ;;  %v2855_v22 = vadd.f32 %v2823_v23, %v2759_v58  ;;  %v8462_v4 = vcvt.f32.s32 %v7639_v56  ;;  %v3021_v14 = vmul.f32 0.0009676536, %v2925_v27 }
 0x3cb   : > { %v7650_v8 = vsub.f32 %v2988_v29, %v3020_v62  ;;  %v2862_v46 = vadd.f32 %v2830_v54, %v2766_v31  ;;  %v8464_v63 = vcvt.f32.s32 %v7644_v34  ;;  %vm2799_vm12 = vcmp.ge.f32.partialorder %v2767_v45, 0.0 }
 0x3cc   : > { %v2989_v55 = vsub.f32 %v7568_v61, %v2957_v13  ;;  %vm4579_vm10 = vcmp.lt.s32.totalorder %v2855_v22, 0  ;;  %v4580_v11 = vceil.f32 %v2855_v22  ;;  %v4581_v52 = vfloor.f32 %v2855_v22 }
 0x3cd   : > { %v7655_v47 = vmul.f32 %v7650_v8, %v7650_v8  ;;  %vm4614_vm11 = vcmp.lt.s32.totalorder %v2862_v46, 0  ;;  %v4615_v1 = vceil.f32 %v2862_v46  ;;  %v4616_v29 = vfloor.f32 %v2862_v46 }
 0x3ce   : > { %v7658_v58 = vsub.f32 %v2989_v55, %v3021_v14  ;;  %v7660_v23 = vsel %vm4579_vm10, %v4580_v11, %v4581_v52  ;;  %v2974_v31 = vsub.f32 %v7526_v60, %v2942_v37  ;;  %v2911_v61 = vcvt.s32.f32 %v8462_v4 }
 0x3cf   : > { %8654 = vst [vmem:[#allocation26_spill] sm:$0xff] %v7660_v23  ;;  %v3116_v27 = vmul.f32 -2.5052108e-08, %v7655_v47  ;;  %v2831_v62 = vsel %vm2799_vm12, 0.5, %v8603_v49  ;;  %v7671_v22 = vsel %vm4614_vm11, %v4615_v1, %v4616_v29  ;;  %v3432_v46 = vadd.f32 %v7408_v35, %v7258_v6 }
 0x3d0   : > { %v7669_v13 = vmul.f32 %v7658_v58, %v7658_v58  ;;  %8655 = vst [vmem:[#allocation39_spill] sm:$0xff] %v7671_v22  ;;  %v2863_v55 = vadd.f32 %v2831_v62, %v2767_v45  ;;  %v2918_v60 = vcvt.s32.f32 %v8464_v63  ;;  %v8467_v14 = vcvt.f32.s32 %v7671_v22 }
 0x3d1   : > { %v3148_v54 = vadd.f32 2.7557319e-06, %v3116_v27  ;;  %v7680_v49 = vsub.f32 %v2974_v31, %v3006_v42  ;;  %v2943_v1 = vmul.f32 3.140625, %v2911_v61  ;;  %v8656_v27 = vcvt.f32.s32 %v7213_v32 }
 0x3d2   : > { %v3117_v11 = vmul.f32 -2.5052108e-08, %v7669_v13  ;;  %vm4619_vm13 = vcmp.lt.s32.totalorder %v2863_v55, 0  ;;  %v4620_v52 = vceil.f32 %v2863_v55  ;;  %v4621_v4 = vfloor.f32 %v2863_v55 }
 0x3d3   : > { %v3180_v45 = vmul.f32 %v3148_v54, %v7655_v47  ;;  %v2926_v6 = vcvt.s32.f32 %v8467_v14  ;;  %v3464_v62 = vand.u32 1, %v8656_v27  ;;  %v3528_v63 = vsub.f32 0.0, %v3432_v46 }
 0x3d4   : > { %v3149_v35 = vadd.f32 2.7557319e-06, %v3117_v11  ;;  %v7685_v29 = vsel %vm4619_vm13, %v4620_v52, %v4621_v4  ;;  %v2950_v56 = vmul.f32 3.140625, %v2918_v60  ;;  %v8657_v34 = vcvt.f32.s32 %v7660_v23 }
 0x3d5   : > { %v3212_v37 = vadd.f32 -0.0001984127, %v3180_v45  ;;  %v2958_v42 = vmul.f32 3.140625, %v2926_v6  ;;  %v8471_v54 = vcvt.f32.s32 %v7685_v29  ;;  %vm3496_vm15 = vcmp.eq.s32.totalorder %v3464_v62, 1 }
 0x3d6   : > { %v2919_v55 = vcvt.s32.f32 %v8657_v34  ;;  %v3181_v31 = vmul.f32 %v3149_v35, %v7669_v13  ;;  %v3433_v11 = vadd.f32 %v7519_v51, %v7306_v5  ;;  %v3022_v52 = vmul.f32 0.0009676536, %v2926_v6 }
 0x3d7   : > { %v3244_v4 = vmul.f32 %v3212_v37, %v7655_v47  ;;  %v2990_v32 = vsub.f32 %v7620_v16, %v2958_v42  ;;  %v3560_v27 = vsel %vm3496_vm15, %v3528_v63, %v3432_v46  ;;  %v3007_v45 = vmul.f32 0.0009676536, %v2911_v61 }
 0x3d8   : > { %v2927_v14 = vcvt.s32.f32 %v8471_v54  ;;  %3591 = vmatpush.msra.mxu0 %v3560_v27  ;;  %v8658_v34 = vcvt.f32.s32 %v7274_v36  ;;  %v3529_v23 = vsub.f32 0.0, %v3433_v11  ;;  %v2975_v62 = vsub.f32 %v7548_v48, %v2943_v1 }
 0x3d9   : > { %v3213_v22 = vadd.f32 -0.0001984127, %v3181_v31  ;;  %v7702_v0 = vsub.f32 %v2990_v32, %v3022_v52  ;;  %v3104_v5 = vmul.f32 -2.5052108e-08, %v7369_v43  ;;  %v2982_v51 = vsub.f32 %v7571_v41, %v2950_v56 }
 0x3da   : > { %v3465_v35 = vand.u32 1, %v8658_v34  ;;  %v2951_v16 = vmul.f32 3.140625, %v2919_v55  ;;  %v2959_v63 = vmul.f32 3.140625, %v2927_v14  ;;  %v3276_v61 = vadd.f32 0.008333334, %v3244_v4 }
 0x3db   : > { %v7708_v46 = vmul.f32 %v7702_v0, %v7702_v0  ;;  %v3136_v37 = vadd.f32 2.7557319e-06, %v3104_v5  ;;  %v3014_v6 = vmul.f32 0.0009676536, %v2918_v60  ;;  %v3023_v1 = vmul.f32 0.0009676536, %v2927_v14 }
 0x3dc   : > { %vm3497_vm0 = vcmp.eq.s32.totalorder %v3465_v35, 1  ;;  %v2991_v48 = vsub.f32 %v7634_v59, %v2959_v63  ;;  %v3105_v42 = vmul.f32 -2.5052108e-08, %v7377_v53  ;;  %v7714_v41 = vmul.f32 %v7636_v33, %v7636_v33 }
 0x3dd   : > { %v3561_v36 = vsel %vm3497_vm0, %v3529_v23, %v3433_v11  ;;  %v3245_v56 = vmul.f32 %v3213_v22, %v7669_v13  ;;  %v3118_v31 = vmul.f32 -2.5052108e-08, %v7708_v46  ;;  %v3168_v4 = vmul.f32 %v3136_v37, %v7369_v43 }
 0x3de   : > { %3611 = vmatpush.msra.mxu1 %v3561_v36  ;;  %v7719_v32 = vsub.f32 %v2975_v62, %v3007_v45  ;;  %v7721_v23 = vsub.f32 %v2982_v51, %v3014_v6  ;;  %v7723_v60 = vsub.f32 %v2991_v48, %v3023_v1  ;;  %v3137_v59 = vadd.f32 2.7557319e-06, %v3105_v42 }
 0x3df   : > { %v3308_v14 = vmul.f32 %v3276_v61, %v7655_v47  ;;  %v2983_v11 = vsub.f32 %v7615_v30, %v2951_v16  ;;  %v3150_v52 = vadd.f32 2.7557319e-06, %v3118_v31  ;;  %v3200_v27 = vadd.f32 -0.0001984127, %v3168_v4 }
 0x3e0   : > { %v7729_v22 = vmul.f32 %v7680_v49, %v7680_v49  ;;  %v7733_v34 = vmul.f32 %v7723_v60, %v7723_v60  ;;  %v3169_v45 = vmul.f32 %v3137_v59, %v7377_v53  ;;  %v3096_v35 = vmul.f32 -2.5052108e-08, %v7348_v25 }
 0x3e1   : > { %v3277_v62 = vadd.f32 0.008333334, %v3245_v56  ;;  %v3015_v5 = vmul.f32 0.0009676536, %v2919_v55  ;;  %v3182_v51 = vmul.f32 %v3150_v52, %v7708_v46  ;;  %v3232_v30 = vmul.f32 %v3200_v27, %v7369_v43 }
 0x3e2   : > { %v7741_v16 = vmul.f32 %v7719_v32, %v7719_v32  ;;  %v3119_v63 = vmul.f32 -2.5052108e-08, %v7733_v34  ;;  %v3201_v61 = vadd.f32 -0.0001984127, %v3169_v45  ;;  %v3128_v36 = vadd.f32 2.7557319e-06, %v3096_v35 }
 0x3e3   : > { %v3340_v37 = vadd.f32 -0.16666667, %v3308_v14  ;;  %v7746_v6 = vmul.f32 %v7721_v23, %v7721_v23  ;;  %v7748_v48 = vsub.f32 %v2983_v11, %v3015_v5  ;;  %v3264_v55 = vadd.f32 0.008333334, %v3232_v30 }
 0x3e4   : > { %v3151_v1 = vadd.f32 2.7557319e-06, %v3119_v63  ;;  %v8659_v42 = vcvt.f32.s32 %v7180_v10  ;;  %v3233_v31 = vmul.f32 %v3201_v61, %v7377_v53  ;;  %v3160_v4 = vmul.f32 %v3128_v36, %v7348_v25 }
 0x3e5   : > { %v3309_v59 = vmul.f32 %v3277_v62, %v7669_v13  ;;  %v3214_v52 = vadd.f32 -0.0001984127, %v3182_v51  ;;  %v3296_v14 = vmul.f32 %v3264_v55, %v7369_v43  ;;  %v3097_v27 = vmul.f32 -2.5052108e-08, %v7361_v17 }
 0x3e6   : > { %v3456_v56 = vand.u32 1, %v8659_v42  ;;  %v3183_v45 = vmul.f32 %v3151_v1, %v7733_v34  ;;  %v3265_v11 = vadd.f32 0.008333334, %v3233_v31  ;;  %v3192_v35 = vadd.f32 -0.0001984127, %v3160_v4 }
 0x3e7   : > { %v3088_v5 = vmul.f32 -2.5052108e-08, %v7221_v21  ;;  %v3372_v10 = vmul.f32 %v3340_v37, %v7655_v47  ;;  %v3328_v30 = vadd.f32 -0.16666667, %v3296_v14  ;;  %v8660_v63 = vcvt.f32.s32 %v7197_v38 }
 0x3e8   : > { %v3129_v36 = vadd.f32 2.7557319e-06, %v3097_v27  ;;  %v3215_v42 = vadd.f32 -0.0001984127, %v3183_v45  ;;  %v3297_v62 = vmul.f32 %v3265_v11, %v7377_v53  ;;  %v3224_v51 = vmul.f32 %v3192_v35, %v7348_v25 }
 0x3e9   : > { %v3457_v61 = vand.u32 1, %v8660_v63  ;;  %v3120_v55 = vadd.f32 2.7557319e-06, %v3088_v5  ;;  %v3341_v54 = vadd.f32 -0.16666667, %v3309_v59  ;;  %v3360_v1 = vmul.f32 %v3328_v30, %v7369_v43 }
 0x3ea   : > { %vm3488_vm1 = vcmp.eq.s32.totalorder %v3456_v56, 1  ;;  %v3161_v31 = vmul.f32 %v3129_v36, %v7361_v17  ;;  %v3246_v4 = vmul.f32 %v3214_v52, %v7708_v46  ;;  %v3329_v47 = vadd.f32 -0.16666667, %v3297_v62 }
 0x3eb   : > { %v3256_v37 = vadd.f32 0.008333334, %v3224_v51  ;;  %v3152_v38 = vmul.f32 %v3120_v55, %v7221_v21  ;;  %v7769_v14 = vmul.f32 %v3372_v10, %v7650_v8  ;;  %v3392_v27 = vmul.f32 %v3360_v1, %v7256_v28 }
 0x3ec   : > { %vm3489_vm2 = vcmp.eq.s32.totalorder %v3457_v61, 1  ;;  %v8661_v45 = vcvt.f32.s32 %v7169_v20  ;;  %v3193_v11 = vadd.f32 -0.0001984127, %v3161_v31  ;;  %v3247_v43 = vmul.f32 %v3215_v42, %v7733_v34 }
 0x3ed   : > { %v3361_v35 = vmul.f32 %v3329_v47, %v7377_v53  ;;  %v3288_v52 = vmul.f32 %v3256_v37, %v7348_v25  ;;  %v3184_v5 = vadd.f32 -0.0001984127, %v3152_v38  ;;  %v3373_v30 = vmul.f32 %v3341_v54, %v7669_v13 }
 0x3ee   : > { %v3448_v59 = vand.u32 1, %v8661_v45  ;;  %v3424_v63 = vadd.f32 %v3392_v27, %v7256_v28  ;;  %v3225_v10 = vmul.f32 %v3193_v11, %v7361_v17  ;;  %v3089_v36 = vmul.f32 -2.5052108e-08, %v7336_v39 }
 0x3ef   : > { %v3278_v62 = vadd.f32 0.008333334, %v3246_v4  ;;  %v3393_v20 = vmul.f32 %v3361_v35, %v7344_v26  ;;  %v3320_v51 = vadd.f32 -0.16666667, %v3288_v52  ;;  %v3216_v55 = vmul.f32 %v3184_v5, %v7221_v21 }
 0x3f0   : > { %v3520_v42 = vsub.f32 0.0, %v3424_v63  ;;  %vm3480_vm3 = vcmp.eq.s32.totalorder %v3448_v59, 1  ;;  %v3257_v53 = vadd.f32 0.008333334, %v3225_v10  ;;  %v8662_v1 = vcvt.f32.s32 %v7171_v18 }
 0x3f1   : > { %v3121_v47 = vadd.f32 2.7557319e-06, %v3089_v36  ;;  %v3279_v13 = vadd.f32 0.008333334, %v3247_v43  ;;  %v3425_v28 = vadd.f32 %v3393_v20, %v7344_v26  ;;  %v3352_v54 = vmul.f32 %v3320_v51, %v7348_v25 }
 0x3f2   : > { %v3449_v31 = vand.u32 1, %v8662_v1  ;;  %v3248_v37 = vadd.f32 0.008333334, %v3216_v55  ;;  %v3552_v4 = vsel %vm3488_vm1, %v3520_v42, %v3424_v63  ;;  %v3289_v38 = vmul.f32 %v3257_v53, %v7361_v17  ;;  %v8665_v1 = vld [vmem:[#allocation32_spill] sm:$0xff] }
 0x3f3   : > { %v3153_v27 = vmul.f32 %v3121_v47, %v7336_v39  ;;  %v3434_v45 = vadd.f32 %v7600_v12, %v7451_v44  ;;  %v7793_v11 = vmul.f32 %v3373_v30, %v7658_v58  ;;  %3592 = vmatpush.msra.mxu0 %v3552_v4  ;;  %v3521_v18 = vsub.f32 0.0, %v3425_v28 }
 0x3f4   : > { %v3384_v43 = vmul.f32 %v3352_v54, %v7247_v24  ;;  %v3280_v26 = vmul.f32 %v3248_v37, %v7221_v21  ;;  %v3310_v25 = vmul.f32 %v3278_v62, %v7708_v46  ;;  %v3321_v56 = vadd.f32 -0.16666667, %v3289_v38  ;;  %v8667_v54 = vld [vmem:[#allocation20_spill] sm:$0xff] }
 0x3f5   : > { %v3185_v35 = vadd.f32 -0.0001984127, %v3153_v27  ;;  %v8663_v52 = vcvt.f32.s32 %v7417_v19  ;;  %v3311_v63 = vmul.f32 %v3279_v13, %v7733_v34  ;;  %v3553_v44 = vsel %vm3489_vm2, %v3521_v18, %v3425_v28  ;;  %v8666_v13 = vld [vmem:[#allocation15_spill] sm:$0xff] }
 0x3f6   : > { %v3416_v12 = vadd.f32 %v3384_v43, %v7247_v24  ;;  %vm3481_vm4 = vcmp.eq.s32.totalorder %v3449_v31, 1  ;;  %v3312_v30 = vadd.f32 -0.16666667, %v3280_v26  ;;  %3612 = vmatpush.msra.mxu1 %v3553_v44  ;;  %v3353_v10 = vmul.f32 %v3321_v56, %v7361_v17 }
 0x3f7   : > { %v3466_v5 = vand.u32 1, %v8663_v52  ;;  %v3217_v36 = vmul.f32 %v3185_v35, %v7336_v39  ;;  %v3530_v62 = vsub.f32 0.0, %v3434_v45  ;;  %v3435_v19 = vadd.f32 %v7608_v2, %v7487_v50 }
 0x3f8   : > { %v3512_v20 = vsub.f32 0.0, %v3416_v12  ;;  %v3344_v51 = vmul.f32 %v3312_v30, %v7221_v21  ;;  %v8664_v61 = vcvt.f32.s32 %v7448_v3  ;;  %v3385_v24 = vmul.f32 %v3353_v10, %v7249_v40 }
 0x3f9   : > { %vm3498_vm5 = vcmp.eq.s32.totalorder %v3466_v5, 1  ;;  %v3249_v42 = vadd.f32 0.008333334, %v3217_v36  ;;  %v3106_v47 = vmul.f32 -2.5052108e-08, %v8665_v1  ;;  %v8668_v37 = vcvt.f32.s32 %v8667_v54 }
 0x3fa   : > { %v3467_v55 = vand.u32 1, %v8664_v61  ;;  %v3562_v53 = vsel %vm3498_vm5, %v3530_v62, %v3434_v45  ;;  %v3544_v17 = vsel %vm3480_vm3, %v3512_v20, %v3416_v12  ;;  %v3376_v28 = vmul.f32 %v3344_v51, %v8666_v13  ;;  %v8670_v12 = vld [vmem:[#allocation6_spill] sm:$0xff] }
 0x3fb   : > { %v3440_v4 = vand.u32 1, %v8668_v37  ;;  %3631 = vmatpush.msra.mxu2 %v3562_v53  ;;  %v3531_v21 = vsub.f32 0.0, %v3435_v19  ;;  %3593 = vmatpush.msra.mxu0 %v3544_v17  ;;  %v3417_v50 = vadd.f32 %v3385_v24, %v7249_v40  ;;  %v3281_v3 = vmul.f32 %v3249_v42, %v7336_v39  ;;  %v8669_v40 = vld [vmem:[#allocation12_spill] sm:$0xff] }
 0x3fc   : > { %vm3499_vm6 = vcmp.eq.s32.totalorder %v3467_v55, 1  ;;  %v3138_v2 = vadd.f32 2.7557319e-06, %v3106_v47  ;;  %v3342_v38 = vadd.f32 -0.16666667, %v3310_v25  ;;  %v3408_v27 = vadd.f32 %v3376_v28, %v8666_v13  ;;  %v8673_v55 = vld [vmem:[#allocation22_spill] sm:$0xff] }
 0x3fd   : > { %v3563_v45 = vsel %vm3499_vm6, %v3531_v21, %v3435_v19  ;;  %v3107_v59 = vmul.f32 -2.5052108e-08, %v7509_v9  ;;  %v3343_v18 = vadd.f32 -0.16666667, %v3311_v63  ;;  %v3513_v43 = vsub.f32 0.0, %v3417_v50  ;;  %v8672_v19 = vld [vmem:[#allocation29_spill] sm:$0xff] }
 0x3fe   : > { %v3313_v26 = vadd.f32 -0.16666667, %v3281_v3  ;;  %3651 = vmatpush.msra.mxu3 %v3563_v45  ;;  %v3170_v56 = vmul.f32 %v3138_v2, %v8665_v1  ;;  %vm3472_vm7 = vcmp.eq.s32.totalorder %v3440_v4, 1  ;;  %v3504_v35 = vsub.f32 0.0, %v3408_v27  ;;  %v7829_v63 = vld [vmem:[%s8279_s5] sm:$0x1] }
 0x3ff   : > { %v3139_v52 = vadd.f32 2.7557319e-06, %v3107_v59  ;;  %v3098_v5 = vmul.f32 -2.5052108e-08, %v8669_v40  ;;  %v3545_v44 = vsel %vm3481_vm4, %v3513_v43, %v3417_v50  ;;  %v8671_v30 = vcvt.f32.s32 %v8670_v12  ;;  %v8674_v13 = vld [vmem:[#allocation7_spill] sm:$0xff]  ;;  %v8677_v45 = vld [vmem:[#allocation17_spill] sm:$0xff] }
 0x400   : > { %v3345_v25 = vmul.f32 %v3313_v26, %v7336_v39  ;;  %v3202_v36 = vadd.f32 -0.0001984127, %v3170_v56  ;;  %3613 = vmatpush.msra.mxu1 %v3545_v44  ;;  %v3536_v62 = vsel %vm3472_vm7, %v3504_v35, %v3408_v27  ;;  %v3099_v61 = vmul.f32 -2.5052108e-08, %v8672_v19  ;;  %v8679_v43 = vld [vmem:[#allocation8_spill] sm:$0xff]  ;;  %v8680_v12 = vld [vmem:[#allocation9_spill] sm:$0xff] }
 0x401   : > { %v3441_v10 = vand.u32 1, %v8671_v30  ;;  %v3171_v20 = vmul.f32 %v3139_v52, %v7509_v9  ;;  %v3130_v51 = vadd.f32 2.7557319e-06, %v3098_v5  ;;  %v7834_v31 = vmul.f32 %v3342_v38, %v7708_v46  ;;  %3594 = vmatpush.msra.mxu0 %v3536_v62 }
 0x402   : > { %v7837_v39 = vmul.f32 %v3343_v18, %v7733_v34  ;;  %v3377_v24 = vmul.f32 %v3345_v25, %v8673_v55  ;;  %v3234_v42 = vmul.f32 %v3202_v36, %v8665_v1  ;;  %4132 = vmatmul.msk.f32.vlgmr.msra.gmra.mxu0 %vm1385_vm14, %v7829_v63  ;;  %v3131_v17 = vadd.f32 2.7557319e-06, %v3099_v61  ;;  %v8675_v34 = vld [vmem:[#allocation11_spill] sm:$0xff] }
 0x403   : > { %v3203_v53 = vadd.f32 -0.0001984127, %v3171_v20  ;;  %v3162_v47 = vmul.f32 %v3130_v51, %v8669_v40  ;;  %v3090_v28 = vmul.f32 -2.5052108e-08, %v8674_v13  ;;  %vm3473_vm8 = vcmp.eq.s32.totalorder %v3441_v10, 1 }
 0x404   : > { %v3409_v46 = vadd.f32 %v3377_v24, %v8673_v55  ;;  %v3266_v54 = vadd.f32 0.008333334, %v3234_v42  ;;  %v8676_v37 = vcvt.f32.s32 %v8675_v34  ;;  %v3163_v3 = vmul.f32 %v3131_v17, %v8672_v19  ;;  %v8682_v24 = vld [vmem:[#allocation10_spill] sm:$0xff] }
 0x405   : > { %v3235_v21 = vmul.f32 %v3203_v53, %v7509_v9  ;;  %v3194_v50 = vadd.f32 -0.0001984127, %v3162_v47  ;;  %v3122_v2 = vadd.f32 2.7557319e-06, %v3090_v28  ;;  %v8678_v59 = vcvt.f32.s32 %v8677_v45 }
 0x406   : > { %v3458_v4 = vand.u32 1, %v8676_v37  ;;  %v3505_v38 = vsub.f32 0.0, %v3409_v46  ;;  %v3298_v27 = vmul.f32 %v3266_v54, %v8665_v1  ;;  %v3091_v26 = vmul.f32 -2.5052108e-08, %v8679_v43  ;;  %v8684_v37 = vld [vmem:[#allocation14_spill] sm:$0xff] }
 0x407   : > { %v7853_v18 = vand.u32 1, %v8678_v59  ;;  %v3267_v56 = vadd.f32 0.008333334, %v3235_v21  ;;  %v3226_v35 = vmul.f32 %v3194_v50, %v8669_v40  ;;  %v3195_v52 = vadd.f32 -0.0001984127, %v3163_v3 }
 0x408   : > { %v3154_v5 = vmul.f32 %v3122_v2, %v8674_v13  ;;  %v3537_v44 = vsel %vm3473_vm8, %v3505_v38, %v3409_v46  ;;  %v3330_v25 = vadd.f32 -0.16666667, %v3298_v27  ;;  %v8681_v30 = vcvt.f32.s32 %v8680_v12 }
 0x409   : > { %v3123_v36 = vadd.f32 2.7557319e-06, %v3091_v26  ;;  %3614 = vmatpush.msra.mxu1 %v3537_v44  ;;  %vm3490_vm9 = vcmp.eq.s32.totalorder %v3458_v4, 1  ;;  %v3299_v62 = vmul.f32 %v3267_v56, %v7509_v9  ;;  %v3258_v20 = vadd.f32 0.008333334, %v3226_v35  ;;  %v8686_v56 = vld [vmem:[#allocation51_spill] sm:$0xff] }
 0x40a   : > { %v7860_v10 = vand.u32 1, %v8681_v30  ;;  %v3227_v51 = vmul.f32 %v3195_v52, %v8672_v19  ;;  %v3186_v61 = vadd.f32 -0.0001984127, %v3154_v5  ;;  %4133 = vmatmul.msk.f32.vlgmr.msra.gmra.mxu1 %vm1385_vm14, %v7829_v63  ;;  %v3362_v55 = vmul.f32 %v3330_v25, %v8665_v1 }
 0x40b   : > { %v8683_v42 = vcvt.f32.s32 %v8682_v24  ;;  %v3155_v47 = vmul.f32 %v3123_v36, %v8679_v43  ;;  %v3436_v17 = vadd.f32 %v7769_v14, %v7650_v8  ;;  %v3331_v28 = vadd.f32 -0.16666667, %v3299_v62  ;;  %v8688_v62 = vld [vmem:[#allocation27_spill] sm:$0xff] }
 0x40c   : > { %v3290_v46 = vmul.f32 %v3258_v20, %v8669_v40  ;;  %v3259_v54 = vadd.f32 0.008333334, %v3227_v51  ;;  %v3218_v34 = vmul.f32 %v3186_v61, %v8674_v13  ;;  %v3394_v21 = vmul.f32 %v3362_v55, %v8684_v37 }
 0x40d   : > { %v7869_v53 = vand.u32 1, %v8683_v42  ;;  %vm3491_vm10 = vcmp.eq.s32.totalorder %v7853_v18, 1  ;;  %v3187_v1 = vadd.f32 -0.0001984127, %v3155_v47  ;;  %v8685_v50 = vcvt.f32.s32 %v7617_v7 }
 0x40e   : > { %v3532_v2 = vsub.f32 0.0, %v3436_v17  ;;  %v3363_v38 = vmul.f32 %v3331_v28, %v7509_v9  ;;  %v3322_v27 = vadd.f32 -0.16666667, %v3290_v46  ;;  %v3291_v8 = vmul.f32 %v3259_v54, %v8672_v19 }
 0x40f   : > { %v3468_v3 = vand.u32 1, %v8685_v50  ;;  %v3250_v14 = vadd.f32 0.008333334, %v3218_v34  ;;  %v3426_v45 = vadd.f32 %v3394_v21, %v8684_v37  ;;  %v3219_v59 = vmul.f32 %v3187_v1, %v8679_v43  ;;  %v8692_v1 = vld [vmem:[#allocation13_spill] sm:$0xff] }
 0x410   : > { %v3437_v26 = vadd.f32 %v7793_v11, %v7658_v58  ;;  %v3395_v35 = vmul.f32 %v3363_v38, %v8686_v56  ;;  %v3354_v7 = vmul.f32 %v3322_v27, %v8669_v40  ;;  %v3323_v52 = vadd.f32 -0.16666667, %v3291_v8  ;;  %v8693_v8 = vld [vmem:[#allocation25_spill] sm:$0xff] }
 0x411   : > { %vm3500_vm11 = vcmp.eq.s32.totalorder %v3468_v3, 1  ;;  %v3282_v5 = vmul.f32 %v3250_v14, %v8674_v13  ;;  %v3522_v9 = vsub.f32 0.0, %v3426_v45  ;;  %v3251_v44 = vadd.f32 0.008333334, %v3219_v59 }
 0x412   : > { %v3564_v25 = vsel %vm3500_vm11, %v3532_v2, %v3436_v17  ;;  %v8687_v12 = vcvt.f32.s32 %v7628_v57  ;;  %v3427_v36 = vadd.f32 %v3395_v35, %v8686_v56  ;;  %v3386_v20 = vmul.f32 %v3354_v7, %v8688_v62  ;;  %v8689_v57 = vld [vmem:[#allocation18_spill] sm:$0xff]  ;;  %v8690_v17 = vld [vmem:[#allocation21_spill] sm:$0xff]  ;;  %v8695_v35 = vld [vmem:[#allocation16_spill] sm:$0xff] }
 0x413   : > { %v3355_v51 = vmul.f32 %v3323_v52, %v8672_v19  ;;  %v3314_v58 = vadd.f32 -0.16666667, %v3282_v5  ;;  %3671 = vmatpush.msrb.mxu0 %v3564_v25  ;;  %v3554_v11 = vsel %vm3490_vm9, %v3522_v9, %v3426_v45  ;;  %v3283_v40 = vmul.f32 %v3251_v44, %v8679_v43 }
 0x414   : > { %v3469_v30 = vand.u32 1, %v8687_v12  ;;  %v3533_v61 = vsub.f32 0.0, %v3437_v26  ;;  %3632 = vmatpush.msra.mxu2 %v3554_v11  ;;  %v3523_v55 = vsub.f32 0.0, %v3427_v36  ;;  %v3418_v24 = vadd.f32 %v3386_v20, %v8688_v62 }
 0x415   : > { %v3387_v42 = vmul.f32 %v3355_v51, %v8689_v57  ;;  %v3346_v47 = vmul.f32 %v3314_v58, %v8674_v13  ;;  %v8691_v28 = vcvt.f32.s32 %v8690_v17  ;;  %v3315_v19 = vadd.f32 -0.16666667, %v3283_v40  ;;  %v8699_v17 = vld [vmem:[#allocation30_spill] sm:$0xff] }
 0x416   : > { %vm3501_vm12 = vcmp.eq.s32.totalorder %v3469_v30, 1  ;;  %v3108_v4 = vmul.f32 -2.5052108e-08, %v7612_v15  ;;  %v3555_v34 = vsel %vm3491_vm10, %v3523_v55, %v3427_v36  ;;  %v3514_v37 = vsub.f32 0.0, %v3418_v24  ;;  %v8697_v36 = vld [vmem:[#allocation52_spill] sm:$0xff] }
 0x417   : > { %v3442_v46 = vand.u32 1, %v8691_v28  ;;  %v3565_v54 = vsel %vm3501_vm12, %v3533_v61, %v3437_v26  ;;  %v3419_v21 = vadd.f32 %v3387_v42, %v8689_v57  ;;  %v3378_v50 = vmul.f32 %v3346_v47, %v8692_v1  ;;  %3652 = vmatpush.msra.mxu3 %v3555_v34  ;;  %v8694_v26 = vld [vmem:[#allocation42_spill] sm:$0xff]  ;;  %v8698_v55 = vld [vmem:[#allocation40_spill] sm:$0xff] }
 0x418   : > { %3691 = vmatpush.msrb.mxu1 %v3565_v54  ;;  %vm3482_vm13 = vcmp.eq.s32.totalorder %v7860_v10, 1  ;;  %v3347_v13 = vmul.f32 %v3315_v19, %v8679_v43  ;;  %v3140_v3 = vadd.f32 2.7557319e-06, %v3108_v4  ;;  %v3109_v2 = vmul.f32 -2.5052108e-08, %v7714_v41 }
 0x419   : > { %v3546_v38 = vsel %vm3482_vm13, %v3514_v37, %v3418_v24  ;;  %vm3483_vm15 = vcmp.eq.s32.totalorder %v7869_v53, 1  ;;  %v3515_v27 = vsub.f32 0.0, %v3419_v21  ;;  %v3410_v18 = vadd.f32 %v3378_v50, %v8692_v1 }
 0x41a   : > { %3633 = vmatpush.msra.mxu2 %v3546_v38  ;;  %v3379_v14 = vmul.f32 %v3347_v13, %v8693_v8  ;;  %v3172_v45 = vmul.f32 %v3140_v3, %v7612_v15  ;;  %v3141_v59 = vadd.f32 2.7557319e-06, %v3109_v2  ;;  %v3100_v56 = vmul.f32 -2.5052108e-08, %v8694_v26 }
 0x41b   : > { %v3547_v10 = vsel %vm3483_vm15, %v3515_v27, %v3419_v21  ;;  %vm3474_vm0 = vcmp.eq.s32.totalorder %v3442_v46, 1  ;;  %v3506_v43 = vsub.f32 0.0, %v3410_v18  ;;  %v8696_v7 = vcvt.f32.s32 %v8695_v35  ;;  %v8702_v21 = vld [vmem:[#allocation24_spill] sm:$0xff] }
 0x41c   : > { %3653 = vmatpush.msra.mxu3 %v3547_v10  ;;  %v3411_v53 = vadd.f32 %v3379_v14, %v8693_v8  ;;  %v3204_v5 = vadd.f32 -0.0001984127, %v3172_v45  ;;  %v3173_v9 = vmul.f32 %v3141_v59, %v7714_v41  ;;  %v3132_v44 = vadd.f32 2.7557319e-06, %v3100_v56  ;;  %v8704_v45 = vld [vmem:[#allocation34_spill] sm:$0xff] }
 0x41d   : > { %v3443_v52 = vand.u32 1, %v8696_v7  ;;  %v7920_v25 = vmul.f32 %v7748_v48, %v7748_v48  ;;  %v3406_v12 = vmul.f32 %v7834_v31, %v7702_v0  ;;  %v3538_v30 = vsel %vm3474_vm0, %v3506_v43, %v3410_v18  ;;  %v8706_v7 = vld [vmem:[#allocation39_spill] sm:$0xff] }
 0x41e   : > { %v3101_v62 = vmul.f32 -2.5052108e-08, %v8697_v36  ;;  %3634 = vmatpush.msra.mxu2 %v3538_v30  ;;  %v3507_v20 = vsub.f32 0.0, %v3411_v53  ;;  %v3236_v51 = vmul.f32 %v3204_v5, %v7612_v15  ;;  %v3205_v58 = vadd.f32 -0.0001984127, %v3173_v9 }
 0x41f   : > { %v3164_v11 = vmul.f32 %v3132_v44, %v8694_v26  ;;  %v3407_v40 = vmul.f32 %v7837_v39, %v7723_v60  ;;  %vm3475_vm1 = vcmp.eq.s32.totalorder %v3443_v52, 1  ;;  %4134 = vmatmul.msk.f32.vlgmr.msra.gmra.mxu2 %vm1385_vm14, %v7829_v63  ;;  %v3092_v31 = vmul.f32 -2.5052108e-08, %v8698_v55  ;;  %v8701_v39 = vld [vmem:[#allocation38_spill] sm:$0xff] }
 0x420   : > { %v3133_v61 = vadd.f32 2.7557319e-06, %v3101_v62  ;;  %v3539_v24 = vsel %vm3475_vm1, %v3507_v20, %v3411_v53  ;;  %v3268_v57 = vadd.f32 0.008333334, %v3236_v51  ;;  %v3237_v42 = vmul.f32 %v3205_v58, %v7714_v41  ;;  %v8708_v20 = vld [vmem:[#allocation44_spill] sm:$0xff] }
 0x421   : > { %v3196_v47 = vadd.f32 -0.0001984127, %v3164_v11  ;;  %3654 = vmatpush.msra.mxu3 %v3539_v24  ;;  %v8700_v28 = vcvt.f32.s32 %v8699_v17  ;;  %v3124_v54 = vadd.f32 2.7557319e-06, %v3092_v31  ;;  %v3093_v4 = vmul.f32 -2.5052108e-08, %v8701_v39 }
 0x422   : > { %v3165_v19 = vmul.f32 %v3133_v61, %v8697_v36  ;;  %4135 = vmatmul.msk.f32.vlgmr.msra.gmra.mxu3 %vm1385_vm14, %v7829_v63  ;;  %v3300_v34 = vmul.f32 %v3268_v57, %v7612_v15  ;;  %v3269_v37 = vadd.f32 0.008333334, %v3237_v42  ;;  %v8703_v1 = vcvt.f32.s32 %v8702_v21 }
 0x423   : > { %v3460_v46 = vand.u32 1, %v8700_v28  ;;  %v3228_v13 = vmul.f32 %v3196_v47, %v8694_v26  ;;  %v3156_v2 = vmul.f32 %v3124_v54, %v8698_v55  ;;  %v3125_v38 = vadd.f32 2.7557319e-06, %v3093_v4 }
 0x424   : > { %v3461_v50 = vand.u32 1, %v8703_v1  ;;  %v3197_v3 = vadd.f32 -0.0001984127, %v3165_v19  ;;  %v3438_v27 = vadd.f32 %v3406_v12, %v7702_v0  ;;  %v3332_v18 = vadd.f32 -0.16666667, %v3300_v34  ;;  %v8710_v1 = vld [vmem:[#allocation47_spill] sm:$0xff] }
 0x425   : > { %v3301_v8 = vmul.f32 %v3269_v37, %v7714_v41  ;;  %v3260_v14 = vadd.f32 0.008333334, %v3228_v13  ;;  %v8705_v59 = vcvt.f32.s32 %v8704_v45  ;;  %vm3492_vm2 = vcmp.eq.s32.totalorder %v3460_v46, 1 }
 0x426   : > { %v3229_v10 = vmul.f32 %v3197_v3, %v8697_v36  ;;  %v3188_v43 = vadd.f32 -0.0001984127, %v3156_v2  ;;  %v3157_v35 = vmul.f32 %v3125_v38, %v8701_v39  ;;  %v8707_v52 = vcvt.f32.s32 %v8706_v7 }
 0x427   : > { %v3452_v56 = vand.u32 1, %v8705_v59  ;;  %v3364_v5 = vmul.f32 %v3332_v18, %v7612_v15  ;;  %v3333_v9 = vadd.f32 -0.16666667, %v3301_v8  ;;  %v3292_v0 = vmul.f32 %v3260_v14, %v8694_v26  ;;  %v8711_v18 = vld [vmem:[#allocation48_spill] sm:$0xff]  ;;  %v8712_v8 = vld [vmem:[#allocation41_spill] sm:$0xff] }
 0x428   : > { %v3470_v53 = vand.u32 1, %v8707_v52  ;;  %v3534_v44 = vsub.f32 0.0, %v3438_v27  ;;  %vm3493_vm3 = vcmp.eq.s32.totalorder %v3461_v50, 1  ;;  %v3261_v12 = vadd.f32 0.008333334, %v3229_v10  ;;  %v8714_v52 = vld [vmem:[#allocation28_spill] sm:$0xff] }
 0x429   : > { %v3220_v30 = vmul.f32 %v3188_v43, %v8698_v55  ;;  %v3189_v62 = vadd.f32 -0.0001984127, %v3157_v35  ;;  %v3396_v51 = vmul.f32 %v3364_v5, %v8708_v20  ;;  %v3365_v58 = vmul.f32 %v3333_v9, %v7714_v41  ;;  %v8715_v5 = vld [vmem:[#allocation19_spill] sm:$0xff] }
 0x42a   : > { %vm3502_vm4 = vcmp.eq.s32.totalorder %v3470_v53, 1  ;;  %v3324_v11 = vadd.f32 -0.16666667, %v3292_v0  ;;  %vm3484_vm5 = vcmp.eq.s32.totalorder %v3452_v56, 1  ;;  %v3293_v31 = vmul.f32 %v3261_v12, %v8697_v36 }
 0x42b   : > { %v3566_v61 = vsel %vm3502_vm4, %v3534_v44, %v3438_v27  ;;  %v3252_v15 = vadd.f32 0.008333334, %v3220_v30  ;;  %v3221_v24 = vmul.f32 %v3189_v62, %v8701_v39  ;;  %v3439_v57 = vadd.f32 %v3407_v40, %v7723_v60 }
 0x42c   : > { %3711 = vmatpush.msrb.mxu2 %v3566_v61  ;;  %v3428_v42 = vadd.f32 %v3396_v51, %v8708_v20  ;;  %v3397_v47 = vmul.f32 %v3365_v58, %v7636_v33  ;;  %v3356_v17 = vmul.f32 %v3324_v11, %v8694_v26  ;;  %v8709_v28 = vcvt.f32.s32 %v7685_v29  ;;  %v8719_v11 = vld [vmem:[#allocation43_spill] sm:$0xff] }
 0x42d   : > { %v3325_v19 = vadd.f32 -0.16666667, %v3293_v31  ;;  %v3284_v54 = vmul.f32 %v3252_v15, %v8698_v55  ;;  %v3253_v4 = vadd.f32 0.008333334, %v3221_v24  ;;  %v3535_v34 = vsub.f32 0.0, %v3439_v57  ;;  %v8720_v15 = vld [vmem:[#allocation46_spill] sm:$0xff] }
 0x42e   : > { %v3471_v41 = vand.u32 1, %v8709_v28  ;;  %v3524_v37 = vsub.f32 0.0, %v3428_v42  ;;  %v3429_v21 = vadd.f32 %v3397_v47, %v7636_v33  ;;  %v3388_v13 = vmul.f32 %v3356_v17, %v8710_v1 }
 0x42f   : > { %v3357_v60 = vmul.f32 %v3325_v19, %v8697_v36  ;;  %v3316_v40 = vadd.f32 -0.16666667, %v3284_v54  ;;  %v3285_v3 = vmul.f32 %v3253_v4, %v8701_v39  ;;  %v3110_v27 = vmul.f32 -2.5052108e-08, %v7746_v6 }
 0x430   : > { %vm3503_vm6 = vcmp.eq.s32.totalorder %v3471_v41, 1  ;;  %v3556_v29 = vsel %vm3492_vm2, %v3524_v37, %v3428_v42  ;;  %v3525_v2 = vsub.f32 0.0, %v3429_v21  ;;  %v3420_v38 = vadd.f32 %v3388_v13, %v8710_v1  ;;  %v8721_v13 = vld [vmem:[#allocation49_spill] sm:$0xff] }
 0x431   : > { %v3567_v26 = vsel %vm3503_vm6, %v3535_v34, %v3439_v57  ;;  %3672 = vmatpush.msrb.mxu0 %v3556_v29  ;;  %v3389_v33 = vmul.f32 %v3357_v60, %v8711_v18  ;;  %v8713_v14 = vcvt.f32.s32 %v8712_v8  ;;  %v3348_v36 = vmul.f32 %v3316_v40, %v8698_v55  ;;  %v8717_v55 = vld [vmem:[#allocation33_spill] sm:$0xff] }
 0x432   : > { %3731 = vmatpush.msrb.mxu3 %v3567_v26  ;;  %v3317_v59 = vadd.f32 -0.16666667, %v3285_v3  ;;  %v3557_v10 = vsel %vm3493_vm3, %v3525_v2, %v3429_v21  ;;  %v3516_v43 = vsub.f32 0.0, %v3420_v38  ;;  %v3142_v46 = vadd.f32 2.7557319e-06, %v3110_v27 }
 0x433   : > { %v3453_v45 = vand.u32 1, %v8713_v14  ;;  %v3111_v35 = vmul.f32 -2.5052108e-08, %v7920_v25  ;;  %3692 = vmatpush.msrb.mxu1 %v3557_v10  ;;  %v3421_v7 = vadd.f32 %v3389_v33, %v8711_v18  ;;  %v3380_v53 = vmul.f32 %v3348_v36, %v8714_v52 }
 0x434   : > { %v8716_v9 = vcvt.f32.s32 %v8715_v5  ;;  %v3349_v44 = vmul.f32 %v3317_v59, %v8701_v39  ;;  %v3548_v12 = vsel %vm3484_vm5, %v3516_v43, %v3420_v38  ;;  %v8718_v30 = vcvt.f32.s32 %v8717_v55 }
 0x435   : > { %v3174_v62 = vmul.f32 %v3142_v46, %v7746_v6  ;;  %v3143_v20 = vadd.f32 2.7557319e-06, %v3111_v35  ;;  %3673 = vmatpush.msrb.mxu0 %v3548_v12  ;;  %v3517_v51 = vsub.f32 0.0, %v3421_v7  ;;  %v3412_v58 = vadd.f32 %v3380_v53, %v8714_v52 }
 0x436   : > { %v3444_v0 = vand.u32 1, %v8716_v9  ;;  %v3445_v50 = vand.u32 1, %v8718_v30  ;;  %v3381_v61 = vmul.f32 %v3349_v44, %v8719_v11  ;;  %v3102_v31 = vmul.f32 -2.5052108e-08, %v7729_v22  ;;  %v8722_v44 = vld [vmem:[#allocation35_spill] sm:$0xff] }
 0x437   : > { %v7993_v24 = vmul.f32 %v8720_v15, %v8720_v15  ;;  %vm3485_vm7 = vcmp.eq.s32.totalorder %v3453_v45, 1  ;;  %v3206_v39 = vadd.f32 -0.0001984127, %v3174_v62  ;;  %v3175_v56 = vmul.f32 %v3143_v20, %v7920_v25 }
 0x438   : > { %v3549_v57 = vsel %vm3485_vm7, %v3517_v51, %v3421_v7  ;;  %v3508_v42 = vsub.f32 0.0, %v3412_v58  ;;  %v3413_v47 = vadd.f32 %v3381_v61, %v8719_v11  ;;  %v3134_v17 = vadd.f32 2.7557319e-06, %v3102_v31 }
 0x439   : > { %3693 = vmatpush.msrb.mxu1 %v3549_v57  ;;  %vm3476_vm8 = vcmp.eq.s32.totalorder %v3444_v0, 1  ;;  %v3238_v28 = vmul.f32 %v3206_v39, %v7746_v6  ;;  %v3207_v41 = vadd.f32 -0.0001984127, %v3175_v56  ;;  %v3103_v19 = vmul.f32 -2.5052108e-08, %v7741_v16 }
 0x43a   : > { %v3540_v54 = vsel %vm3476_vm8, %v3508_v42, %v3412_v58  ;;  %vm3477_vm9 = vcmp.eq.s32.totalorder %v3445_v50, 1  ;;  %v3509_v4 = vsub.f32 0.0, %v3413_v47  ;;  %v3166_v34 = vmul.f32 %v3134_v17, %v7729_v22  ;;  %v8724_v58 = vld [vmem:[#allocation26_spill] sm:$0xff] }
 0x43b   : > { %3674 = vmatpush.msrb.mxu0 %v3540_v54  ;;  %v3270_v37 = vadd.f32 0.008333334, %v3238_v28  ;;  %v3239_v21 = vmul.f32 %v3207_v41, %v7920_v25  ;;  %v3135_v1 = vadd.f32 2.7557319e-06, %v3103_v19  ;;  %v3094_v60 = vmul.f32 -2.5052108e-08, %v8721_v13 }
 0x43c   : > { %v3541_v40 = vsel %vm3477_vm9, %v3509_v4, %v3413_v47  ;;  %4136 = vmatmul.msk.f32.vlgmr.msrb.gmra.mxu0 %vm1385_vm14, %v7829_v63  ;;  %v3198_v3 = vadd.f32 -0.0001984127, %v3166_v34  ;;  %v3095_v18 = vmul.f32 -2.5052108e-08, %v7993_v24  ;;  %v8723_v12 = vcvt.f32.s32 %v8722_v44  ;;  %v8726_v47 = vld [vmem:[#allocation36_spill] sm:$0xff] }
 0x43d   : > { %3694 = vmatpush.msrb.mxu1 %v3541_v40  ;;  %v3302_v26 = vmul.f32 %v3270_v37, %v7746_v6  ;;  %v3271_v29 = vadd.f32 0.008333334, %v3239_v21  ;;  %v3167_v2 = vmul.f32 %v3135_v1, %v7741_v16  ;;  %v3126_v38 = vadd.f32 2.7557319e-06, %v3094_v60  ;;  %v8728_v40 = vld [vmem:[#allocation37_spill] sm:$0xff] }
 0x43e   : > { %4137 = vmatmul.msk.f32.vlgmr.msrb.gmra.mxu1 %vm1385_vm14, %v7829_v63  ;;  %v3230_v27 = vmul.f32 %v3198_v3, %v7729_v22  ;;  %v3127_v59 = vadd.f32 2.7557319e-06, %v3095_v18  ;;  %v3462_v55 = vand.u32 1, %v8723_v12  ;;  %v8725_v11 = vcvt.f32.s32 %v8724_v58 }
 0x43f   : > { %v3334_v33 = vadd.f32 -0.16666667, %v3302_v26  ;;  %v3303_v8 = vmul.f32 %v3271_v29, %v7920_v25  ;;  %v3199_v14 = vadd.f32 -0.0001984127, %v3167_v2  ;;  %v3158_v45 = vmul.f32 %v3126_v38, %v8721_v13  ;;  %v8730_v2 = vld [vmem:[#allocation45_spill] sm:$0xff] }
 0x440   : > { %v3262_v36 = vadd.f32 0.008333334, %v3230_v27  ;;  %v3159_v52 = vmul.f32 %v3127_v59, %v7993_v24  ;;  %v3463_v61 = vand.u32 1, %v8725_v11  ;;  %vm3494_vm10 = vcmp.eq.s32.totalorder %v3462_v55, 1 }
 0x441   : > { %v3366_v10 = vmul.f32 %v3334_v33, %v7746_v6  ;;  %v3335_v43 = vadd.f32 -0.16666667, %v3303_v8  ;;  %v3231_v46 = vmul.f32 %v3199_v14, %v7741_v16  ;;  %v3190_v35 = vadd.f32 -0.0001984127, %v3158_v45 }
 0x442   : > { %v3294_v7 = vmul.f32 %v3262_v36, %v7729_v22  ;;  %v3191_v6 = vadd.f32 -0.0001984127, %v3159_v52  ;;  %v8727_v17 = vcvt.f32.s32 %v8726_v47  ;;  %vm3495_vm11 = vcmp.eq.s32.totalorder %v3463_v61, 1  ;;  %v3573_v52 = vpop.permute.xlu1 %3572 }
 0x443   : > { %v3398_v53 = vmul.f32 %v3366_v10, %v7721_v23  ;;  %v3367_v5 = vmul.f32 %v3335_v43, %v7920_v25  ;;  %v3263_v9 = vadd.f32 0.008333334, %v3231_v46  ;;  %v3222_v0 = vmul.f32 %v3190_v35, %v8721_v13  ;;  %v8733_v10 = vld [vmem:[#allocation23_spill] sm:$0xff] }
 0x444   : > { %v3326_v30 = vadd.f32 -0.16666667, %v3294_v7  ;;  %v3223_v31 = vmul.f32 %v3191_v6, %v7993_v24  ;;  %v3454_v28 = vand.u32 1, %v8727_v17  ;;  %v8729_v3 = vcvt.f32.s32 %v8728_v40 }
 0x445   : > { %v3430_v50 = vadd.f32 %v3398_v53, %v7721_v23  ;;  %v3399_v62 = vmul.f32 %v3367_v5, %v7748_v48  ;;  %v3295_v20 = vmul.f32 %v3263_v9, %v7741_v16  ;;  %v3254_v51 = vadd.f32 0.008333334, %v3222_v0 }
 0x446   : > { %v3358_v25 = vmul.f32 %v3326_v30, %v7729_v22  ;;  %v3255_v41 = vadd.f32 0.008333334, %v3223_v31  ;;  %v3455_v26 = vand.u32 1, %v8729_v3  ;;  %vm3486_vm12 = vcmp.eq.s32.totalorder %v3454_v28, 1 }
 0x447   : > { %v3526_v39 = vsub.f32 0.0, %v3430_v50  ;;  %v3431_v56 = vadd.f32 %v3399_v62, %v7748_v48  ;;  %v3327_v57 = vadd.f32 -0.16666667, %v3295_v20  ;;  %v3286_v42 = vmul.f32 %v3254_v51, %v8721_v13 }
 0x448   : > { %v3390_v23 = vmul.f32 %v3358_v25, %v7680_v49  ;;  %v3287_v48 = vmul.f32 %v3255_v41, %v7993_v24  ;;  %vm3487_vm13 = vcmp.eq.s32.totalorder %v3455_v26, 1  ;;  %v8734_v43 = vcvt.f32.s32 %v8733_v10 }
 0x449   : > { %v3558_v19 = vsel %vm3494_vm10, %v3526_v39, %v3430_v50  ;;  %v3527_v54 = vsub.f32 0.0, %v3431_v56  ;;  %v3359_v4 = vmul.f32 %v3327_v57, %v7741_v16  ;;  %v3318_v22 = vadd.f32 -0.16666667, %v3286_v42 }
 0x44a   : > { %3712 = vmatpush.msrb.mxu2 %v3558_v19  ;;  %v3422_v34 = vadd.f32 %v3390_v23, %v7680_v49  ;;  %v3319_v29 = vadd.f32 -0.16666667, %v3287_v48  ;;  %v8731_v49 = vld [vmem:[#allocation50_spill] sm:$0xff]  ;;  %v8054_v9 = vperm.slane %v3573_v52, 0  ;;  %v8735_v50 = vmov -0.5  }
 0x44b   : > { %v3559_v37 = vsel %vm3495_vm11, %v3527_v54, %v3431_v56  ;;  %v3391_v21 = vmul.f32 %v3359_v4, %v7719_v32  ;;  %v3350_v1 = vmul.f32 %v3318_v22, %v8721_v13  ;;  %v8732_v18 = vcvt.f32.s32 %v8731_v49 }
 0x44c   : > { %3732 = vmatpush.msrb.mxu3 %v3559_v37  ;;  %v3518_v60 = vsub.f32 0.0, %v3422_v34  ;;  %v3351_v8 = vmul.f32 %v3319_v29, %v7993_v24 }
 0x44d   : > { %v3423_v16 = vadd.f32 %v3391_v21, %v7719_v32  ;;  %v3382_v38 = vmul.f32 %v3350_v1, %v8730_v2  ;;  %v3446_v33 = vand.u32 1, %v8732_v18  ;;  %v3447_v32 = vand.u32 1, %v8734_v43 }
 0x44e   : > { %v3550_v27 = vsel %vm3486_vm12, %v3518_v60, %v3422_v34  ;;  %v3383_v45 = vmul.f32 %v3351_v8, %v8720_v15 }
 0x44f   : > { %3713 = vmatpush.msrb.mxu2 %v3550_v27  ;;  %v3519_v14 = vsub.f32 0.0, %v3423_v16  ;;  %v3414_v13 = vadd.f32 %v3382_v38, %v8730_v2  ;;  %vm3478_vm15 = vcmp.eq.s32.totalorder %v3446_v33, 1  ;;  %vm3479_vm0 = vcmp.eq.s32.totalorder %v3447_v32, 1 }
 0x450   : > { %v3415_v46 = vadd.f32 %v3383_v45, %v8720_v15 }
 0x451   : > { %v3551_v36 = vsel %vm3487_vm13, %v3519_v14, %v3423_v16  ;;  %v3510_v59 = vsub.f32 0.0, %v3414_v13 }
 0x452   : > { %3733 = vmatpush.msrb.mxu3 %v3551_v36  ;;  %v3511_v7 = vsub.f32 0.0, %v3415_v46 }
 0x453   : > { %v3542_v35 = vsel %vm3478_vm15, %v3510_v59, %v3414_v13 }
 0x454   : > { %3714 = vmatpush.msrb.mxu2 %v3542_v35  ;;  %v3543_v24 = vsel %vm3479_vm0, %v3511_v7, %v3415_v46 }
 0x455   : > { %4138 = vmatmul.msk.f32.vlgmr.msrb.gmra.mxu2 %vm1385_vm14, %v7829_v63  ;;  %3734 = vmatpush.msrb.mxu3 %v3543_v24 }
 0x456   : > { %4139 = vmatmul.msk.f32.vlgmr.msrb.gmra.mxu3 %vm1385_vm14, %v7829_v63 }
 0x47f   : > { %v3596_v44 = vpop.f32.mrf.mxu0 }
 0x480   : > { %v8065_v30 = vadd.f32 %v3596_v44, %v8054_v9 }
 0x482   : > { %v3739_v63 = vmul.f32 0.31830987, %v8065_v30 }
 0x484   : > { %vm3747_vm2 = vcmp.ge.f32.partialorder %v3739_v63, 0.0 }
 0x485   : > { %v3755_v31 = vsel %vm3747_vm2, 0.5, %v8735_v50 }
 0x486   : > { %v3763_v28 = vadd.f32 %v3755_v31, %v3739_v63 }
 0x487   : > { %v3616_v53 = vpop.f32.mrf.mxu1 }
 0x488   : > { %v8057_v0 = vadd.f32 %v3616_v53, %v8054_v9  ;;  %v4625_v4 = vceil.f32 %v3763_v28  ;;  %v4626_v22 = vfloor.f32 %v3763_v28  ;;  %vm4624_vm7 = vcmp.lt.s32.totalorder %v3763_v28, 0 }
 0x48a   : > { %v3740_v12 = vmul.f32 0.31830987, %v8057_v0  ;;  %v8083_v60 = vsel %vm4624_vm7, %v4625_v4, %v4626_v22  ;;  %vm3964_vm7 = vcmask 1042434  }
 0x48b   : > { %v4628_v16 = vcvt.f32.s32 %v8083_v60 }
 0x48c   : > { %vm3748_vm14 = vcmp.ge.f32.partialorder %v3740_v12, 0.0 }
 0x48d   : > { %v3756_v62 = vsel %vm3748_vm14, 0.5, %v8735_v50  ;;  %v3779_v14 = vcvt.s32.f32 %v4628_v16 }
 0x48e   : > { %v3764_v11 = vadd.f32 %v3756_v62, %v3740_v12 }
 0x48f   : > { %v3787_v7 = vmul.f32 3.140625, %v3779_v14 }
 0x490   : > { %v4630_v56 = vceil.f32 %v3764_v11  ;;  %v4631_v57 = vfloor.f32 %v3764_v11  ;;  %vm4629_vm4 = vcmp.lt.s32.totalorder %v3764_v11, 0 }
 0x491   : > { %v3795_v12 = vsub.f32 %v8065_v30, %v3787_v7 }
 0x492   : > { %v8073_v41 = vsel %vm4629_vm4, %v4630_v56, %v4631_v57 }
 0x493   : > { %v4633_v34 = vcvt.f32.s32 %v8073_v41 }
 0x495   : > { %v3780_v40 = vcvt.s32.f32 %v4633_v34 }
 0x497   : > { %v3788_v38 = vmul.f32 3.140625, %v3780_v40  ;;  %v3804_v32 = vmul.f32 0.0009676536, %v3780_v40 }
 0x499   : > { %v3796_v13 = vsub.f32 %v8057_v0, %v3788_v38 }
 0x49b   : > { %v8103_v53 = vsub.f32 %v3796_v13, %v3804_v32 }
 0x49d   : > { %v8113_v62 = vmul.f32 %v8103_v53, %v8103_v53 }
 0x49f   : > { %v3828_v56 = vmul.f32 -2.5052108e-08, %v8113_v62 }
 0x4a1   : > { %v3836_v22 = vadd.f32 2.7557319e-06, %v3828_v56 }
 0x4a2   : > { %v3636_v5 = vpop.f32.mrf.mxu2 }
 0x4a3   : > { %v8060_v15 = vadd.f32 %v3636_v5, %v8054_v9 }
 0x4a5   : > { %v3741_v55 = vmul.f32 0.31830987, %v8060_v15  ;;  %v3656_v6 = vpop.f32.mrf.mxu3 }
 0x4a6   : > { %v3657_v51 = vadd.f32 %v3656_v6, %v8054_v9 }
 0x4a7   : > { %vm3749_vm1 = vcmp.ge.f32.partialorder %v3741_v55, 0.0 }
 0x4a8   : > { %v3757_v20 = vsel %vm3749_vm1, 0.5, %v8735_v50  ;;  %v3742_v58 = vmul.f32 0.31830987, %v3657_v51 }
 0x4a9   : > { %v3765_v61 = vadd.f32 %v3757_v20, %v3741_v55 }
 0x4aa   : > { %vm3750_vm3 = vcmp.ge.f32.partialorder %v3742_v58, 0.0 }
 0x4ab   : > { %v3758_v25 = vsel %vm3750_vm3, 0.5, %v8735_v50  ;;  %v4635_v42 = vceil.f32 %v3765_v61  ;;  %v4636_v23 = vfloor.f32 %v3765_v61  ;;  %vm4634_vm5 = vcmp.lt.s32.totalorder %v3765_v61, 0 }
 0x4ac   : > { %v3766_v39 = vadd.f32 %v3758_v25, %v3742_v58  ;;  %v3803_v58 = vmul.f32 0.0009676536, %v3779_v14 }
 0x4ad   : > { %v8075_v19 = vsel %vm4634_vm5, %v4635_v42, %v4636_v23 }
 0x4ae   : > { %v4640_v47 = vceil.f32 %v3766_v39  ;;  %v4641_v17 = vfloor.f32 %v3766_v39  ;;  %vm4639_vm6 = vcmp.lt.s32.totalorder %v3766_v39, 0  ;;  %v4638_v48 = vcvt.f32.s32 %v8075_v19 }
 0x4af   : > { %v8125_v31 = vsub.f32 %v3795_v12, %v3803_v58 }
 0x4b0   : > { %v8077_v54 = vsel %vm4639_vm6, %v4640_v47, %v4641_v17  ;;  %v3781_v3 = vcvt.s32.f32 %v4638_v48 }
 0x4b1   : > { %v4643_v37 = vcvt.f32.s32 %v8077_v54  ;;  %v8139_v17 = vmul.f32 %v8125_v31, %v8125_v31 }
 0x4b2   : > { %v3789_v27 = vmul.f32 3.140625, %v3781_v3  ;;  %v3805_v46 = vmul.f32 0.0009676536, %v3781_v3 }
 0x4b3   : > { %v3782_v29 = vcvt.s32.f32 %v4643_v37  ;;  %v3918_v41 = vand.u32 1, %v4643_v37 }
 0x4b4   : > { %v3797_v45 = vsub.f32 %v8060_v15, %v3789_v27 }
 0x4b5   : > { %v3790_v18 = vmul.f32 3.140625, %v3782_v29  ;;  %v3806_v24 = vmul.f32 0.0009676536, %v3782_v29  ;;  %v3827_v29 = vmul.f32 -2.5052108e-08, %v8139_v17  ;;  %vm3926_vm2 = vcmp.eq.s32.totalorder %v3918_v41, 1 }
 0x4b6   : > { %v8105_v5 = vsub.f32 %v3797_v45, %v3805_v46 }
 0x4b7   : > { %v3798_v59 = vsub.f32 %v3657_v51, %v3790_v18  ;;  %v3844_v18 = vmul.f32 %v3836_v22, %v8113_v62 }
 0x4b8   : > { %v8117_v20 = vmul.f32 %v8105_v5, %v8105_v5 }
 0x4b9   : > { %v3676_v21 = vpop.f32.mrf.mxu0  ;;  %v8107_v15 = vsub.f32 %v3798_v59, %v3806_v24  ;;  %v3852_v7 = vadd.f32 -0.0001984127, %v3844_v18 }
 0x4ba   : > { %v3677_v1 = vadd.f32 %v3676_v21, %v8054_v9  ;;  %v3829_v57 = vmul.f32 -2.5052108e-08, %v8117_v20 }
 0x4bb   : > { %v3696_v43 = vpop.f32.mrf.mxu1  ;;  %v8121_v11 = vmul.f32 %v8107_v15, %v8107_v15 }
 0x4bc   : > { %v3743_v26 = vmul.f32 0.31830987, %v3677_v1  ;;  %v3697_v35 = vadd.f32 %v3696_v43, %v8054_v9  ;;  %v3837_v21 = vadd.f32 2.7557319e-06, %v3829_v57  ;;  %v3835_v43 = vadd.f32 2.7557319e-06, %v3827_v29 }
 0x4bd   : > { %v3830_v23 = vmul.f32 -2.5052108e-08, %v8121_v11  ;;  %v3860_v57 = vmul.f32 %v3852_v7, %v8113_v62 }
 0x4be   : > { %vm3751_vm8 = vcmp.ge.f32.partialorder %v3743_v26, 0.0  ;;  %v3744_v0 = vmul.f32 0.31830987, %v3697_v35  ;;  %v3843_v56 = vmul.f32 %v3835_v43, %v8139_v17 }
 0x4bf   : > { %v3759_v2 = vsel %vm3751_vm8, 0.5, %v8735_v50 }
 0x4c0   : > { %v3767_v49 = vadd.f32 %v3759_v2, %v3743_v26  ;;  %vm3752_vm10 = vcmp.ge.f32.partialorder %v3744_v0, 0.0  ;;  %v3851_v29 = vadd.f32 -0.0001984127, %v3843_v56 }
 0x4c1   : > { %v3760_v6 = vsel %vm3752_vm10, 0.5, %v8735_v50  ;;  %vm3968_vm10 = vcmask 1044484  }
 0x4c2   : > { %vm4644_vm9 = vcmp.lt.s32.totalorder %v3767_v49, 0  ;;  %v4645_v33 = vceil.f32 %v3767_v49  ;;  %v4646_v8 = vfloor.f32 %v3767_v49  ;;  %v3768_v51 = vadd.f32 %v3760_v6, %v3744_v0 }
 0x4c4   : > { %v8097_v36 = vsel %vm4644_vm9, %v4645_v33, %v4646_v8  ;;  %vm4649_vm11 = vcmp.lt.s32.totalorder %v3768_v51, 0  ;;  %v4650_v30 = vceil.f32 %v3768_v51  ;;  %v4651_v25 = vfloor.f32 %v3768_v51 }
 0x4c5   : > { %v4648_v10 = vcvt.f32.s32 %v8097_v36  ;;  %v3845_v33 = vmul.f32 %v3837_v21, %v8117_v20  ;;  %vm3962_vm9 = vcmask 1040384  }
 0x4c6   : > { %v8133_v42 = vsel %vm4649_vm11, %v4650_v30, %v4651_v25  ;;  %vm3970_vm11 = vcmask 1046534  }
 0x4c7   : > { %v3783_v52 = vcvt.s32.f32 %v4648_v10  ;;  %v4653_v47 = vcvt.f32.s32 %v8133_v42  ;;  %v3853_v24 = vadd.f32 -0.0001984127, %v3845_v33 }
 0x4c9   : > { %v3791_v44 = vmul.f32 3.140625, %v3783_v52  ;;  %v3807_v63 = vmul.f32 0.0009676536, %v3783_v52  ;;  %v3784_v4 = vcvt.s32.f32 %v4653_v47 }
 0x4cb   : > { %v3799_v55 = vsub.f32 %v3677_v1, %v3791_v44  ;;  %v3838_v1 = vadd.f32 2.7557319e-06, %v3830_v23  ;;  %v3792_v40 = vmul.f32 3.140625, %v3784_v4  ;;  %v3808_v27 = vmul.f32 0.0009676536, %v3784_v4 }
 0x4cd   : > { %v8123_v61 = vsub.f32 %v3799_v55, %v3807_v63  ;;  %v3800_v38 = vsub.f32 %v3697_v35, %v3792_v40  ;;  %v3846_v13 = vmul.f32 %v3838_v1, %v8121_v11 }
 0x4cf   : > { %v8129_v39 = vmul.f32 %v8123_v61, %v8123_v61  ;;  %v8150_v45 = vsub.f32 %v3800_v38, %v3808_v27 }
 0x4d1   : > { %v3831_v28 = vmul.f32 -2.5052108e-08, %v8129_v39  ;;  %v8155_v46 = vmul.f32 %v8150_v45, %v8150_v45 }
 0x4d3   : > { %v3839_v2 = vadd.f32 2.7557319e-06, %v3831_v28  ;;  %v3832_v0 = vmul.f32 -2.5052108e-08, %v8155_v46 }
 0x4d5   : > { %v3847_v32 = vmul.f32 %v3839_v2, %v8129_v39  ;;  %v3840_v51 = vadd.f32 2.7557319e-06, %v3832_v0  ;;  %v3868_v2 = vadd.f32 0.008333334, %v3860_v57 }
 0x4d7   : > { %v3855_v6 = vadd.f32 -0.0001984127, %v3847_v32  ;;  %v3848_v23 = vmul.f32 %v3840_v51, %v8155_v46  ;;  %v3876_v7 = vmul.f32 %v3868_v2, %v8113_v62 }
 0x4d8   : > { %v3716_v3 = vpop.f32.mrf.mxu2 }
 0x4d9   : > { %v3717_v26 = vadd.f32 %v3716_v3, %v8054_v9  ;;  %v3736_v49 = vpop.f32.mrf.mxu3  ;;  %v3856_v21 = vadd.f32 -0.0001984127, %v3848_v23  ;;  %v3863_v40 = vmul.f32 %v3855_v6, %v8129_v39 }
 0x4da   : > { %v3737_v14 = vadd.f32 %v3736_v49, %v8054_v9  ;;  %v3854_v9 = vadd.f32 -0.0001984127, %v3846_v13 }
 0x4db   : > { %v3745_v8 = vmul.f32 0.31830987, %v3717_v26  ;;  %v3864_v38 = vmul.f32 %v3856_v21, %v8155_v46 }
 0x4dc   : > { %v3746_v59 = vmul.f32 0.31830987, %v3737_v14  ;;  %v3862_v4 = vmul.f32 %v3854_v9, %v8121_v11 }
 0x4dd   : > { %vm3753_vm12 = vcmp.ge.f32.partialorder %v3745_v8, 0.0  ;;  %v3872_v43 = vadd.f32 0.008333334, %v3864_v38 }
 0x4de   : > { %v3761_v35 = vsel %vm3753_vm12, 0.5, %v8735_v50  ;;  %vm3754_vm13 = vcmp.ge.f32.partialorder %v3746_v59, 0.0  ;;  %v3870_v18 = vadd.f32 0.008333334, %v3862_v4  ;;  %vm3966_vm12 = vcmask 1041408  }
 0x4df   : > { %v3769_v52 = vadd.f32 %v3761_v35, %v3745_v8  ;;  %v3762_v44 = vsel %vm3754_vm13, 0.5, %v8735_v50  ;;  %v3861_v50 = vmul.f32 %v3853_v24, %v8117_v20  ;;  %v3859_v35 = vmul.f32 %v3851_v29, %v8139_v17 }
 0x4e0   : > { %v3770_v63 = vadd.f32 %v3762_v44, %v3746_v59  ;;  %v3871_v59 = vadd.f32 0.008333334, %v3863_v40  ;;  %v3878_v9 = vmul.f32 %v3870_v18, %v8121_v11  ;;  %vm3972_vm13 = vcmask 1045508  }
 0x4e1   : > { %vm4654_vm15 = vcmp.lt.s32.totalorder %v3769_v52, 0  ;;  %v4655_v12 = vceil.f32 %v3769_v52  ;;  %v4656_v55 = vfloor.f32 %v3769_v52  ;;  %v3869_v49 = vadd.f32 0.008333334, %v3861_v50 }
 0x4e2   : > { %vm4659_vm0 = vcmp.lt.s32.totalorder %v3770_v63, 0  ;;  %v4660_v30 = vceil.f32 %v3770_v63  ;;  %v4661_v25 = vfloor.f32 %v3770_v63  ;;  %v3867_v6 = vadd.f32 0.008333334, %v3859_v35 }
 0x4e3   : > { %v8160_v58 = vsel %vm4654_vm15, %v4655_v12, %v4656_v55  ;;  %v3877_v52 = vmul.f32 %v3869_v49, %v8117_v20  ;;  %v3880_v55 = vmul.f32 %v3872_v43, %v8155_v46  ;;  %v3886_v56 = vadd.f32 -0.16666667, %v3878_v9 }
 0x4e4   : > { %v4658_v28 = vcvt.f32.s32 %v8160_v58  ;;  %v8168_v22 = vsel %vm4659_vm0, %v4660_v30, %v4661_v25  ;;  %v3884_v30 = vadd.f32 -0.16666667, %v3876_v7  ;;  %v3875_v21 = vmul.f32 %v3867_v6, %v8139_v17 }
 0x4e5   : > { %v4663_v3 = vcvt.f32.s32 %v8168_v22  ;;  %v3885_v25 = vadd.f32 -0.16666667, %v3877_v52  ;;  %v3888_v50 = vadd.f32 -0.16666667, %v3880_v55  ;;  %v3894_v2 = vmul.f32 %v3886_v56, %v8121_v11 }
 0x4e6   : > { %v3785_v1 = vcvt.s32.f32 %v4658_v28  ;;  %v3892_v40 = vmul.f32 %v3884_v30, %v8113_v62  ;;  %v8210_v6 = vand.u32 1, %v4628_v16  ;;  %v3921_v54 = vand.u32 1, %v4658_v28 }
 0x4e7   : > { %v3786_v33 = vcvt.s32.f32 %v4663_v3  ;;  %v3893_v29 = vmul.f32 %v3885_v25, %v8117_v20  ;;  %v3896_v18 = vmul.f32 %v3888_v50, %v8155_v46  ;;  %v3922_v58 = vand.u32 1, %v4663_v3 }
 0x4e8   : > { %v3793_v27 = vmul.f32 3.140625, %v3785_v1  ;;  %v3809_v13 = vmul.f32 0.0009676536, %v3785_v1  ;;  %vm3929_vm5 = vcmp.eq.s32.totalorder %v3921_v54, 1  ;;  %vm3923_vm6 = vcmp.eq.s32.totalorder %v8210_v6, 1 }
 0x4e9   : > { %v3794_v32 = vmul.f32 3.140625, %v3786_v33  ;;  %v3810_v44 = vmul.f32 0.0009676536, %v3786_v33  ;;  %v3901_v43 = vmul.f32 %v3893_v29, %v8105_v5  ;;  %v3904_v11 = vmul.f32 %v3896_v18, %v8150_v45 }
 0x4ea   : > { %v3801_v8 = vsub.f32 %v3717_v26, %v3793_v27  ;;  %v3879_v26 = vmul.f32 %v3871_v59, %v8129_v39  ;;  %v3900_v59 = vmul.f32 %v3892_v40, %v8103_v53  ;;  %vm3930_vm8 = vcmp.eq.s32.totalorder %v3922_v58, 1 }
 0x4eb   : > { %v3802_v0 = vsub.f32 %v3737_v14, %v3794_v32  ;;  %v3902_v32 = vmul.f32 %v3894_v2, %v8107_v15  ;;  %v3909_v9 = vadd.f32 %v3901_v43, %v8105_v5  ;;  %v3917_v5 = vand.u32 1, %v4638_v48 }
 0x4ec   : > { %v8179_v24 = vsub.f32 %v3801_v8, %v3809_v13  ;;  %v3887_v14 = vadd.f32 -0.16666667, %v3879_v26  ;;  %v3883_v8 = vadd.f32 -0.16666667, %v3875_v21  ;;  %v3908_v46 = vadd.f32 %v3900_v59, %v8103_v53 }
 0x4ed   : > { %v8187_v63 = vsub.f32 %v3802_v0, %v3810_v44  ;;  %v3910_v0 = vadd.f32 %v3902_v32, %v8107_v15  ;;  %v3916_v26 = vand.u32 1, %v4633_v34  ;;  %v3933_v25 = vsub.f32 0.0, %v3909_v9 }
 0x4ee   : > { %v3825_v12 = vmul.f32 %v8179_v24, %v8179_v24  ;;  %v3895_v49 = vmul.f32 %v3887_v14, %v8129_v39  ;;  %v3891_v39 = vmul.f32 %v3883_v8, %v8139_v17  ;;  %v3912_v17 = vadd.f32 %v3904_v11, %v8150_v45 }
 0x4ef   : > { %v3826_v57 = vmul.f32 %v8187_v63, %v8187_v63  ;;  %v3932_v15 = vsub.f32 0.0, %v3908_v46  ;;  %v3934_v60 = vsub.f32 0.0, %v3910_v0  ;;  %vm3924_vm14 = vcmp.eq.s32.totalorder %v3916_v26, 1 }
 0x4f0   : > { %v3833_v51 = vmul.f32 -2.5052108e-08, %v3825_v12  ;;  %v3903_v20 = vmul.f32 %v3895_v49, %v8123_v61  ;;  %v3899_v53 = vmul.f32 %v3891_v39, %v8125_v31  ;;  %v3920_v45 = vand.u32 1, %v4653_v47 }
 0x4f1   : > { %v3834_v4 = vmul.f32 -2.5052108e-08, %v3826_v57  ;;  %vm3925_vm1 = vcmp.eq.s32.totalorder %v3917_v5, 1  ;;  %v3942_v42 = vsel %vm3926_vm2, %v3934_v60, %v3910_v0  ;;  %vm3974_vm15 = vcmask 1043456  }
 0x4f2   : > { %v3841_v23 = vadd.f32 2.7557319e-06, %v3833_v51  ;;  %v3911_v51 = vadd.f32 %v3903_v20, %v8123_v61  ;;  %v3919_v61 = vand.u32 1, %v4648_v10  ;;  %v3907_v37 = vadd.f32 %v3899_v53, %v8125_v31 }
 0x4f3   : > { %v3842_v38 = vadd.f32 2.7557319e-06, %v3834_v4  ;;  %v3940_v10 = vsel %vm3924_vm14, %v3932_v15, %v3908_v46  ;;  %vm3928_vm4 = vcmp.eq.s32.totalorder %v3920_v45, 1  ;;  %v3957_v4 = vrot.slane %v3942_v42, 5 }
 0x4f4   : > { %v3849_v1 = vmul.f32 %v3841_v23, %v3825_v12  ;;  %v3935_v19 = vsub.f32 0.0, %v3911_v51  ;;  %v3936_v23 = vsub.f32 0.0, %v3912_v17  ;;  %vm3927_vm3 = vcmp.eq.s32.totalorder %v3919_v61, 1 }
 0x4f5   : > { %v3850_v33 = vmul.f32 %v3842_v38, %v3826_v57  ;;  %v3931_v21 = vsub.f32 0.0, %v3907_v37  ;;  %v3955_v40 = vrot.slane %v3940_v10, 7 }
 0x4f6   : > { %v3857_v27 = vadd.f32 -0.0001984127, %v3849_v1  ;;  %v3943_v31 = vsel %vm3927_vm3, %v3935_v19, %v3911_v51  ;;  %v3944_v28 = vsel %vm3928_vm4, %v3936_v23, %v3912_v17 }
 0x4f7   : > { %v3858_v62 = vadd.f32 -0.0001984127, %v3850_v33  ;;  %v3958_v22 = vrot.slane %v3943_v31, 4  ;;  %v3959_v3 = vrot.slane %v3944_v28, 3 }
 0x4f8   : > { %v3865_v13 = vmul.f32 %v3857_v27, %v3825_v12  ;;  %v3939_v27 = vsel %vm3923_vm6, %v3931_v21, %v3907_v37 }
 0x4f9   : > { %v3866_v7 = vmul.f32 %v3858_v62, %v3826_v57  ;;  %v3963_v49 = vsel %vm3962_vm9, %v3939_v27, %v3955_v40  ;;  %v3969_v18 = vsel %vm3968_vm10, %v3958_v22, %v3959_v3 }
 0x4fa   : > { %v3873_v35 = vadd.f32 0.008333334, %v3865_v13 }
 0x4fb   : > { %v3874_v44 = vadd.f32 0.008333334, %v3866_v7 }
 0x4fc   : > { %v3881_v52 = vmul.f32 %v3873_v35, %v3825_v12 }
 0x4fd   : > { %v3882_v30 = vmul.f32 %v3874_v44, %v3826_v57 }
 0x4fe   : > { %v3889_v55 = vadd.f32 -0.16666667, %v3881_v52 }
 0x4ff   : > { %v3890_v16 = vadd.f32 -0.16666667, %v3882_v30 }
 0x500   : > { %v3897_v34 = vmul.f32 %v3889_v55, %v3825_v12  ;;  %v3941_v12 = vsel %vm3925_vm1, %v3933_v25, %v3909_v9 }
 0x501   : > { %v3898_v48 = vmul.f32 %v3890_v16, %v3826_v57  ;;  %v3956_v50 = vrot.slane %v3941_v12, 6 }
 0x502   : > { %v3905_v56 = vmul.f32 %v3897_v34, %v8179_v24 }
 0x503   : > { %v3906_v47 = vmul.f32 %v3898_v48, %v8187_v63  ;;  %v3965_v38 = vsel %vm3964_vm7, %v3956_v50, %v3957_v4 }
 0x504   : > { %v3913_v36 = vadd.f32 %v3905_v56, %v8179_v24  ;;  %v3967_v8 = vsel %vm3966_vm12, %v3963_v49, %v3965_v38 }
 0x505   : > { %v3914_v24 = vadd.f32 %v3906_v47, %v8187_v63 }
 0x506   : > { %v3937_v14 = vsub.f32 0.0, %v3913_v36 }
 0x507   : > { %v3938_v1 = vsub.f32 0.0, %v3914_v24 }
 0x508   : > { %v3945_v57 = vsel %vm3929_vm5, %v3937_v14, %v3913_v36 }
 0x509   : > { %v3960_v29 = vrot.slane %v3945_v57, 2  ;;  %v3946_v2 = vsel %vm3930_vm8, %v3938_v1, %v3914_v24 }
 0x50a   : > { %v3961_v63 = vrot.slane %v3946_v2, 1 }
 0x50c   : > { %v3971_v33 = vsel %vm3970_vm11, %v3960_v29, %v3961_v63 }
 0x50d   : > { %v3973_v13 = vsel %vm3972_vm13, %v3969_v18, %v3971_v33 }
 0x50e   : > { %v3975_v59 = vsel %vm3974_vm15, %v3967_v8, %v3973_v13 }
 0x50f   : > { %3977 = vst [vmem:[%s274_s16] sm:$0xff] %v3975_v59 }
 0x510   : > { %4743 = shalt.err (!%p4740_p3)
}
 0x511   : > { %4664 = dma.vmem_to_hbm [thread:$0]  (%p4863_p5), %s3992_s17, 128, %s3994_s18, %s3979_s21  }
 0x512 PF: > { %p4670_p4 = scmp.ge.s32.totalorder %s4778_s29, 2  ;;  %s4005_s6 = sand.u32 1, %s4766_s26  }
 0x513   : > { %s4006_s9 = scalar_lea.sflag [#allocation4], %s4005_s6 }
 0x514   : > { %p4667_p7 = pnand %p4670_p4, %p4867_p6 }
 0x516   : > { %p4668_p8 = pneg %p4667_p7 }
 0x518   : > { %4761 = dma.done.wait (%p4668_p8), %s4006_s9, 128  }
 0x519   : > { %4763 = vsyncadd (%p4668_p8), %s4006_s9, 4294967168  ;;  %p19_p9 = scmp.ge.s32.totalorder %s4849_s8, 6   ;;  %s8736_s26 = smov %s4770_s27 }
 0x51a   : > { %s8737_s27 = smov %s4774_s28  ;;  %s8738_s28 = smov %s4861_s11 }
 0x51b   : > { %s8739_s29 = smov %s4849_s8  ;;  %21 = sbr.rel (!%p19_p9) target bundleno = 6 (0x6), region = 85 }
 0x520   :  { %4012 = vsyncpa [#allocation4], 1 }
 0x521   :  { %4014 = vsyncpa [#allocation4 + $0x1], 1 }

</bundles_post_ra>
